<compile_context>
chip_gen: v5e
topology: v5e:2x2
jax: 0.10.0
libtpu: 0.0.40
codegen_flags: <defaults>
</compile_context>

<pallas_src>
import jax
import jax.numpy as jnp
from jax.experimental import pallas as pl
from jax.experimental.pallas import tpu as pltpu


_HAS_BUFFERED = hasattr(pl, "Buffered")
LANE = 128


def mlp_kernel(x_ref, w1_ref, b1_ref, w2_ref, b2_ref, w3_ref, b3_ref, o_ref):
    # Cast x to bf16 in-kernel (hides under MXU-bound matmuls; saves a wrapper
    # HBM pass over x).
    x = x_ref[...].astype(jnp.bfloat16)
    # Layer 1: bf16 matmul on the MXU, f32 accumulate; bias + ReLU on the VPU.
    h = jnp.dot(x, w1_ref[...], preferred_element_type=jnp.float32)
    h = jnp.maximum(h + b1_ref[...], 0.0)
    # Layer 2: Linear + ReLU.
    h = jnp.dot(h.astype(jnp.bfloat16), w2_ref[...],
                preferred_element_type=jnp.float32)
    h = jnp.maximum(h + b2_ref[...], 0.0)
    # Layer 3: Linear (no activation, matches the PyTorch module).
    out = jnp.dot(h.astype(jnp.bfloat16), w3_ref[...],
                  preferred_element_type=jnp.float32)
    o_ref[...] = (out + b3_ref[...]).astype(o_ref.dtype)


def _round_up(n, m):
    return ((n + m - 1) // m) * m


def _pad2d(a, shape):
    return jnp.pad(a, ((0, shape[0] - a.shape[0]), (0, shape[1] - a.shape[1])))


def _tpu_topology():
    """(num_tensorcores_per_chip, physical_vmem_per_tc_bytes, mxu_rows)."""
    kind = ""
    try:
        kind = (getattr(jax.devices()[0], "device_kind", "") or "").lower()
    except Exception:
        pass
    if "v7" in kind:
        return 2, 64 * 1024 * 1024, 256      # 2 TCs/chip, 64 MiB VMEM/TC, 256-deep MXU
    if "v6" in kind:
        return 1, 128 * 1024 * 1024, 256     # 1 TC, 128 MiB, 2x256^2 MXU
    if "v5" in kind:
        return 1, 128 * 1024 * 1024, 128     # v5e: 1 TC, 128 MiB, 4x128^2 MXU
    # Unknown chip: conservative VMEM assumption.
    return 1, 64 * 1024 * 1024, 128


def _choose_tile(batch, num_tc, block_batch, mxu_m):
    """Pick (rows_per_tile, num_tiles). Grid is a multiple of the TC count."""
    per_core = -(-batch // num_tc)
    if per_core <= block_batch:
        # Whole per-core batch in one grid step (serial grid steps only add
        # overhead on a single-TC chip).
        tb = _round_up(per_core, 8)
    else:
        # Many steps: make each step MXU-shaped.
        if block_batch >= mxu_m:
            tb = _round_up(min(block_batch, per_core), mxu_m)
        else:
            tb = _round_up(block_batch, 8)
    n_tiles = _round_up(-(-batch // tb), num_tc)
    return tb, n_tiles


def _resident_spec(shape):
    """Weights/biases: same block every grid step -> single VMEM buffer."""
    nd = len(shape)
    idx = lambda i: (0,) * nd
    if _HAS_BUFFERED:
        try:
            return pl.BlockSpec(shape, idx, pipeline_mode=pl.Buffered(buffer_count=1))
        except TypeError:
            pass  # older BlockSpec signature without pipeline_mode
    return pl.BlockSpec(shape, idx)


def prepare_params(params):
    """One-time weight prep: pad feature dims to 128 lanes, cast weights to bf16.

    params: ((w1, b1), (w2, b2), (w3, b3)), weights (in, out), biases (1, out).
    Returns (prepared_arrays, dims) where dims are static python ints.
    """
    (w1, b1), (w2, b2), (w3, b3) = params
    in_dim, h1_dim = w1.shape
    h2_dim, out_dim = w3.shape
    in_p = _round_up(in_dim, LANE)
    h1_p = _round_up(h1_dim, LANE)
    h2_p = _round_up(h2_dim, LANE)
    out_p = _round_up(out_dim, LANE)

    # Zero padding keeps the math exact: padded columns/rows contribute 0
    # through every Linear+ReLU; padded output lanes are sliced away.
    prepared = (
        _pad2d(w1, (in_p, h1_p)).astype(jnp.bfloat16),
        _pad2d(b1, (1, h1_p)).astype(jnp.float32),
        _pad2d(w2, (h1_p, h2_p)).astype(jnp.bfloat16),
        _pad2d(b2, (1, h2_p)).astype(jnp.float32),
        _pad2d(w3, (h2_p, out_p)).astype(jnp.bfloat16),
        _pad2d(b3, (1, out_p)).astype(jnp.float32),
    )
    dims = dict(in_dim=in_dim, out_dim=out_dim,
                padded=(in_p, h1_p, h2_p, out_p))
    return prepared, dims


def make_hidden_state_transformer(params, *, block_batch=256):
    """Builds a jitted forward: x (B, input_dim) f32 -> (B, output_dim) f32."""
    prepared, dims = prepare_params(params)
    num_tc, vmem_phys, mxu_m = _tpu_topology()
    in_p, h1_p, h2_p, out_p = dims["padded"]
    in_dim, out_dim = dims["in_dim"], dims["out_dim"]

    # Resident-weight VMEM footprint (single-buffered bf16 weights, f32 biases).
    bytes_w = 2 * (in_p * h1_p + h1_p * h2_p + h2_p * out_p)
    bytes_b = 4 * (h1_p + h2_p + out_p)
    if bytes_w + bytes_b > int(0.4 * vmem_phys):
        # TODO(synk): K-tiled grid over the hidden dims (reduction axis
        # "arbitrary" + acc scratch) or pltpu.emit_pipeline over w2 for layer
        # sizes whose weights don't fit resident in VMEM.
        raise ValueError(
            f"Resident weights ({(bytes_w + bytes_b) / 2**20:.1f} MiB) exceed the "
            f"VMEM budget on this chip ({vmem_phys / 2**20:.0f} MiB physical).")

    def fwd(x, w1, b1, w2, b2, w3, b3):
        B = x.shape[0]
        tb, n_tiles = _choose_tile(B, num_tc, block_batch, mxu_m)
        B_pad = tb * n_tiles

        # x stays f32 (cast to bf16 inside the kernel); pad fuses under jit.
        x_p = _pad2d(x, (B_pad, in_p))

        # VMEM need: resident weights + double-buffered x/out tiles + f32/bf16
        # intermediates; capped below physical VMEM with headroom.
        bytes_x = 2 * tb * in_p * 4
        bytes_o = 2 * tb * out_p * 4
        bytes_tmp = tb * (h1_p + h2_p) * 4 + tb * max(h1_p, h2_p) * 2
        need = bytes_w + bytes_b + bytes_x + bytes_o + bytes_tmp
        vmem_cap = vmem_phys - (16 << 20)
        vmem_limit = min(vmem_cap, max(32 << 20, 2 * need))
        if need > vmem_cap:
            raise ValueError("Requested tile does not fit VMEM; reduce block_batch.")

        flops = 2 * B_pad * (in_p * h1_p + h1_p * h2_p + h2_p * out_p)
        bytes_accessed = (B_pad * in_p * 4 + bytes_w + bytes_b + B_pad * out_p * 4)
        cost = pl.CostEstimate(flops=flops, transcendentals=0,
                               bytes_accessed=bytes_accessed)

        out_pad = pl.pallas_call(
            mlp_kernel,
            out_shape=jax.ShapeDtypeStruct((B_pad, out_p), jnp.float32),
            grid_spec=pltpu.PrefetchScalarGridSpec(
                num_scalar_prefetch=0,
                grid=(n_tiles,),
                in_specs=[
                    pl.BlockSpec((tb, in_p), lambda i: (i, 0)),   # x batch tile
                    _resident_spec(w1.shape), _resident_spec(b1.shape),
                    _resident_spec(w2.shape), _resident_spec(b2.shape),
                    _resident_spec(w3.shape), _resident_spec(b3.shape),
                ],
                out_specs=pl.BlockSpec((tb, out_p), lambda i: (i, 0)),
            ),
            compiler_params=pltpu.CompilerParams(
                # Shards batch tiles across the 2 TensorCores on v7x; harmless
                # (near-zero impact) on single-TC chips.
                dimension_semantics=("parallel",),
                vmem_limit_bytes=vmem_limit,
            ),
            cost_estimate=cost,
        )(x_p, w1, b1, w2, b2, w3, b3)

        return out_pad[:B, :out_dim]

    fwd_jit = jax.jit(fwd)
    return lambda x: fwd_jit(x, *prepared)


def init_params(key, input_dim, output_dim, hidden_layers):
    """Deterministic init mimicking nn.Linear's U(-1/sqrt(fan_in), 1/sqrt(fan_in))."""
    dims = [input_dim] + list(hidden_layers) + [output_dim]
    params = []
    for i in range(len(dims) - 1):
        key, kw, kb = jax.random.split(key, 3)
        fan_in, fan_out = dims[i], dims[i + 1]
        bound = 1.0 / jnp.sqrt(fan_in)
        w = jax.random.uniform(kw, (fan_in, fan_out), jnp.float32, -bound, bound)
        b = jax.random.uniform(kb, (1, fan_out), jnp.float32, -bound, bound)
        params.append((w, b))
    return tuple(params)


def reference_forward(x, params):
    """Pure-JAX reference mirroring the kernel's bf16-operand / f32-accumulate numerics."""
    (w1, b1), (w2, b2), (w3, b3) = params
    bf = lambda a: a.astype(jnp.bfloat16).astype(jnp.float32)
    h = jnp.maximum(jnp.dot(bf(x), bf(w1)) + b1, 0.0)
    h = jnp.maximum(jnp.dot(bf(h), bf(w2)) + b2, 0.0)
    return jnp.dot(bf(h), bf(w3)) + b3


if __name__ == "__main__":
    key = jax.random.PRNGKey(0)
    kx, kp = jax.random.split(key)

    # Shapes consistent with the module defaults; deliberately non-aligned
    # batch and feature dims to exercise the padding / tiling path.
    batch = 200
    input_dim = 48
    hidden_layers = [512, 512]   # module default
    output_dim = 40

    x = jax.random.normal(kx, (batch, input_dim), jnp.float32)
    params = init_params(kp, input_dim, output_dim, hidden_layers)

    forward = make_hidden_state_transformer(params)
    out = jax.block_until_ready(forward(x))

    ref = reference_forward(x, params)
    assert out.shape == (batch, output_dim)
    assert jnp.allclose(out, ref, atol=2e-2, rtol=2e-2), "mismatch vs reference"

    print("KERNEL_OK")
</pallas_src>

<mosaic_0001>
module attributes {stable_mosaic.version = 11 : i64} {
  func.func @mlp_kernel(%arg0: i32, %arg1: memref<200x128xf32, #tpu.memory_space<vmem>>, %arg2: memref<128x512xbf16, #tpu.memory_space<vmem>>, %arg3: memref<1x512xf32, #tpu.memory_space<vmem>>, %arg4: memref<512x512xbf16, #tpu.memory_space<vmem>>, %arg5: memref<1x512xf32, #tpu.memory_space<vmem>>, %arg6: memref<512x128xbf16, #tpu.memory_space<vmem>>, %arg7: memref<1x128xf32, #tpu.memory_space<vmem>>, %arg8: memref<200x128xf32, #tpu.memory_space<vmem>>) attributes {dimension_semantics = [#tpu.dimension_semantics<parallel>], iteration_bounds = array<i64: 1>, scalar_prefetch = 0 : i64, scratch_operands = 0 : i64, tpu.core_type = #tpu.core_type<tc>, window_params = [{transform_indices = @transform_0, window_bounds = array<i64: 200, 128>}, {pipeline_mode = #tpu.pipeline_mode<synchronous>, transform_indices = @transform_1, window_bounds = array<i64: 128, 512>}, {pipeline_mode = #tpu.pipeline_mode<synchronous>, transform_indices = @transform_2, window_bounds = array<i64: 1, 512>}, {pipeline_mode = #tpu.pipeline_mode<synchronous>, transform_indices = @transform_3, window_bounds = array<i64: 512, 512>}, {pipeline_mode = #tpu.pipeline_mode<synchronous>, transform_indices = @transform_4, window_bounds = array<i64: 1, 512>}, {pipeline_mode = #tpu.pipeline_mode<synchronous>, transform_indices = @transform_5, window_bounds = array<i64: 512, 128>}, {pipeline_mode = #tpu.pipeline_mode<synchronous>, transform_indices = @transform_6, window_bounds = array<i64: 1, 128>}, {transform_indices = @transform_7, window_bounds = array<i64: 200, 128>}]} {
    %c0 = arith.constant 0 : index
    %c0_0 = arith.constant 0 : index
    %0 = vector.load %arg1[%c0, %c0_0] : memref<200x128xf32, #tpu.memory_space<vmem>>, vector<200x128xf32>
    %1 = arith.truncf %0 : vector<200x128xf32> to vector<200x128xbf16>
    %c0_1 = arith.constant 0 : index
    %c0_2 = arith.constant 0 : index
    %2 = vector.load %arg2[%c0_1, %c0_2] : memref<128x512xbf16, #tpu.memory_space<vmem>>, vector<128x512xbf16>
    %cst = arith.constant dense<0.000000e+00> : vector<200x512xf32>
    %3 = tpu.matmul %1, %2, %cst {dimension_numbers = #tpu.dot_dimension_numbers<[1], [0], [0], [1], [0, 0, 1, 1], [], []>} : vector<200x128xbf16>, vector<128x512xbf16>, vector<200x512xf32> -> vector<200x512xf32>
    %c0_3 = arith.constant 0 : index
    %c0_4 = arith.constant 0 : index
    %4 = vector.load %arg3[%c0_3, %c0_4] : memref<1x512xf32, #tpu.memory_space<vmem>>, vector<1x512xf32>
    %5 = vector.broadcast %4 : vector<1x512xf32> to vector<200x512xf32>
    %6 = arith.addf %3, %5 : vector<200x512xf32>
    %cst_5 = arith.constant 0.000000e+00 : f32
    %7 = vector.broadcast %cst_5 : f32 to vector<200x512xf32>
    %8 = arith.maximumf %6, %7 : vector<200x512xf32>
    %9 = arith.truncf %8 : vector<200x512xf32> to vector<200x512xbf16>
    %c0_6 = arith.constant 0 : index
    %c0_7 = arith.constant 0 : index
    %10 = vector.load %arg4[%c0_6, %c0_7] : memref<512x512xbf16, #tpu.memory_space<vmem>>, vector<512x512xbf16>
    %cst_8 = arith.constant dense<0.000000e+00> : vector<200x512xf32>
    %11 = tpu.matmul %9, %10, %cst_8 {dimension_numbers = #tpu.dot_dimension_numbers<[1], [0], [0], [1], [0, 0, 1, 1], [], []>} : vector<200x512xbf16>, vector<512x512xbf16>, vector<200x512xf32> -> vector<200x512xf32>
    %c0_9 = arith.constant 0 : index
    %c0_10 = arith.constant 0 : index
    %12 = vector.load %arg5[%c0_9, %c0_10] : memref<1x512xf32, #tpu.memory_space<vmem>>, vector<1x512xf32>
    %13 = vector.broadcast %12 : vector<1x512xf32> to vector<200x512xf32>
    %14 = arith.addf %11, %13 : vector<200x512xf32>
    %cst_11 = arith.constant 0.000000e+00 : f32
    %15 = vector.broadcast %cst_11 : f32 to vector<200x512xf32>
    %16 = arith.maximumf %14, %15 : vector<200x512xf32>
    %17 = arith.truncf %16 : vector<200x512xf32> to vector<200x512xbf16>
    %c0_12 = arith.constant 0 : index
    %c0_13 = arith.constant 0 : index
    %18 = vector.load %arg6[%c0_12, %c0_13] : memref<512x128xbf16, #tpu.memory_space<vmem>>, vector<512x128xbf16>
    %cst_14 = arith.constant dense<0.000000e+00> : vector<200x128xf32>
    %19 = tpu.matmul %17, %18, %cst_14 {dimension_numbers = #tpu.dot_dimension_numbers<[1], [0], [0], [1], [0, 0, 1, 1], [], []>} : vector<200x512xbf16>, vector<512x128xbf16>, vector<200x128xf32> -> vector<200x128xf32>
    %c0_15 = arith.constant 0 : index
    %c0_16 = arith.constant 0 : index
    %20 = vector.load %arg7[%c0_15, %c0_16] : memref<1x128xf32, #tpu.memory_space<vmem>>, vector<1x128xf32>
    %21 = vector.broadcast %20 : vector<1x128xf32> to vector<200x128xf32>
    %22 = arith.addf %19, %21 : vector<200x128xf32>
    %c0_17 = arith.constant 0 : index
    %c0_18 = arith.constant 0 : index
    %23 = vector.load %arg8[%c0_17, %c0_18] : memref<200x128xf32, #tpu.memory_space<vmem>>, vector<200x128xf32>
    tpu.vector_store %arg8[%c0_17, %c0_18], %22 {strides = array<i32>} : memref<200x128xf32, #tpu.memory_space<vmem>>, vector<200x128xf32>,
    return
  }
  func.func @transform_0(%arg0: i32) -> (i32, i32) {
    %c0_i32 = arith.constant 0 : i32
    %c0_i32_0 = arith.constant 0 : i32
    return %arg0, %c0_i32 : i32, i32
  }
  func.func @transform_1(%arg0: i32) -> (i32, i32) {
    %c0_i32 = arith.constant 0 : i32
    %c0_i32_0 = arith.constant 0 : i32
    %c0_i32_1 = arith.constant 0 : i32
    return %c0_i32, %c0_i32_0 : i32, i32
  }
  func.func @transform_2(%arg0: i32) -> (i32, i32) {
    %c0_i32 = arith.constant 0 : i32
    %c0_i32_0 = arith.constant 0 : i32
    %c0_i32_1 = arith.constant 0 : i32
    return %c0_i32, %c0_i32_0 : i32, i32
  }
  func.func @transform_3(%arg0: i32) -> (i32, i32) {
    %c0_i32 = arith.constant 0 : i32
    %c0_i32_0 = arith.constant 0 : i32
    %c0_i32_1 = arith.constant 0 : i32
    return %c0_i32, %c0_i32_0 : i32, i32
  }
  func.func @transform_4(%arg0: i32) -> (i32, i32) {
    %c0_i32 = arith.constant 0 : i32
    %c0_i32_0 = arith.constant 0 : i32
    %c0_i32_1 = arith.constant 0 : i32
    return %c0_i32, %c0_i32_0 : i32, i32
  }
  func.func @transform_5(%arg0: i32) -> (i32, i32) {
    %c0_i32 = arith.constant 0 : i32
    %c0_i32_0 = arith.constant 0 : i32
    %c0_i32_1 = arith.constant 0 : i32
    return %c0_i32, %c0_i32_0 : i32, i32
  }
  func.func @transform_6(%arg0: i32) -> (i32, i32) {
    %c0_i32 = arith.constant 0 : i32
    %c0_i32_0 = arith.constant 0 : i32
    %c0_i32_1 = arith.constant 0 : i32
    return %c0_i32, %c0_i32_0 : i32, i32
  }
  func.func @transform_7(%arg0: i32) -> (i32, i32) {
    %c0_i32 = arith.constant 0 : i32
    %c0_i32_0 = arith.constant 0 : i32
    return %arg0, %c0_i32 : i32, i32
  }
}

</mosaic_0001>

<bundles_post_ra>
// kernel: fwd.1
= control target key start
LH: loop header
LB: loop body
LE: loop exit
PB: predicated region body
PF: predicated region fallthrough
CT: control target
= control target key end

     0   :  { %12 = vsyncpa [#allocation3], 0  ;;  %s4397_s27 = smov [#allocation2]   ;;  %s4398_s29 = smov 256   ;;  %s5774_s0 = inlined_call_operand.vmem [shape: f32[200,128], index: 0, kind: input, shape index: {}]   ;;  %s5775_s1 = inlined_call_operand.vmem [shape: bf16[128,512], index: 1, kind: input, shape index: {}]   ;;  %s5776_s2 = inlined_call_operand.vmem [shape: f32[1,512], index: 2, kind: input, shape index: {}]   ;;  %s5777_s3 = inlined_call_operand.hbm [shape: bf16[512,512], index: 3, kind: input, shape index: {}]   ;;  %s5778_s4 = inlined_call_operand.vmem [shape: f32[1,512], index: 4, kind: input, shape index: {}]   ;;  %s5779_s5 = inlined_call_operand.vmem [shape: bf16[512,128], index: 5, kind: input, shape index: {}]   ;;  %s5780_s6 = inlined_call_operand.vmem [shape: f32[1,128], index: 6, kind: input, shape index: {}]   ;;  %s5781_s7 = inlined_call_operand.vmem [shape: f32[200,128], index: 7, kind: output, shape index: {}]  }
   0x1   :  { %s23_s26 = sshll.u32 %s5777_s3, 4  ;;  %s25_s28 = sshll.u32 %s4397_s27, 4  ;;  %s24_s26 = int_to_ptr.hbm [resolvable:$true] %s23_s26  ;;  %s26_s28 = int_to_ptr.vmem [resolvable:$true] %s25_s28 }
   0x2   :  { %s4399_s30 = smov 16  }
   0x3   :  { %31 = dma.hbm_to_vmem [thread:$0]  %s24_s26, 16384, %s26_s28, [#allocation3], %s4398_s29, %s4398_s29, %s4399_s30  }
   0x4   :  { %4395 = dma.done.wait [#allocation3], 16384  }
   0x5   :  { %4396 = vsyncadd [#allocation3], 4294950912  ;;  %v3520_v0 = vld [vmem:[%s5775_s1 + $0xe0] sm:$0xf]  ;;  %v4204_v1 = vld [vmem:[%s5775_s1 + $0xec] sm:$0xf0] }
   0x6   :  { %v4202_v2 = vld [vmem:[%s5775_s1 + $0xe4] sm:$0xf]  ;;  %v3521_v3 = vor.u32 %v4204_v1, %v3520_v0  ;;  %v3522_v4 = vld [vmem:[%s5775_s1 + $0xf0] sm:$0xf0]  ;;  %v3528_v5 = vld [vmem:[%s5775_s1 + $0xe8] sm:$0xf] }
   0x7   :  { %v4205_v6 = vld [vmem:[%s5775_s1 + $0xf4] sm:$0xf0]  ;;  %v3525_v7 = vor.u32 %v4202_v2, %v3522_v4  ;;  %v4203_v9 = vld [vmem:[%s5775_s1 + $0xec] sm:$0xf]  ;;  %v3530_v10 = vld [vmem:[%s5775_s1 + $0xf8] sm:$0xf0] }
   0x8   :  { %v3529_v8 = vor.u32 %v4205_v6, %v3528_v5  ;;  %v3504_v11 = vld [vmem:[%s5775_s1 + $0xc0] sm:$0xf]  ;;  %282 = vmatpush.bf16.msra.mxu0 %v3521_v3  ;;  %v3533_v12 = vor.u32 %v4203_v9, %v3530_v10  ;;  %v4200_v13 = vld [vmem:[%s5775_s1 + $0xcc] sm:$0xf0]  ;;  %v4198_v14 = vld [vmem:[%s5775_s1 + $0xc4] sm:$0xf] }
   0x9   :  { %v3506_v15 = vld [vmem:[%s5775_s1 + $0xd0] sm:$0xf0]  ;;  %355 = vmatpush.bf16.msra.mxu1 %v3525_v7  ;;  %v3505_v16 = vor.u32 %v4200_v13, %v3504_v11  ;;  %v3512_v18 = vld [vmem:[%s5775_s1 + $0xc8] sm:$0xf]  ;;  %v4201_v19 = vld [vmem:[%s5775_s1 + $0xd4] sm:$0xf0] }
   0xa   :  { %428 = vmatpush.bf16.msra.mxu2 %v3529_v8  ;;  %v3509_v17 = vor.u32 %v4198_v14, %v3506_v15  ;;  %v4199_v20 = vld [vmem:[%s5775_s1 + $0xcc] sm:$0xf]  ;;  %501 = vmatpush.bf16.msra.mxu3 %v3533_v12  ;;  %v3513_v21 = vor.u32 %v4201_v19, %v3512_v18  ;;  %v3514_v22 = vld [vmem:[%s5775_s1 + $0xd8] sm:$0xf0]  ;;  %v3488_v23 = vld [vmem:[%s5775_s1 + $0xa0] sm:$0xf] }
   0xb   :  { %v4196_v24 = vld [vmem:[%s5775_s1 + $0xac] sm:$0xf0]  ;;  %v3517_v25 = vor.u32 %v4199_v20, %v3514_v22  ;;  %v4194_v26 = vld [vmem:[%s5775_s1 + $0xa4] sm:$0xf]  ;;  %v3490_v27 = vld [vmem:[%s5775_s1 + $0xb0] sm:$0xf0] }
   0xc   :  { %v3496_v28 = vld [vmem:[%s5775_s1 + $0xa8] sm:$0xf]  ;;  %283 = vmatpush.bf16.msra.mxu0 %v3505_v16  ;;  %v3489_v29 = vor.u32 %v4196_v24, %v3488_v23  ;;  %v4197_v30 = vld [vmem:[%s5775_s1 + $0xb4] sm:$0xf0]  ;;  %v4195_v31 = vld [vmem:[%s5775_s1 + $0xac] sm:$0xf]  ;;  %v3493_v33 = vor.u32 %v4194_v26, %v3490_v27 }
   0xd   :  { %v3498_v32 = vld [vmem:[%s5775_s1 + $0xb8] sm:$0xf0]  ;;  %356 = vmatpush.bf16.msra.mxu1 %v3509_v17  ;;  %v3497_v34 = vor.u32 %v4197_v30, %v3496_v28  ;;  %v3472_v35 = vld [vmem:[%s5775_s1 + $0x80] sm:$0xf]  ;;  %v4192_v36 = vld [vmem:[%s5775_s1 + $0x8c] sm:$0xf0] }
   0xe   :  { %429 = vmatpush.bf16.msra.mxu2 %v3513_v21  ;;  %v4190_v37 = vld [vmem:[%s5775_s1 + $0x84] sm:$0xf]  ;;  %502 = vmatpush.bf16.msra.mxu3 %v3517_v25  ;;  %v3501_v38 = vor.u32 %v4195_v31, %v3498_v32  ;;  %v3474_v39 = vld [vmem:[%s5775_s1 + $0x90] sm:$0xf0]  ;;  %v3480_v40 = vld [vmem:[%s5775_s1 + $0x88] sm:$0xf]  ;;  %v3473_v44 = vor.u32 %v4192_v36, %v3472_v35 }
   0xf   :  { %v4193_v41 = vld [vmem:[%s5775_s1 + $0x94] sm:$0xf0]  ;;  %v4191_v42 = vld [vmem:[%s5775_s1 + $0x8c] sm:$0xf]  ;;  %v3482_v43 = vld [vmem:[%s5775_s1 + $0x98] sm:$0xf0]  ;;  %v3477_v45 = vor.u32 %v4190_v37, %v3474_v39 }
  0x10   :  { %284 = vmatpush.bf16.msra.mxu0 %v3489_v29  ;;  %v3481_v46 = vor.u32 %v4193_v41, %v3480_v40  ;;  %v3456_v47 = vld [vmem:[%s5775_s1 + $0x60] sm:$0xf]  ;;  %v4188_v48 = vld [vmem:[%s5775_s1 + $0x6c] sm:$0xf0]  ;;  %v4186_v49 = vld [vmem:[%s5775_s1 + $0x64] sm:$0xf]  ;;  %v3485_v50 = vor.u32 %v4191_v42, %v3482_v43 }
  0x11   :  { %357 = vmatpush.bf16.msra.mxu1 %v3493_v33  ;;  %v3458_v51 = vld [vmem:[%s5775_s1 + $0x70] sm:$0xf0]  ;;  %v3464_v52 = vld [vmem:[%s5775_s1 + $0x68] sm:$0xf]  ;;  %v4189_v53 = vld [vmem:[%s5775_s1 + $0x74] sm:$0xf0]  ;;  %v3457_v56 = vor.u32 %v4188_v48, %v3456_v47 }
  0x12   :  { %430 = vmatpush.bf16.msra.mxu2 %v3497_v34  ;;  %503 = vmatpush.bf16.msra.mxu3 %v3501_v38  ;;  %v4187_v54 = vld [vmem:[%s5775_s1 + $0x6c] sm:$0xf]  ;;  %v3466_v55 = vld [vmem:[%s5775_s1 + $0x78] sm:$0xf0]  ;;  %v3461_v57 = vor.u32 %v4186_v49, %v3458_v51  ;;  %v3465_v58 = vor.u32 %v4189_v53, %v3464_v52  ;;  %v3440_v59 = vld [vmem:[%s5775_s1 + $0x40] sm:$0xf] }
  0x13   :  { %v4184_v60 = vld [vmem:[%s5775_s1 + $0x4c] sm:$0xf0]  ;;  %v4182_v61 = vld [vmem:[%s5775_s1 + $0x44] sm:$0xf]  ;;  %v3469_v62 = vor.u32 %v4187_v54, %v3466_v55  ;;  %v3442_v63 = vld [vmem:[%s5775_s1 + $0x50] sm:$0xf0] }
  0x14   :  { %285 = vmatpush.bf16.msra.mxu0 %v3473_v44  ;;  %v3448_v0 = vld [vmem:[%s5775_s1 + $0x48] sm:$0xf]  ;;  %v4185_v1 = vld [vmem:[%s5775_s1 + $0x54] sm:$0xf0]  ;;  %v4183_v2 = vld [vmem:[%s5775_s1 + $0x4c] sm:$0xf]  ;;  %v3441_v4 = vor.u32 %v4184_v60, %v3440_v59  ;;  %v3445_v5 = vor.u32 %v4182_v61, %v3442_v63 }
  0x15   :  { %358 = vmatpush.bf16.msra.mxu1 %v3477_v45  ;;  %v3450_v3 = vld [vmem:[%s5775_s1 + $0x58] sm:$0xf0]  ;;  %v3449_v6 = vor.u32 %v4185_v1, %v3448_v0  ;;  %v3424_v7 = vld [vmem:[%s5775_s1 + $0x20] sm:$0xf]  ;;  %v4180_v8 = vld [vmem:[%s5775_s1 + $0x2c] sm:$0xf0] }
  0x16   :  { %431 = vmatpush.bf16.msra.mxu2 %v3481_v46  ;;  %504 = vmatpush.bf16.msra.mxu3 %v3485_v50  ;;  %v4178_v9 = vld [vmem:[%s5775_s1 + $0x24] sm:$0xf]  ;;  %v3453_v10 = vor.u32 %v4183_v2, %v3450_v3  ;;  %v3426_v11 = vld [vmem:[%s5775_s1 + $0x30] sm:$0xf0]  ;;  %v3432_v12 = vld [vmem:[%s5775_s1 + $0x28] sm:$0xf]  ;;  %v3425_v16 = vor.u32 %v4180_v8, %v3424_v7 }
  0x17   :  { %v4181_v13 = vld [vmem:[%s5775_s1 + $0x34] sm:$0xf0]  ;;  %v4179_v14 = vld [vmem:[%s5775_s1 + $0x2c] sm:$0xf]  ;;  %v3434_v15 = vld [vmem:[%s5775_s1 + $0x38] sm:$0xf0]  ;;  %v3429_v19 = vor.u32 %v4178_v9, %v3426_v11 }
  0x18   :  { %286 = vmatpush.bf16.msra.mxu0 %v3457_v56  ;;  %v3408_v17 = vld [vmem:[%s5775_s1] sm:$0xf]  ;;  %v4176_v18 = vld [vmem:[%s5775_s1 + $0xc] sm:$0xf0]  ;;  %v3433_v20 = vor.u32 %v4181_v13, %v3432_v12  ;;  %v4174_v21 = vld [vmem:[%s5775_s1 + $0x4] sm:$0xf]  ;;  %v3437_v24 = vor.u32 %v4179_v14, %v3434_v15 }
  0x19   :  { %359 = vmatpush.bf16.msra.mxu1 %v3461_v57  ;;  %v3410_v22 = vld [vmem:[%s5775_s1 + $0x10] sm:$0xf0]  ;;  %v3416_v23 = vld [vmem:[%s5775_s1 + $0x8] sm:$0xf]  ;;  %v4177_v25 = vld [vmem:[%s5775_s1 + $0x14] sm:$0xf0]  ;;  %v3409_v31 = vor.u32 %v4176_v18, %v3408_v17 }
  0x1a   :  { %432 = vmatpush.bf16.msra.mxu2 %v3465_v58  ;;  %505 = vmatpush.bf16.msra.mxu3 %v3469_v62  ;;  %v4175_v26 = vld [vmem:[%s5775_s1 + $0xc] sm:$0xf]  ;;  %v3418_v27 = vld [vmem:[%s5775_s1 + $0x18] sm:$0xf0]  ;;  %v42_v28 = vld [vmem:[%s5774_s0] sm:$0xff]  ;;  %v3413_v35 = vor.u32 %v4174_v21, %v3410_v22  ;;  %v3417_v36 = vor.u32 %v4177_v25, %v3416_v23 }
  0x1b   :  { %v3904_v29 = vld [vmem:[#allocation2 + $0x2e0] sm:$0xf]  ;;  %v4300_v30 = vld [vmem:[#allocation2 + $0x2ec] sm:$0xf0]  ;;  %v43_v32 = vld [vmem:[%s5774_s0 + $0x8] sm:$0xff]  ;;  %v3421_v37 = vor.u32 %v4175_v26, %v3418_v27 }
  0x1c   :  { %287 = vmatpush.bf16.msra.mxu0 %v3441_v4  ;;  %v4032_v33 = vld [vmem:[#allocation2 + $0x3e0] sm:$0xf]  ;;  %v4332_v34 = vld [vmem:[#allocation2 + $0x3ec] sm:$0xf0]  ;;  %v3905_v38 = vor.u32 %v4300_v30, %v3904_v29  ;;  %v67_v42 = vpack.c.bf16 %v43_v32, %v42_v28  ;;  %v45_v60 = vld [vmem:[%s5774_s0 + $0x18] sm:$0xff] }
  0x1d   :  { %360 = vmatpush.bf16.msra.mxu1 %v3445_v5  ;;  %v3648_v39 = vld [vmem:[#allocation2 + $0xe0] sm:$0xf]  ;;  %v4236_v40 = vld [vmem:[#allocation2 + $0xec] sm:$0xf0]  ;;  %v4033_v43 = vor.u32 %v4332_v34, %v4032_v33  ;;  %v47_v11 = vld [vmem:[%s5774_s0 + $0x28] sm:$0xff] }
  0x1e   :  { %433 = vmatpush.bf16.msra.mxu2 %v3449_v6  ;;  %506 = vmatpush.bf16.msra.mxu3 %v3453_v10  ;;  %v3776_v41 = vld [vmem:[#allocation2 + $0x1e0] sm:$0xf]  ;;  %v4268_v44 = vld [vmem:[#allocation2 + $0x1ec] sm:$0xf0]  ;;  %v3649_v49 = vor.u32 %v4236_v40, %v3648_v39  ;;  %v51_v29 = vld [vmem:[%s5774_s0 + $0x48] sm:$0xff] }
  0x1f   :  { %v3888_v45 = vld [vmem:[#allocation2 + $0x2c0] sm:$0xf]  ;;  %v4296_v46 = vld [vmem:[#allocation2 + $0x2cc] sm:$0xf0]  ;;  %v3777_v50 = vor.u32 %v4268_v44, %v3776_v41  ;;  %v53_v44 = vld [vmem:[%s5774_s0 + $0x58] sm:$0xff] }
  0x20   :  { %288 = vmatpush.bf16.msra.mxu0 %v3425_v16  ;;  %v4016_v47 = vld [vmem:[#allocation2 + $0x3c0] sm:$0xf]  ;;  %v4328_v48 = vld [vmem:[#allocation2 + $0x3cc] sm:$0xf0]  ;;  %v3889_v51 = vor.u32 %v4296_v46, %v3888_v45 }
  0x21   :  { %361 = vmatpush.bf16.msra.mxu1 %v3429_v19  ;;  %v3632_v52 = vld [vmem:[#allocation2 + $0xc0] sm:$0xf]  ;;  %v4232_v53 = vld [vmem:[#allocation2 + $0xcc] sm:$0xf0]  ;;  %v4017_v54 = vor.u32 %v4328_v48, %v4016_v47  ;;  %v55_v47 = vld [vmem:[%s5774_s0 + $0x68] sm:$0xff] }
  0x22   :  { %434 = vmatpush.bf16.msra.mxu2 %v3433_v20  ;;  %507 = vmatpush.bf16.msra.mxu3 %v3437_v24  ;;  %v3633_v55 = vor.u32 %v4232_v53, %v3632_v52  ;;  %v3760_v56 = vld [vmem:[#allocation2 + $0x1c0] sm:$0xf]  ;;  %v4264_v57 = vld [vmem:[#allocation2 + $0x1cc] sm:$0xf0]  ;;  %v49_v20 = vld [vmem:[%s5774_s0 + $0x38] sm:$0xff] }
  0x23   :  { %v3761_v58 = vor.u32 %v4264_v57, %v3760_v56  ;;  %v44_v59 = vld [vmem:[%s5774_s0 + $0x10] sm:$0xff]  ;;  %v3872_v62 = vld [vmem:[#allocation2 + $0x2a0] sm:$0xf]  ;;  %v57_v56 = vld [vmem:[%s5774_s0 + $0x78] sm:$0xff] }
  0x24   :  { %289 = vmatpush.bf16.msra.mxu0 %v3409_v31  ;;  %v68_v61 = vpack.c.bf16 %v45_v60, %v44_v59  ;;  %v4292_v63 = vld [vmem:[#allocation2 + $0x2ac] sm:$0xf0]  ;;  %v4000_v0 = vld [vmem:[#allocation2 + $0x3a0] sm:$0xf] }
  0x25   :  { %362 = vmatpush.bf16.msra.mxu1 %v3413_v35  ;;  %v3873_v1 = vor.u32 %v4292_v63, %v3872_v62  ;;  %v4324_v2 = vld [vmem:[#allocation2 + $0x3ac] sm:$0xf0]  ;;  %v3616_v3 = vld [vmem:[#allocation2 + $0xa0] sm:$0xf] }
  0x26   :  { %435 = vmatpush.bf16.msra.mxu2 %v3417_v36  ;;  %508 = vmatpush.bf16.msra.mxu3 %v3421_v37  ;;  %v4228_v4 = vld [vmem:[#allocation2 + $0xac] sm:$0xf0]  ;;  %v4001_v5 = vor.u32 %v4324_v2, %v4000_v0  ;;  %v3744_v7 = vld [vmem:[#allocation2 + $0x1a0] sm:$0xf] }
  0x27   :  { %290 = vmatmul.bf16.vlgmr.msra.gmra.mxu0 %v67_v42  ;;  %v3617_v6 = vor.u32 %v4228_v4, %v3616_v3  ;;  %v4260_v8 = vld [vmem:[#allocation2 + $0x1ac] sm:$0xf0]  ;;  %v46_v10 = vld [vmem:[%s5774_s0 + $0x20] sm:$0xff] }
  0x28   :  { %363 = vmatmul.bf16.vlgmr.msra.gmra.mxu1 %v67_v42  ;;  %1504 = vmatpush.bf16.msrb.mxu0 %v3649_v49  ;;  %v3745_v9 = vor.u32 %v4260_v8, %v3744_v7  ;;  %v69_v12 = vpack.c.bf16 %v47_v11, %v46_v10  ;;  %v3856_v13 = vld [vmem:[#allocation2 + $0x280] sm:$0xf]  ;;  %v4288_v14 = vld [vmem:[#allocation2 + $0x28c] sm:$0xf0] }
  0x29   :  { %436 = vmatmul.bf16.vlgmr.msra.gmra.mxu2 %v67_v42  ;;  %509 = vmatmul.bf16.vlgmr.msra.gmra.mxu3 %v67_v42  ;;  %v3984_v15 = vld [vmem:[#allocation2 + $0x380] sm:$0xf]  ;;  %v3857_v16 = vor.u32 %v4288_v14, %v3856_v13  ;;  %v4320_v17 = vld [vmem:[#allocation2 + $0x38c] sm:$0xf0] }
  0x2a   :  { %1650 = vmatpush.bf16.msrb.mxu2 %v3905_v38  ;;  %1723 = vmatpush.bf16.msrb.mxu3 %v4033_v43  ;;  %v3985_v18 = vor.u32 %v4320_v17, %v3984_v15  ;;  %v48_v19 = vld [vmem:[%s5774_s0 + $0x30] sm:$0xff]  ;;  %v3600_v22 = vld [vmem:[#allocation2 + $0x80] sm:$0xf] }
  0x2b   :  { %1577 = vmatpush.bf16.msrb.mxu1 %v3777_v50  ;;  %v70_v21 = vpack.c.bf16 %v49_v20, %v48_v19  ;;  %v4224_v23 = vld [vmem:[#allocation2 + $0x8c] sm:$0xf0]  ;;  %v3728_v24 = vld [vmem:[#allocation2 + $0x180] sm:$0xf] }
  0x2c   :  { %1505 = vmatpush.bf16.msrb.mxu0 %v3633_v55  ;;  %v3601_v25 = vor.u32 %v4224_v23, %v3600_v22  ;;  %v4256_v26 = vld [vmem:[#allocation2 + $0x18c] sm:$0xf0]  ;;  %v50_v28 = vld [vmem:[%s5774_s0 + $0x40] sm:$0xff] }
  0x2d   :  { %v3729_v27 = vor.u32 %v4256_v26, %v3728_v24  ;;  %v71_v30 = vpack.c.bf16 %v51_v29, %v50_v28  ;;  %v3840_v31 = vld [vmem:[#allocation2 + $0x260] sm:$0xf]  ;;  %v4284_v32 = vld [vmem:[#allocation2 + $0x26c] sm:$0xf0] }
  0x2e   :  { %1651 = vmatpush.bf16.msrb.mxu2 %v3889_v51  ;;  %1724 = vmatpush.bf16.msrb.mxu3 %v4017_v54  ;;  %v3968_v33 = vld [vmem:[#allocation2 + $0x360] sm:$0xf]  ;;  %v3841_v34 = vor.u32 %v4284_v32, %v3840_v31  ;;  %v4316_v35 = vld [vmem:[#allocation2 + $0x36c] sm:$0xf0] }
  0x2f   :  { %1578 = vmatpush.bf16.msrb.mxu1 %v3761_v58  ;;  %v3584_v36 = vld [vmem:[#allocation2 + $0x60] sm:$0xf]  ;;  %v4220_v37 = vld [vmem:[#allocation2 + $0x6c] sm:$0xf0]  ;;  %v3969_v38 = vor.u32 %v4316_v35, %v3968_v33  ;;  %v61_v33 = vld [vmem:[%s5774_s0 + $0x98] sm:$0xff] }
  0x30   :  { %1506 = vmatpush.bf16.msrb.mxu0 %v3617_v6  ;;  %v3585_v39 = vor.u32 %v4220_v37, %v3584_v36  ;;  %v3712_v40 = vld [vmem:[#allocation2 + $0x160] sm:$0xf]  ;;  %v4252_v41 = vld [vmem:[#allocation2 + $0x16c] sm:$0xf0] }
  0x31   :  { %v3713_v42 = vor.u32 %v4252_v41, %v3712_v40  ;;  %v52_v43 = vld [vmem:[%s5774_s0 + $0x50] sm:$0xff]  ;;  %v54_v46 = vld [vmem:[%s5774_s0 + $0x60] sm:$0xff] }
  0x32   :  { %1652 = vmatpush.bf16.msrb.mxu2 %v3873_v1  ;;  %1725 = vmatpush.bf16.msrb.mxu3 %v4001_v5  ;;  %v72_v45 = vpack.c.bf16 %v53_v44, %v52_v43  ;;  %v73_v48 = vpack.c.bf16 %v55_v47, %v54_v46  ;;  %v3824_v49 = vld [vmem:[#allocation2 + $0x240] sm:$0xf]  ;;  %v4280_v50 = vld [vmem:[#allocation2 + $0x24c] sm:$0xf0]  ;;  %v59_v1 = vld [vmem:[%s5774_s0 + $0x88] sm:$0xff] }
  0x33   :  { %1579 = vmatpush.bf16.msrb.mxu1 %v3745_v9  ;;  %v3952_v51 = vld [vmem:[#allocation2 + $0x340] sm:$0xf]  ;;  %v3825_v52 = vor.u32 %v4280_v50, %v3824_v49  ;;  %v4312_v53 = vld [vmem:[#allocation2 + $0x34c] sm:$0xf0] }
  0x34   :  { %1507 = vmatpush.bf16.msrb.mxu0 %v3601_v25  ;;  %v3953_v54 = vor.u32 %v4312_v53, %v3952_v51  ;;  %v56_v55 = vld [vmem:[%s5774_s0 + $0x70] sm:$0xff]  ;;  %v3568_v57 = vld [vmem:[#allocation2 + $0x40] sm:$0xf] }
  0x35   :  { %v4216_v58 = vld [vmem:[#allocation2 + $0x4c] sm:$0xf0]  ;;  %v3696_v59 = vld [vmem:[#allocation2 + $0x140] sm:$0xf]  ;;  %v74_v60 = vpack.c.bf16 %v57_v56, %v56_v55 }
  0x36   :  { %1653 = vmatpush.bf16.msrb.mxu2 %v3857_v16  ;;  %1726 = vmatpush.bf16.msrb.mxu3 %v3985_v18  ;;  %v4248_v62 = vld [vmem:[#allocation2 + $0x14c] sm:$0xf0]  ;;  %v58_v0 = vld [vmem:[%s5774_s0 + $0x80] sm:$0xff] }
  0x37   :  { %295 = vmatmul.bf16.gmra.mxu0 %v68_v61  ;;  %1580 = vmatpush.bf16.msrb.mxu1 %v3729_v27  ;;  %v3697_v63 = vor.u32 %v4248_v62, %v3696_v59  ;;  %v75_v2 = vpack.c.bf16 %v59_v1, %v58_v0  ;;  %v4692_v3 = vld [vmem:[%s5776_s2] sm:$0xf]  ;;  %v4276_v9 = vld [vmem:[#allocation2 + $0x22c] sm:$0xf0] }
  0x38   :  { %368 = vmatmul.bf16.gmra.mxu1 %v68_v61  ;;  %1508 = vmatpush.bf16.msrb.mxu0 %v3585_v39  ;;  %v4695_v6 = vperm.slane %v4692_v3, 0  ;;  %v4698_v7 = vperm.slane %v4692_v3, 1  ;;  %v3808_v8 = vld [vmem:[#allocation2 + $0x220] sm:$0xf]  ;;  %v4212_v14 = vld [vmem:[#allocation2 + $0x2c] sm:$0xf0] }
  0x39   :  { %441 = vmatmul.bf16.gmra.mxu2 %v68_v61  ;;  %514 = vmatmul.bf16.gmra.mxu3 %v68_v61  ;;  %v3569_v61 = vor.u32 %v4216_v58, %v3568_v57  ;;  %v3936_v10 = vld [vmem:[#allocation2 + $0x320] sm:$0xf]  ;;  %v3809_v11 = vor.u32 %v4276_v9, %v3808_v8  ;;  %v4244_v20 = vld [vmem:[#allocation2 + $0x12c] sm:$0xf0] }
  0x3a   :  { %1654 = vmatpush.bf16.msrb.mxu2 %v3841_v34  ;;  %1727 = vmatpush.bf16.msrb.mxu3 %v3969_v38  ;;  %v3552_v13 = vld [vmem:[#allocation2 + $0x20] sm:$0xf]  ;;  %v60_v32 = vld [vmem:[%s5774_s0 + $0x90] sm:$0xff] }
  0x3b   :  { %1581 = vmatpush.bf16.msrb.mxu1 %v3713_v42  ;;  %v3553_v18 = vor.u32 %v4212_v14, %v3552_v13  ;;  %v3680_v19 = vld [vmem:[#allocation2 + $0x120] sm:$0xf]  ;;  %v76_v37 = vpack.c.bf16 %v61_v33, %v60_v32  ;;  %v4272_v58 = vld [vmem:[#allocation2 + $0x20c] sm:$0xf0] }
  0x3c   :  { %1509 = vmatpush.bf16.msrb.mxu0 %v3569_v61  ;;  %v3681_v24 = vor.u32 %v4244_v20, %v3680_v19  ;;  %v62_v53 = vld [vmem:[%s5774_s0 + $0xa0] sm:$0xff]  ;;  %v4208_v8 = vld [vmem:[#allocation2 + $0xc] sm:$0xf0] }
  0x3d   :  { %v3792_v57 = vld [vmem:[#allocation2 + $0x200] sm:$0xf] }
  0x3e   :  { %1655 = vmatpush.bf16.msrb.mxu2 %v3825_v52  ;;  %1728 = vmatpush.bf16.msrb.mxu3 %v3953_v54  ;;  %v63_v54 = vld [vmem:[%s5774_s0 + $0xa8] sm:$0xff]  ;;  %v3920_v59 = vld [vmem:[#allocation2 + $0x300] sm:$0xf]  ;;  %v3793_v62 = vor.u32 %v4272_v58, %v3792_v57 }
  0x3f   :  { %1582 = vmatpush.bf16.msrb.mxu1 %v3697_v63  ;;  %v77_v61 = vpack.c.bf16 %v63_v54, %v62_v53  ;;  %v4304_v63 = vld [vmem:[#allocation2 + $0x30c] sm:$0xf0]  ;;  %v3664_v9 = vld [vmem:[#allocation2 + $0x100] sm:$0xf] }
  0x40   :  { %1510 = vmatpush.bf16.msrb.mxu0 %v3553_v18 }
  0x42   :  { %1656 = vmatpush.bf16.msrb.mxu2 %v3809_v11  ;;  %v4240_v11 = vld [vmem:[#allocation2 + $0x10c] sm:$0xf0] }
  0x43   :  { %1583 = vmatpush.bf16.msrb.mxu1 %v3681_v24  ;;  %v3665_v14 = vor.u32 %v4240_v11, %v3664_v9 }
  0x46   :  { %1657 = vmatpush.bf16.msrb.mxu2 %v3793_v62 }
  0x47   :  { %300 = vmatmul.bf16.gmra.mxu0 %v69_v12  ;;  %1584 = vmatpush.bf16.msrb.mxu1 %v3665_v14 }
  0x48   :  { %373 = vmatmul.bf16.gmra.mxu1 %v69_v12 }
  0x49   :  { %446 = vmatmul.bf16.gmra.mxu2 %v69_v12  ;;  %519 = vmatmul.bf16.gmra.mxu3 %v69_v12  ;;  %v4308_v12 = vld [vmem:[#allocation2 + $0x32c] sm:$0xf0] }
  0x4a   :  { %v3937_v17 = vor.u32 %v4308_v12, %v3936_v10 }
  0x4c   :  { %1729 = vmatpush.bf16.msrb.mxu3 %v3937_v17 }
  0x57   :  { %305 = vmatmul.bf16.gmra.mxu0 %v70_v21 }
  0x58   :  { %378 = vmatmul.bf16.gmra.mxu1 %v70_v21 }
  0x59   :  { %451 = vmatmul.bf16.gmra.mxu2 %v70_v21  ;;  %524 = vmatmul.bf16.gmra.mxu3 %v70_v21 }
  0x67   :  { %310 = vmatmul.bf16.gmra.mxu0 %v71_v30 }
  0x68   :  { %383 = vmatmul.bf16.gmra.mxu1 %v71_v30 }
  0x69   :  { %456 = vmatmul.bf16.gmra.mxu2 %v71_v30  ;;  %529 = vmatmul.bf16.gmra.mxu3 %v71_v30 }
  0x77   :  { %315 = vmatmul.bf16.gmra.mxu0 %v72_v45 }
  0x78   :  { %388 = vmatmul.bf16.gmra.mxu1 %v72_v45 }
  0x79   :  { %461 = vmatmul.bf16.gmra.mxu2 %v72_v45  ;;  %534 = vmatmul.bf16.gmra.mxu3 %v72_v45 }
  0x87   :  { %320 = vmatmul.bf16.gmra.mxu0 %v73_v48 }
  0x88   :  { %393 = vmatmul.bf16.gmra.mxu1 %v73_v48 }
  0x89   :  { %466 = vmatmul.bf16.gmra.mxu2 %v73_v48  ;;  %539 = vmatmul.bf16.gmra.mxu3 %v73_v48 }
  0x97   :  { %325 = vmatmul.bf16.gmra.mxu0 %v74_v60 }
  0x98   :  { %398 = vmatmul.bf16.gmra.mxu1 %v74_v60 }
  0x99   :  { %471 = vmatmul.bf16.gmra.mxu2 %v74_v60  ;;  %544 = vmatmul.bf16.gmra.mxu3 %v74_v60 }
  0xa4   :  { %v291_v4 = vpop.f32.mrf.mxu0 }
  0xa5   :  { %v364_v5 = vpop.f32.mrf.mxu1  ;;  %v292_v15 = vadd.f32 %v291_v4, %v4695_v6 }
  0xa6   :  { %v365_v21 = vadd.f32 %v364_v5, %v4698_v7  ;;  %v3536_v5 = vld [vmem:[#allocation2] sm:$0xf] }
  0xa7   :  { %330 = vmatmul.bf16.gmra.mxu0 %v75_v2  ;;  %v574_v28 = vmax.f32 %v292_v15, 0.0  ;;  %v3537_v10 = vor.u32 %v4208_v8, %v3536_v5  ;;  %v3650_v5 = vld [vmem:[#allocation2 + $0xf0] sm:$0xf0]  ;;  %v4266_v8 = vld [vmem:[#allocation2 + $0x1e4] sm:$0xf] }
  0xa8   :  { %403 = vmatmul.bf16.gmra.mxu1 %v75_v2  ;;  %v575_v30 = vmax.f32 %v365_v21, 0.0 }
  0xa9   :  { %476 = vmatmul.bf16.gmra.mxu2 %v75_v2  ;;  %549 = vmatmul.bf16.gmra.mxu3 %v75_v2  ;;  %v3921_v2 = vor.u32 %v4304_v63, %v3920_v59  ;;  %v66_v63 = vld [vmem:[%s5774_s0 + $0xc0] sm:$0xff] }
  0xaa   :  { %1511 = vmatpush.bf16.msrb.mxu0 %v3537_v10  ;;  %v79_v10 = vpack.c.bf16 %v66_v63, %v66_v63 }
  0xab   :  { %1730 = vmatpush.bf16.msrb.mxu3 %v3921_v2 }
  0xac   :  { %v4701_v16 = vpop.f32.mrf.mxu2  ;;  %v4704_v22 = vpop.f32.mrf.mxu3 }
  0xad   :  { %v293_v23 = vpop.f32.mrf.mxu0  ;;  %v366_v26 = vpop.f32.mrf.mxu1 }
  0xae   :  { %v294_v25 = vadd.f32 %v293_v23, %v4695_v6  ;;  %v367_v27 = vadd.f32 %v366_v26, %v4698_v7 }
  0xb0   :  { %v578_v29 = vmax.f32 %v294_v25, 0.0  ;;  %v579_v31 = vmax.f32 %v367_v27, 0.0  ;;  %v64_v27 = vld [vmem:[%s5774_s0 + $0xb0] sm:$0xff] }
  0xb2   :  { %v4714_v34 = vpack.c.bf16 %v578_v29, %v574_v28  ;;  %v4716_v35 = vpack.c.bf16 %v579_v31, %v575_v30  ;;  %v65_v28 = vld [vmem:[%s5774_s0 + $0xb8] sm:$0xff] }
  0xb3   :  { %v78_v32 = vpack.c.bf16 %v65_v28, %v64_v27  ;;  %v4795_v27 = vperm.slane %v4692_v3, 3 }
  0xb4   :  { %v4718_v36 = vpop.f32.mrf.mxu2  ;;  %v4720_v38 = vpop.f32.mrf.mxu3 }
  0xb5   :  { %v296_v39 = vpop.f32.mrf.mxu0  ;;  %v369_v40 = vpop.f32.mrf.mxu1 }
  0xb6   :  { %v297_v41 = vadd.f32 %v296_v39, %v4695_v6  ;;  %v370_v43 = vadd.f32 %v369_v40, %v4698_v7  ;;  %v4298_v40 = vld [vmem:[#allocation2 + $0x2e4] sm:$0xf] }
  0xb7   :  { %335 = vmatmul.bf16.gmra.mxu0 %v76_v37 }
  0xb8   :  { %408 = vmatmul.bf16.gmra.mxu1 %v76_v37  ;;  %v582_v49 = vmax.f32 %v297_v41, 0.0  ;;  %v583_v51 = vmax.f32 %v370_v43, 0.0  ;;  %v3906_v41 = vld [vmem:[#allocation2 + $0x2f0] sm:$0xf0]  ;;  %v4330_v43 = vld [vmem:[#allocation2 + $0x3e4] sm:$0xf] }
  0xb9   :  { %481 = vmatmul.bf16.gmra.mxu2 %v76_v37  ;;  %554 = vmatmul.bf16.gmra.mxu3 %v76_v37 }
  0xbc   :  { %v4723_v42 = vpop.f32.mrf.mxu2  ;;  %v4726_v44 = vpop.f32.mrf.mxu3 }
  0xbd   :  { %v298_v45 = vpop.f32.mrf.mxu0  ;;  %v371_v47 = vpop.f32.mrf.mxu1 }
  0xbe   :  { %v299_v46 = vadd.f32 %v298_v45, %v4695_v6  ;;  %v372_v48 = vadd.f32 %v371_v47, %v4698_v7  ;;  %v3909_v45 = vor.u32 %v4298_v40, %v3906_v41  ;;  %v513_v40 = vadd.f32 %v4720_v38, %v4795_v27 }
  0xc0   :  { %v586_v50 = vmax.f32 %v299_v46, 0.0  ;;  %v587_v52 = vmax.f32 %v372_v48, 0.0  ;;  %v4034_v46 = vld [vmem:[#allocation2 + $0x3f0] sm:$0xf0]  ;;  %1942 = vmatpush.bf16.msra.mxu2 %v3909_v45 }
  0xc2   :  { %v4736_v55 = vpack.c.bf16 %v586_v50, %v582_v49  ;;  %v4738_v56 = vpack.c.bf16 %v587_v52, %v583_v51  ;;  %v4037_v49 = vor.u32 %v4330_v43, %v4034_v46 }
  0xc4   :  { %v4740_v60 = vpop.f32.mrf.mxu2  ;;  %v4742_v0 = vpop.f32.mrf.mxu3  ;;  %2015 = vmatpush.bf16.msra.mxu3 %v4037_v49 }
  0xc5   :  { %v301_v1 = vpop.f32.mrf.mxu0  ;;  %v374_v4 = vpop.f32.mrf.mxu1 }
  0xc6   :  { %v302_v12 = vadd.f32 %v301_v1, %v4695_v6  ;;  %v375_v15 = vadd.f32 %v374_v4, %v4698_v7  ;;  %v4234_v4 = vld [vmem:[#allocation2 + $0xe4] sm:$0xf] }
  0xc7   :  { %340 = vmatmul.bf16.gmra.mxu0 %v77_v61  ;;  %v3653_v11 = vor.u32 %v4234_v4, %v3650_v5 }
  0xc8   :  { %413 = vmatmul.bf16.gmra.mxu1 %v77_v61  ;;  %v590_v23 = vmax.f32 %v302_v12, 0.0  ;;  %v591_v25 = vmax.f32 %v375_v15, 0.0  ;;  %v3778_v12 = vld [vmem:[#allocation2 + $0x1f0] sm:$0xf0] }
  0xc9   :  { %486 = vmatmul.bf16.gmra.mxu2 %v77_v61  ;;  %559 = vmatmul.bf16.gmra.mxu3 %v77_v61 }
  0xca   :  { %1796 = vmatpush.bf16.msra.mxu0 %v3653_v11  ;;  %v3634_v11 = vld [vmem:[#allocation2 + $0xd0] sm:$0xf0] }
  0xcc   :  { %v4745_v13 = vpop.f32.mrf.mxu2  ;;  %v4748_v17 = vpop.f32.mrf.mxu3 }
  0xcd   :  { %v303_v18 = vpop.f32.mrf.mxu0  ;;  %v376_v20 = vpop.f32.mrf.mxu1 }
  0xce   :  { %v304_v19 = vadd.f32 %v303_v18, %v4695_v6  ;;  %v377_v21 = vadd.f32 %v376_v20, %v4698_v7  ;;  %v3781_v18 = vor.u32 %v4266_v8, %v3778_v12  ;;  %v4786_v20 = vperm.slane %v4692_v3, 2  ;;  %v4262_v12 = vld [vmem:[#allocation2 + $0x1c4] sm:$0xf] }
  0xcf   :  { %v511_v3 = vadd.f32 %v4704_v22, %v4795_v27 }
  0xd0   :  { %v594_v24 = vmax.f32 %v304_v19, 0.0  ;;  %v595_v26 = vmax.f32 %v377_v21, 0.0  ;;  %1869 = vmatpush.bf16.msra.mxu1 %v3781_v18  ;;  %v440_v28 = vadd.f32 %v4718_v36, %v4786_v20  ;;  %v438_v45 = vadd.f32 %v4701_v16, %v4786_v20  ;;  %v3762_v18 = vld [vmem:[#allocation2 + $0x1d0] sm:$0xf0] }
  0xd1   :  { %v577_v4 = vmax.f32 %v511_v3, 0.0 }
  0xd2   :  { %v4758_v29 = vpack.c.bf16 %v594_v24, %v590_v23  ;;  %v4760_v30 = vpack.c.bf16 %v595_v26, %v591_v25  ;;  %v580_v49 = vmax.f32 %v440_v28, 0.0 }
  0xd4   :  { %v4762_v31 = vpop.f32.mrf.mxu2  ;;  %v4764_v33 = vpop.f32.mrf.mxu3 }
  0xd5   :  { %v306_v37 = vpop.f32.mrf.mxu0  ;;  %v379_v39 = vpop.f32.mrf.mxu1 }
  0xd6   :  { %v307_v47 = vadd.f32 %v306_v37, %v4695_v6  ;;  %v380_v50 = vadd.f32 %v379_v39, %v4698_v7 }
  0xd7   :  { %345 = vmatmul.bf16.gmra.mxu0 %v78_v32 }
  0xd8   :  { %418 = vmatmul.bf16.gmra.mxu1 %v78_v32  ;;  %v598_v58 = vmax.f32 %v307_v47, 0.0  ;;  %v599_v61 = vmax.f32 %v380_v50, 0.0 }
  0xd9   :  { %491 = vmatmul.bf16.gmra.mxu2 %v78_v32  ;;  %564 = vmatmul.bf16.gmra.mxu3 %v78_v32 }
  0xdc   :  { %v4767_v48 = vpop.f32.mrf.mxu2  ;;  %v4770_v51 = vpop.f32.mrf.mxu3 }
  0xdd   :  { %v308_v52 = vpop.f32.mrf.mxu0  ;;  %v381_v54 = vpop.f32.mrf.mxu1 }
  0xde   :  { %v309_v53 = vadd.f32 %v308_v52, %v4695_v6  ;;  %v382_v57 = vadd.f32 %v381_v54, %v4698_v7  ;;  %v4294_v52 = vld [vmem:[#allocation2 + $0x2c4] sm:$0xf] }
  0xdf   :  { %v4326_v54 = vld [vmem:[#allocation2 + $0x3c4] sm:$0xf] }
  0xe0   :  { %v602_v59 = vmax.f32 %v309_v53, 0.0  ;;  %v603_v62 = vmax.f32 %v382_v57, 0.0  ;;  %v3890_v53 = vld [vmem:[#allocation2 + $0x2d0] sm:$0xf0]  ;;  %v581_v57 = vmax.f32 %v513_v40, 0.0  ;;  %v445_v40 = vadd.f32 %v4740_v60, %v4786_v20 }
  0xe2   :  { %v4777_v1 = vpack.c.bf16 %v602_v59, %v598_v58  ;;  %v4779_v2 = vpack.c.bf16 %v603_v62, %v599_v61  ;;  %v3893_v58 = vor.u32 %v4294_v52, %v3890_v53  ;;  %v4018_v59 = vld [vmem:[#allocation2 + $0x3d0] sm:$0xf0]  ;;  %v576_v61 = vmax.f32 %v438_v45, 0.0 }
  0xe3   :  { %v4021_v63 = vor.u32 %v4326_v54, %v4018_v59  ;;  %v4817_v8 = vpack.c.bf16 %v581_v57, %v577_v4  ;;  %v516_v52 = vadd.f32 %v4726_v44, %v4795_v27  ;;  %v588_v54 = vmax.f32 %v445_v40, 0.0  ;;  %v3874_v40 = vld [vmem:[#allocation2 + $0x2b0] sm:$0xf0] }
  0xe4   :  { %v4781_v9 = vpop.f32.mrf.mxu2  ;;  %v4783_v14 = vpop.f32.mrf.mxu3  ;;  %1943 = vmatpush.bf16.msra.mxu2 %v3893_v58  ;;  %v4815_v5 = vpack.c.bf16 %v580_v49, %v576_v61 }
  0xe5   :  { %v311_v15 = vpop.f32.mrf.mxu0  ;;  %v384_v19 = vpop.f32.mrf.mxu1  ;;  %2016 = vmatpush.bf16.msra.mxu3 %v4021_v63 }
  0xe6   :  { %v312_v21 = vadd.f32 %v311_v15, %v4695_v6  ;;  %v385_v24 = vadd.f32 %v384_v19, %v4698_v7 }
  0xe7   :  { %350 = vmatmul.bf16.gmra.mxu0 %v79_v10 }
  0xe8   :  { %423 = vmatmul.bf16.gmra.mxu1 %v79_v10  ;;  %v606_v41 = vmax.f32 %v312_v21, 0.0  ;;  %v607_v46 = vmax.f32 %v385_v24, 0.0  ;;  %v3765_v24 = vor.u32 %v4262_v12, %v3762_v18 }
  0xe9   :  { %496 = vmatmul.bf16.gmra.mxu2 %v79_v10  ;;  %569 = vmatmul.bf16.gmra.mxu3 %v79_v10  ;;  %v4230_v10 = vld [vmem:[#allocation2 + $0xc4] sm:$0xf] }
  0xea   :  { %v3637_v15 = vor.u32 %v4230_v10, %v3634_v11  ;;  %1870 = vmatpush.bf16.msra.mxu1 %v3765_v24 }
  0xec   :  { %v4789_v23 = vpop.f32.mrf.mxu2  ;;  %v4792_v25 = vpop.f32.mrf.mxu3  ;;  %1797 = vmatpush.bf16.msra.mxu0 %v3637_v15  ;;  %v450_v15 = vadd.f32 %v4762_v31, %v4786_v20  ;;  %v4002_v31 = vld [vmem:[#allocation2 + $0x3b0] sm:$0xf0] }
  0xed   :  { %v313_v26 = vpop.f32.mrf.mxu0  ;;  %v386_v37 = vpop.f32.mrf.mxu1 }
  0xee   :  { %v314_v32 = vadd.f32 %v313_v26, %v4695_v6  ;;  %v387_v39 = vadd.f32 %v386_v37, %v4698_v7 }
  0xf0   :  { %v610_v43 = vmax.f32 %v314_v32, 0.0  ;;  %v611_v47 = vmax.f32 %v387_v39, 0.0 }
  0xf2   :  { %v4807_v36 = vpack.c.bf16 %v610_v43, %v606_v41  ;;  %v4809_v50 = vpack.c.bf16 %v611_v47, %v607_v46  ;;  %v518_v43 = vadd.f32 %v4742_v0, %v4795_v27  ;;  %v443_v47 = vadd.f32 %v4723_v42, %v4786_v20 }
  0xf4   :  { %5823 = vst [vmem:[#allocation5_spill] sm:$0xff] %v4807_v36  ;;  %v4811_v38 = vpop.f32.mrf.mxu2  ;;  %v4813_v16 = vpop.f32.mrf.mxu3  ;;  %v589_v60 = vmax.f32 %v518_v43, 0.0  ;;  %v584_v59 = vmax.f32 %v443_v47, 0.0  ;;  %v4322_v47 = vld [vmem:[#allocation2 + $0x3a4] sm:$0xf] }
  0xf5   :  { %5824 = vst [vmem:[#allocation6_spill] sm:$0xff] %v4809_v50  ;;  %v316_v62 = vpop.f32.mrf.mxu0  ;;  %v389_v22 = vpop.f32.mrf.mxu1 }
  0xf6   :  { %v317_v19 = vadd.f32 %v316_v62, %v4695_v6  ;;  %v390_v26 = vadd.f32 %v389_v22, %v4698_v7  ;;  %v585_v62 = vmax.f32 %v516_v52, 0.0  ;;  %v4847_v42 = vpack.c.bf16 %v588_v54, %v584_v59  ;;  %v3618_v59 = vld [vmem:[#allocation2 + $0xb0] sm:$0xf0] }
  0xf7   :  { %1512 = vmatmul.bf16.vlgmr.msrb.gmra.mxu0 %v4714_v34  ;;  %v4005_v54 = vor.u32 %v4322_v47, %v4002_v31  ;;  %v528_v31 = vadd.f32 %v4783_v14, %v4795_v27 }
  0xf8   :  { %1585 = vmatmul.bf16.vlgmr.msrb.gmra.mxu1 %v4716_v35  ;;  %v614_v45 = vmax.f32 %v317_v19, 0.0  ;;  %v615_v3 = vmax.f32 %v390_v26, 0.0  ;;  %v4849_v4 = vpack.c.bf16 %v589_v60, %v585_v62  ;;  %v523_v26 = vadd.f32 %v4764_v33, %v4795_v27  ;;  %v4226_v60 = vld [vmem:[#allocation2 + $0xa4] sm:$0xf] }
  0xf9   :  { %1658 = vmatmul.bf16.vlgmr.msrb.gmra.mxu2 %v4815_v5  ;;  %1731 = vmatmul.bf16.vlgmr.msrb.gmra.mxu3 %v4817_v8 }
  0xfa   :  { %v597_v62 = vmax.f32 %v523_v26, 0.0  ;;  %2017 = vmatpush.bf16.msra.mxu3 %v4005_v54  ;;  %v453_v54 = vadd.f32 %v4767_v48, %v4786_v20 }
  0xfc   :  { %v4824_v21 = vpop.f32.mrf.mxu2  ;;  %v4827_v28 = vpop.f32.mrf.mxu3 }
  0xfd   :  { %v318_v32 = vpop.f32.mrf.mxu0  ;;  %v391_v39 = vpop.f32.mrf.mxu1 }
  0xfe   :  { %v319_v37 = vadd.f32 %v318_v32, %v4695_v6  ;;  %v392_v41 = vadd.f32 %v391_v39, %v4698_v7  ;;  %v4290_v39 = vld [vmem:[#allocation2 + $0x2a4] sm:$0xf] }
 0x100   :  { %v618_v46 = vmax.f32 %v319_v37, 0.0  ;;  %v619_v49 = vmax.f32 %v392_v41, 0.0  ;;  %v448_v41 = vadd.f32 %v4745_v13, %v4786_v20 }
 0x102   :  { %v4839_v53 = vpack.c.bf16 %v618_v46, %v614_v45  ;;  %v4841_v57 = vpack.c.bf16 %v619_v49, %v615_v3  ;;  %v3877_v46 = vor.u32 %v4290_v39, %v3874_v40  ;;  %v521_v3 = vadd.f32 %v4748_v17, %v4795_v27 }
 0x103   :  { %v596_v49 = vmax.f32 %v450_v15, 0.0 }
 0x104   :  { %5825 = vst [vmem:[#allocation7_spill] sm:$0xff] %v4841_v57  ;;  %v4843_v58 = vpop.f32.mrf.mxu2  ;;  %v4845_v0 = vpop.f32.mrf.mxu3  ;;  %1944 = vmatpush.bf16.msra.mxu2 %v3877_v46  ;;  %v455_v46 = vadd.f32 %v4781_v9, %v4786_v20  ;;  %v605_v9 = vmax.f32 %v528_v31, 0.0 }
 0x105   :  { %v321_v61 = vpop.f32.mrf.mxu0  ;;  %v394_v63 = vpop.f32.mrf.mxu1 }
 0x106   :  { %v322_v44 = vadd.f32 %v321_v61, %v4695_v6  ;;  %v395_v10 = vadd.f32 %v394_v63, %v4698_v7  ;;  %v4258_v61 = vld [vmem:[#allocation2 + $0x1a4] sm:$0xf]  ;;  %v3621_v63 = vor.u32 %v4226_v60, %v3618_v59 }
 0x107   :  { %1517 = vmatmul.bf16.gmra.mxu0 %v4736_v55 }
 0x108   :  { %1590 = vmatmul.bf16.gmra.mxu1 %v4738_v56  ;;  %v622_v32 = vmax.f32 %v322_v44, 0.0  ;;  %v623_v43 = vmax.f32 %v395_v10, 0.0  ;;  %v3746_v44 = vld [vmem:[#allocation2 + $0x1b0] sm:$0xf0]  ;;  %v592_v10 = vmax.f32 %v448_v41, 0.0  ;;  %1798 = vmatpush.bf16.msra.mxu0 %v3621_v63  ;;  %v604_v63 = vmax.f32 %v455_v46, 0.0 }
 0x109   :  { %1663 = vmatmul.bf16.gmra.mxu2 %v4847_v42  ;;  %1736 = vmatmul.bf16.gmra.mxu3 %v4849_v4  ;;  %v3749_v15 = vor.u32 %v4258_v61, %v3746_v44  ;;  %v526_v61 = vadd.f32 %v4770_v51, %v4795_v27  ;;  %v4286_v51 = vld [vmem:[#allocation2 + $0x284] sm:$0xf] }
 0x10b   :  { %1871 = vmatpush.bf16.msra.mxu1 %v3749_v15 }
 0x10c   :  { %v4856_v22 = vpop.f32.mrf.mxu2  ;;  %v4859_v11 = vpop.f32.mrf.mxu3 }
 0x10d   :  { %v323_v12 = vpop.f32.mrf.mxu0  ;;  %v396_v19 = vpop.f32.mrf.mxu1 }
 0x10e   :  { %v324_v18 = vadd.f32 %v323_v12, %v4695_v6  ;;  %v397_v24 = vadd.f32 %v396_v19, %v4698_v7 }
 0x110   :  { %v626_v37 = vmax.f32 %v324_v18, 0.0  ;;  %v627_v45 = vmax.f32 %v397_v24, 0.0  ;;  %v593_v18 = vmax.f32 %v521_v3, 0.0  ;;  %v4879_v24 = vpack.c.bf16 %v596_v49, %v592_v10 }
 0x112   :  { %v4871_v52 = vpack.c.bf16 %v626_v37, %v622_v32  ;;  %v4873_v33 = vpack.c.bf16 %v627_v45, %v623_v43  ;;  %v4881_v32 = vpack.c.bf16 %v597_v62, %v593_v18  ;;  %v601_v18 = vmax.f32 %v526_v61, 0.0 }
 0x113   :  { %v460_v61 = vadd.f32 %v4811_v38, %v4786_v20  ;;  %v531_v38 = vadd.f32 %v4792_v25, %v4795_v27 }
 0x114   :  { %5826 = vst [vmem:[#allocation8_spill] sm:$0xff] %v4871_v52  ;;  %v4875_v13 = vpop.f32.mrf.mxu2  ;;  %v4877_v12 = vpop.f32.mrf.mxu3 }
 0x115   :  { %5827 = vst [vmem:[#allocation9_spill] sm:$0xff] %v4873_v33  ;;  %v326_v17 = vpop.f32.mrf.mxu0  ;;  %v399_v19 = vpop.f32.mrf.mxu1 }
 0x116   :  { %v327_v26 = vadd.f32 %v326_v17, %v4695_v6  ;;  %v400_v39 = vadd.f32 %v399_v19, %v4698_v7  ;;  %v600_v17 = vmax.f32 %v453_v54, 0.0 }
 0x117   :  { %1522 = vmatmul.bf16.gmra.mxu0 %v4758_v29 }
 0x118   :  { %1595 = vmatmul.bf16.gmra.mxu1 %v4760_v30  ;;  %v630_v3 = vmax.f32 %v327_v26, 0.0  ;;  %v631_v60 = vmax.f32 %v400_v39, 0.0  ;;  %v4911_v48 = vpack.c.bf16 %v604_v63, %v600_v17  ;;  %v4913_v26 = vpack.c.bf16 %v605_v9, %v601_v18  ;;  %v3858_v39 = vld [vmem:[#allocation2 + $0x290] sm:$0xf0]  ;;  %v4222_v18 = vld [vmem:[#allocation2 + $0x84] sm:$0xf] }
 0x119   :  { %1668 = vmatmul.bf16.gmra.mxu2 %v4879_v24  ;;  %1741 = vmatmul.bf16.gmra.mxu3 %v4881_v32  ;;  %v533_v9 = vadd.f32 %v4813_v16, %v4795_v27 }
 0x11a   :  { %5828 = vst [vmem:[#allocation10_spill] sm:$0xff] %v4911_v48 }
 0x11b   :  { %5829 = vst [vmem:[#allocation11_spill] sm:$0xff] %v4913_v26 }
 0x11c   :  { %v4888_v37 = vpop.f32.mrf.mxu2  ;;  %v4891_v40 = vpop.f32.mrf.mxu3 }
 0x11d   :  { %v328_v41 = vpop.f32.mrf.mxu0  ;;  %v401_v45 = vpop.f32.mrf.mxu1 }
 0x11e   :  { %v329_v43 = vadd.f32 %v328_v41, %v4695_v6  ;;  %v402_v47 = vadd.f32 %v401_v45, %v4698_v7  ;;  %v4318_v41 = vld [vmem:[#allocation2 + $0x384] sm:$0xf]  ;;  %v3986_v45 = vld [vmem:[#allocation2 + $0x390] sm:$0xf0] }
 0x11f   :  { %v3989_v31 = vor.u32 %v4318_v41, %v3986_v45  ;;  %v4254_v45 = vld [vmem:[#allocation2 + $0x184] sm:$0xf] }
 0x120   :  { %v634_v49 = vmax.f32 %v329_v43, 0.0  ;;  %v635_v59 = vmax.f32 %v402_v47, 0.0  ;;  %v3861_v43 = vor.u32 %v4286_v51, %v3858_v39  ;;  %v458_v51 = vadd.f32 %v4789_v23, %v4786_v20 }
 0x121   :  { %2018 = vmatpush.bf16.msra.mxu3 %v3989_v31  ;;  %v3730_v31 = vld [vmem:[#allocation2 + $0x190] sm:$0xf0] }
 0x122   :  { %v4903_v62 = vpack.c.bf16 %v634_v49, %v630_v3  ;;  %v4905_v44 = vpack.c.bf16 %v635_v59, %v631_v60  ;;  %1945 = vmatpush.bf16.msra.mxu2 %v3861_v43  ;;  %v608_v23 = vmax.f32 %v458_v51, 0.0  ;;  %v465_v51 = vadd.f32 %v4843_v58, %v4786_v20 }
 0x124   :  { %v4907_v10 = vpop.f32.mrf.mxu2  ;;  %v4909_v14 = vpop.f32.mrf.mxu3 }
 0x125   :  { %v331_v15 = vpop.f32.mrf.mxu0  ;;  %v404_v19 = vpop.f32.mrf.mxu1 }
 0x126   :  { %v332_v46 = vadd.f32 %v331_v15, %v4695_v6  ;;  %v405_v3 = vadd.f32 %v404_v19, %v4698_v7  ;;  %v3602_v19 = vld [vmem:[#allocation2 + $0x90] sm:$0xf0] }
 0x127   :  { %1527 = vmatmul.bf16.gmra.mxu0 %v4777_v1  ;;  %v3605_v43 = vor.u32 %v4222_v18, %v3602_v19  ;;  %v609_v18 = vmax.f32 %v531_v38, 0.0 }
 0x128   :  { %1600 = vmatmul.bf16.gmra.mxu1 %v4779_v2  ;;  %v638_v17 = vmax.f32 %v332_v46, 0.0  ;;  %v639_v39 = vmax.f32 %v405_v3, 0.0  ;;  %v613_v46 = vmax.f32 %v533_v9, 0.0 }
 0x129   :  { %1673 = vmatmul.bf16.gmra.mxu2 %v4911_v48  ;;  %1746 = vmatmul.bf16.gmra.mxu3 %v4913_v26  ;;  %v612_v26 = vmax.f32 %v460_v61, 0.0 }
 0x12a   :  { %1799 = vmatpush.bf16.msra.mxu0 %v3605_v43  ;;  %v4945_v25 = vpack.c.bf16 %v613_v46, %v609_v18  ;;  %v620_v18 = vmax.f32 %v465_v51, 0.0 }
 0x12b   :  { %v4943_v48 = vpack.c.bf16 %v612_v26, %v608_v23 }
 0x12c   :  { %v4920_v47 = vpop.f32.mrf.mxu2  ;;  %v4923_v49 = vpop.f32.mrf.mxu3  ;;  %5833 = vst [vmem:[#allocation15_spill] sm:$0xff] %v4945_v25 }
 0x12d   :  { %v333_v54 = vpop.f32.mrf.mxu0  ;;  %v406_v59 = vpop.f32.mrf.mxu1  ;;  %5832 = vst [vmem:[#allocation14_spill] sm:$0xff] %v4943_v48 }
 0x12e   :  { %v334_v60 = vadd.f32 %v333_v54, %v4695_v6  ;;  %v407_v63 = vadd.f32 %v406_v59, %v4698_v7  ;;  %v3733_v59 = vor.u32 %v4254_v45, %v3730_v31  ;;  %v538_v45 = vadd.f32 %v4845_v0, %v4795_v27 }
 0x130   :  { %v642_v15 = vmax.f32 %v334_v60, 0.0  ;;  %v643_v41 = vmax.f32 %v407_v63, 0.0  ;;  %1872 = vmatpush.bf16.msra.mxu1 %v3733_v59  ;;  %v463_v59 = vadd.f32 %v4824_v21, %v4786_v20 }
 0x132   :  { %v4935_v54 = vpack.c.bf16 %v642_v15, %v638_v17  ;;  %v4937_v16 = vpack.c.bf16 %v643_v41, %v639_v39 }
 0x134   :  { %5830 = vst [vmem:[#allocation12_spill] sm:$0xff] %v4935_v54  ;;  %v4939_v60 = vpop.f32.mrf.mxu2  ;;  %v4941_v3 = vpop.f32.mrf.mxu3 }
 0x135   :  { %5831 = vst [vmem:[#allocation13_spill] sm:$0xff] %v4937_v16  ;;  %v336_v63 = vpop.f32.mrf.mxu0  ;;  %v409_v19 = vpop.f32.mrf.mxu1 }
 0x136   :  { %v337_v61 = vadd.f32 %v336_v63, %v4695_v6  ;;  %v410_v17 = vadd.f32 %v409_v19, %v4698_v7  ;;  %v536_v63 = vadd.f32 %v4827_v28, %v4795_v27 }
 0x137   :  { %1532 = vmatmul.bf16.gmra.mxu0 %v4807_v36 }
 0x138   :  { %1605 = vmatmul.bf16.gmra.mxu1 %v4809_v50  ;;  %v646_v31 = vmax.f32 %v337_v61, 0.0  ;;  %v647_v46 = vmax.f32 %v410_v17, 0.0  ;;  %v616_v50 = vmax.f32 %v463_v59, 0.0  ;;  %v617_v36 = vmax.f32 %v536_v63, 0.0  ;;  %v4250_v59 = vld [vmem:[#allocation2 + $0x164] sm:$0xf] }
 0x139   :  { %1678 = vmatmul.bf16.gmra.mxu2 %v4943_v48  ;;  %1751 = vmatmul.bf16.gmra.mxu3 %v4945_v25  ;;  %v4314_v25 = vld [vmem:[#allocation2 + $0x364] sm:$0xf]  ;;  %v621_v48 = vmax.f32 %v538_v45, 0.0 }
 0x13a   :  { %v4975_v51 = vpack.c.bf16 %v620_v18, %v616_v50  ;;  %v4218_v45 = vld [vmem:[#allocation2 + $0x64] sm:$0xf] }
 0x13c   :  { %v4952_v9 = vpop.f32.mrf.mxu2  ;;  %v4955_v15 = vpop.f32.mrf.mxu3  ;;  %5834 = vst [vmem:[#allocation16_spill] sm:$0xff] %v4975_v51 }
 0x13d   :  { %v338_v26 = vpop.f32.mrf.mxu0  ;;  %v411_v41 = vpop.f32.mrf.mxu1 }
 0x13e   :  { %v339_v39 = vadd.f32 %v338_v26, %v4695_v6  ;;  %v412_v43 = vadd.f32 %v411_v41, %v4698_v7  ;;  %v4282_v26 = vld [vmem:[#allocation2 + $0x264] sm:$0xf]  ;;  %v3842_v41 = vld [vmem:[#allocation2 + $0x270] sm:$0xf0] }
 0x13f   :  { %v3845_v61 = vor.u32 %v4282_v26, %v3842_v41 }
 0x140   :  { %v650_v38 = vmax.f32 %v339_v39, 0.0  ;;  %v651_v23 = vmax.f32 %v412_v43, 0.0  ;;  %v3970_v39 = vld [vmem:[#allocation2 + $0x370] sm:$0xf0] }
 0x141   :  { %v3973_v43 = vor.u32 %v4314_v25, %v3970_v39  ;;  %1946 = vmatpush.bf16.msra.mxu2 %v3845_v61  ;;  %v470_v61 = vadd.f32 %v4875_v13, %v4786_v20 }
 0x142   :  { %v4967_v58 = vpack.c.bf16 %v650_v38, %v646_v31  ;;  %v4969_v19 = vpack.c.bf16 %v651_v23, %v647_v46  ;;  %v4977_v31 = vpack.c.bf16 %v621_v48, %v617_v36  ;;  %v3586_v38 = vld [vmem:[#allocation2 + $0x70] sm:$0xf0] }
 0x143   :  { %2019 = vmatpush.bf16.msra.mxu3 %v3973_v43  ;;  %v3589_v50 = vor.u32 %v4218_v45, %v3586_v38  ;;  %v3714_v23 = vld [vmem:[#allocation2 + $0x170] sm:$0xf0] }
 0x144   :  { %v4971_v0 = vpop.f32.mrf.mxu2  ;;  %v4973_v21 = vpop.f32.mrf.mxu3  ;;  %5835 = vst [vmem:[#allocation17_spill] sm:$0xff] %v4977_v31  ;;  %v3717_v18 = vor.u32 %v4250_v59, %v3714_v23  ;;  %v541_v23 = vadd.f32 %v4859_v11, %v4795_v27  ;;  %v4278_v11 = vld [vmem:[#allocation2 + $0x244] sm:$0xf] }
 0x145   :  { %v341_v17 = vpop.f32.mrf.mxu0  ;;  %v414_v28 = vpop.f32.mrf.mxu1  ;;  %1800 = vmatpush.bf16.msra.mxu0 %v3589_v50 }
 0x146   :  { %v342_v25 = vadd.f32 %v341_v17, %v4695_v6  ;;  %v415_v36 = vadd.f32 %v414_v28, %v4698_v7  ;;  %1873 = vmatpush.bf16.msra.mxu1 %v3717_v18  ;;  %v543_v17 = vadd.f32 %v4877_v12, %v4795_v27  ;;  %v468_v28 = vadd.f32 %v4856_v22, %v4786_v20 }
 0x147   :  { %1537 = vmatmul.bf16.gmra.mxu0 %v4839_v53 }
 0x148   :  { %1610 = vmatmul.bf16.gmra.mxu1 %v4841_v57  ;;  %v654_v43 = vmax.f32 %v342_v25, 0.0  ;;  %v655_v38 = vmax.f32 %v415_v36, 0.0 }
 0x149   :  { %1683 = vmatmul.bf16.gmra.mxu2 %v4975_v51  ;;  %1756 = vmatmul.bf16.gmra.mxu3 %v4977_v31  ;;  %v624_v31 = vmax.f32 %v468_v28, 0.0 }
 0x14c   :  { %v4984_v46 = vpop.f32.mrf.mxu2  ;;  %v4987_v48 = vpop.f32.mrf.mxu3 }
 0x14d   :  { %v343_v63 = vpop.f32.mrf.mxu0  ;;  %v416_v41 = vpop.f32.mrf.mxu1 }
 0x14e   :  { %v344_v26 = vadd.f32 %v343_v63, %v4695_v6  ;;  %v417_v39 = vadd.f32 %v416_v41, %v4698_v7  ;;  %v628_v63 = vmax.f32 %v470_v61, 0.0  ;;  %v629_v41 = vmax.f32 %v543_v17, 0.0  ;;  %v3826_v61 = vld [vmem:[#allocation2 + $0x250] sm:$0xf0] }
 0x14f   :  { %v3829_v17 = vor.u32 %v4278_v11, %v3826_v61 }
 0x150   :  { %v658_v45 = vmax.f32 %v344_v26, 0.0  ;;  %v659_v59 = vmax.f32 %v417_v39, 0.0  ;;  %v625_v26 = vmax.f32 %v541_v23, 0.0  ;;  %v5007_v22 = vpack.c.bf16 %v628_v63, %v624_v31  ;;  %v4310_v39 = vld [vmem:[#allocation2 + $0x344] sm:$0xf] }
 0x151   :  { %1947 = vmatpush.bf16.msra.mxu2 %v3829_v17  ;;  %v4214_v17 = vld [vmem:[#allocation2 + $0x44] sm:$0xf] }
 0x152   :  { %v4999_v50 = vpack.c.bf16 %v658_v45, %v654_v43  ;;  %v5001_v13 = vpack.c.bf16 %v659_v59, %v655_v38  ;;  %5836 = vst [vmem:[#allocation18_spill] sm:$0xff] %v5007_v22  ;;  %v5009_v36 = vpack.c.bf16 %v629_v41, %v625_v26  ;;  %v3954_v43 = vld [vmem:[#allocation2 + $0x350] sm:$0xf0]  ;;  %v475_v26 = vadd.f32 %v4907_v10, %v4786_v20 }
 0x153   :  { %v3957_v31 = vor.u32 %v4310_v39, %v3954_v43 }
 0x154   :  { %v5003_v18 = vpop.f32.mrf.mxu2  ;;  %v5005_v12 = vpop.f32.mrf.mxu3  ;;  %5837 = vst [vmem:[#allocation19_spill] sm:$0xff] %v5009_v36 }
 0x155   :  { %v346_v25 = vpop.f32.mrf.mxu0  ;;  %v419_v51 = vpop.f32.mrf.mxu1  ;;  %2020 = vmatpush.bf16.msra.mxu3 %v3957_v31  ;;  %v546_v31 = vadd.f32 %v4891_v40, %v4795_v27 }
 0x156   :  { %v347_v45 = vadd.f32 %v346_v25, %v4695_v6  ;;  %v420_v38 = vadd.f32 %v419_v51, %v4698_v7  ;;  %v548_v25 = vadd.f32 %v4909_v14, %v4795_v27  ;;  %v473_v51 = vadd.f32 %v4888_v37, %v4786_v20 }
 0x157   :  { %1542 = vmatmul.bf16.gmra.mxu0 %v4871_v52  ;;  %v636_v52 = vmax.f32 %v475_v26, 0.0  ;;  %v633_v40 = vmax.f32 %v546_v31, 0.0  ;;  %v551_v31 = vadd.f32 %v4923_v49, %v4795_v27  ;;  %v4274_v49 = vld [vmem:[#allocation2 + $0x224] sm:$0xf] }
 0x158   :  { %1615 = vmatmul.bf16.gmra.mxu1 %v4873_v33  ;;  %v662_v61 = vmax.f32 %v347_v45, 0.0  ;;  %v663_v43 = vmax.f32 %v420_v38, 0.0  ;;  %v4246_v33 = vld [vmem:[#allocation2 + $0x144] sm:$0xf]  ;;  %v637_v45 = vmax.f32 %v548_v25, 0.0  ;;  %v632_v37 = vmax.f32 %v473_v51, 0.0 }
 0x159   :  { %1688 = vmatmul.bf16.gmra.mxu2 %v5007_v22  ;;  %1761 = vmatmul.bf16.gmra.mxu3 %v5009_v36  ;;  %v3570_v22 = vld [vmem:[#allocation2 + $0x50] sm:$0xf0]  ;;  %v5060_v51 = vld [vmem:[%s5778_s4] sm:$0xf] }
 0x15a   :  { %v3573_v10 = vor.u32 %v4214_v17, %v3570_v22  ;;  %v5043_v22 = vpack.c.bf16 %v636_v52, %v632_v37  ;;  %v480_v52 = vadd.f32 %v4939_v60, %v4786_v20  ;;  %5840 = vst [vmem:[#allocation22_spill] sm:$0xff] %v5060_v51  ;;  %v478_v17 = vadd.f32 %v4920_v47, %v4786_v20 }
 0x15c   :  { %v5016_v28 = vpop.f32.mrf.mxu2  ;;  %v5019_v59 = vpop.f32.mrf.mxu3  ;;  %1801 = vmatpush.bf16.msra.mxu0 %v3573_v10  ;;  %5838 = vst [vmem:[#allocation20_spill] sm:$0xff] %v5043_v22  ;;  %v5069_v10 = vperm.slane %v5060_v51, 0 }
 0x15d   :  { %v348_v23 = vpop.f32.mrf.mxu0  ;;  %v421_v41 = vpop.f32.mrf.mxu1 }
 0x15e   :  { %v349_v63 = vadd.f32 %v348_v23, %v4695_v6  ;;  %v422_v11 = vadd.f32 %v421_v41, %v4698_v7  ;;  %v3698_v41 = vld [vmem:[#allocation2 + $0x150] sm:$0xf0] }
 0x15f   :  { %v3701_v14 = vor.u32 %v4246_v33, %v3698_v41  ;;  %v644_v41 = vmax.f32 %v480_v52, 0.0  ;;  %v3810_v52 = vld [vmem:[#allocation2 + $0x230] sm:$0xf0] }
 0x160   :  { %v666_v39 = vmax.f32 %v349_v63, 0.0  ;;  %v667_v36 = vmax.f32 %v422_v11, 0.0 }
 0x161   :  { %1874 = vmatpush.bf16.msra.mxu1 %v3701_v14 }
 0x162   :  { %v5031_v23 = vpack.c.bf16 %v666_v39, %v662_v61  ;;  %v5033_v57 = vpack.c.bf16 %v667_v36, %v663_v43  ;;  %v5045_v39 = vpack.c.bf16 %v637_v45, %v633_v40  ;;  %v553_v43 = vadd.f32 %v4941_v3, %v4795_v27 }
 0x163   :  { %v640_v45 = vmax.f32 %v478_v17, 0.0  ;;  %v3813_v17 = vor.u32 %v4274_v49, %v3810_v52  ;;  %v485_v49 = vadd.f32 %v4971_v0, %v4786_v20 }
 0x164   :  { %v5035_v63 = vpop.f32.mrf.mxu2  ;;  %v5037_v38 = vpop.f32.mrf.mxu3  ;;  %5839 = vst [vmem:[#allocation21_spill] sm:$0xff] %v5045_v39  ;;  %v645_v14 = vmax.f32 %v553_v43, 0.0  ;;  %v4306_v43 = vld [vmem:[#allocation2 + $0x324] sm:$0xf] }
 0x165   :  { %v5039_v11 = vpop.f32.mrf.mxu0  ;;  %v5041_v61 = vpop.f32.mrf.mxu1  ;;  %v5072_v3 = vpack.c.bf16 %v644_v41, %v640_v45  ;;  %1948 = vmatpush.bf16.msra.mxu2 %v3813_v17  ;;  %v483_v17 = vadd.f32 %v4952_v9, %v4786_v20 }
 0x167   :  { %1547 = vmatmul.bf16.gmra.mxu0 %v4903_v62  ;;  %5841 = vst [vmem:[#allocation23_spill] sm:$0xff] %v5072_v3 }
 0x168   :  { %1620 = vmatmul.bf16.gmra.mxu1 %v4905_v44 }
 0x169   :  { %1693 = vmatmul.bf16.gmra.mxu2 %v5043_v22  ;;  %1766 = vmatmul.bf16.gmra.mxu3 %v5045_v39 }
 0x16c   :  { %v5051_v33 = vpop.f32.mrf.mxu2  ;;  %v5053_v36 = vpop.f32.mrf.mxu3 }
 0x16d   :  { %v353_v26 = vpop.f32.mrf.mxu0  ;;  %v426_v25 = vpop.f32.mrf.mxu1 }
 0x16e   :  { %v641_v26 = vmax.f32 %v551_v31, 0.0  ;;  %v3938_v31 = vld [vmem:[#allocation2 + $0x330] sm:$0xf0] }
 0x16f   :  { %v3941_v41 = vor.u32 %v4306_v43, %v3938_v31  ;;  %v558_v43 = vadd.f32 %v4973_v21, %v4795_v27 }
 0x170   :  { %v5074_v22 = vpack.c.bf16 %v645_v14, %v641_v26  ;;  %v4242_v14 = vld [vmem:[#allocation2 + $0x124] sm:$0xf] }
 0x171   :  { %2021 = vmatpush.bf16.msra.mxu3 %v3941_v41 }
 0x172   :  { %5842 = vst [vmem:[#allocation24_spill] sm:$0xff] %v5074_v22 }
 0x174   :  { %v499_v60 = vpop.f32.mrf.mxu2  ;;  %v572_v37 = vpop.f32.mrf.mxu3 }
 0x175   :  { %v1513_v40 = vpop.f32.mrf.mxu0  ;;  %v1586_v39 = vpop.f32.mrf.mxu1  ;;  %v4210_v60 = vld [vmem:[#allocation2 + $0x24] sm:$0xf]  ;;  %v3554_v37 = vld [vmem:[#allocation2 + $0x30] sm:$0xf0] }
 0x176   :  { %v1514_v25 = vadd.f32 %v1513_v40, %v5069_v10  ;;  %v3557_v45 = vor.u32 %v4210_v60, %v3554_v37  ;;  %v3682_v40 = vld [vmem:[#allocation2 + $0x130] sm:$0xf0]  ;;  %v652_v60 = vmax.f32 %v485_v49, 0.0  ;;  %v653_v37 = vmax.f32 %v558_v43, 0.0 }
 0x177   :  { %1552 = vmatmul.bf16.gmra.mxu0 %v4935_v54  ;;  %v3685_v26 = vor.u32 %v4242_v14, %v3682_v40 }
 0x178   :  { %v1587_v47 = vadd.f32 %v1586_v39, %v1514_v25  ;;  %1625 = vmatmul.bf16.gmra.mxu1 %v4937_v16  ;;  %1802 = vmatpush.bf16.msra.mxu0 %v3557_v45 }
 0x179   :  { %1698 = vmatmul.bf16.gmra.mxu2 %v5072_v3  ;;  %1771 = vmatmul.bf16.gmra.mxu3 %v5074_v22 }
 0x17a   :  { %1875 = vmatpush.bf16.msra.mxu1 %v3685_v26 }
 0x17c   :  { %v1659_v39 = vpop.f32.mrf.mxu2  ;;  %v1732_v16 = vpop.f32.mrf.mxu3 }
 0x17d   :  { %v1660_v25 = vadd.f32 %v1659_v39, %v1587_v47  ;;  %v1515_v54 = vpop.f32.mrf.mxu0  ;;  %v1588_v51 = vpop.f32.mrf.mxu1  ;;  %v556_v47 = vadd.f32 %v4955_v15, %v4795_v27 }
 0x17e   :  { %v1516_v3 = vadd.f32 %v1515_v54, %v5069_v10  ;;  %v648_v54 = vmax.f32 %v483_v17, 0.0 }
 0x17f   :  { %v1733_v52 = vadd.f32 %v1732_v16, %v1660_v25  ;;  %v649_v39 = vmax.f32 %v556_v47, 0.0 }
 0x180   :  { %v1589_v31 = vadd.f32 %v1588_v51, %v1516_v3  ;;  %v5090_v26 = vpack.c.bf16 %v652_v60, %v648_v54 }
 0x181   :  { %v5092_v51 = vpack.c.bf16 %v653_v37, %v649_v39  ;;  %v2672_v15 = vmax.f32 %v1733_v52, 0.0  ;;  %v490_v37 = vadd.f32 %v5003_v18, %v4786_v20  ;;  %v561_v39 = vadd.f32 %v4987_v48, %v4795_v27 }
 0x184   :  { %v1661_v41 = vpop.f32.mrf.mxu2  ;;  %v1734_v14 = vpop.f32.mrf.mxu3 }
 0x185   :  { %v1662_v45 = vadd.f32 %v1661_v41, %v1589_v31  ;;  %v1518_v40 = vpop.f32.mrf.mxu0  ;;  %v1591_v0 = vpop.f32.mrf.mxu1  ;;  %v563_v41 = vadd.f32 %v5005_v12, %v4795_v27 }
 0x186   :  { %v1519_v16 = vadd.f32 %v1518_v40, %v5069_v10  ;;  %v3794_v40 = vld [vmem:[#allocation2 + $0x210] sm:$0xf0] }
 0x187   :  { %v1735_v21 = vadd.f32 %v1734_v14, %v1662_v45  ;;  %1557 = vmatmul.bf16.gmra.mxu0 %v4967_v58  ;;  %v488_v45 = vadd.f32 %v4984_v46, %v4786_v20  ;;  %v4270_v14 = vld [vmem:[#allocation2 + $0x204] sm:$0xf] }
 0x188   :  { %v1592_v9 = vadd.f32 %v1591_v0, %v1519_v16  ;;  %1630 = vmatmul.bf16.gmra.mxu1 %v4969_v19  ;;  %v3797_v16 = vor.u32 %v4270_v14, %v3794_v40  ;;  %v4302_v0 = vld [vmem:[#allocation2 + $0x304] sm:$0xf] }
 0x189   :  { %v2676_v3 = vmax.f32 %v1735_v21, 0.0  ;;  %1703 = vmatmul.bf16.gmra.mxu2 %v5090_v26  ;;  %1776 = vmatmul.bf16.gmra.mxu3 %v5092_v51  ;;  %v3922_v21 = vld [vmem:[#allocation2 + $0x310] sm:$0xf0] }
 0x18a   :  { %1949 = vmatpush.bf16.msra.mxu2 %v3797_v16  ;;  %v4238_v16 = vld [vmem:[#allocation2 + $0x104] sm:$0xf] }
 0x18b   :  { %v5098_v25 = vpack.c.bf16 %v2676_v3, %v2672_v15  ;;  %v3925_v15 = vor.u32 %v4302_v0, %v3922_v21  ;;  %v661_v3 = vmax.f32 %v563_v41, 0.0  ;;  %v3666_v0 = vld [vmem:[#allocation2 + $0x110] sm:$0xf0] }
 0x18c   :  { %v1664_v49 = vpop.f32.mrf.mxu2  ;;  %v1737_v31 = vpop.f32.mrf.mxu3  ;;  %v3669_v21 = vor.u32 %v4238_v16, %v3666_v0 }
 0x18d   :  { %5843 = vst [vmem:[#allocation25_spill] sm:$0xff] %v5098_v25  ;;  %v1665_v43 = vadd.f32 %v1664_v49, %v1592_v9  ;;  %v1520_v17 = vpop.f32.mrf.mxu0  ;;  %v1593_v60 = vpop.f32.mrf.mxu1  ;;  %v660_v9 = vmax.f32 %v490_v37, 0.0  ;;  %v656_v49 = vmax.f32 %v488_v45, 0.0  ;;  %2022 = vmatpush.bf16.msra.mxu3 %v3925_v15  ;;  %v3538_v45 = vld [vmem:[#allocation2 + $0x10] sm:$0xf0] }
 0x18e   :  { %v1521_v47 = vadd.f32 %v1520_v17, %v5069_v10  ;;  %v657_v17 = vmax.f32 %v561_v39, 0.0  ;;  %1876 = vmatpush.bf16.msra.mxu1 %v3669_v21 }
 0x18f   :  { %v1738_v52 = vadd.f32 %v1737_v31, %v1665_v43 }
 0x190   :  { %v1594_v54 = vadd.f32 %v1593_v60, %v1521_v47  ;;  %v5110_v60 = vpack.c.bf16 %v660_v9, %v656_v49  ;;  %v5112_v14 = vpack.c.bf16 %v661_v3, %v657_v17  ;;  %v568_v17 = vadd.f32 %v5037_v38, %v4795_v27 }
 0x191   :  { %v2680_v37 = vmax.f32 %v1738_v52, 0.0 }
 0x194   :  { %v1666_v18 = vpop.f32.mrf.mxu2  ;;  %v1739_v12 = vpop.f32.mrf.mxu3 }
 0x195   :  { %v1667_v43 = vadd.f32 %v1666_v18, %v1594_v54  ;;  %v1523_v31 = vpop.f32.mrf.mxu0  ;;  %v1596_v47 = vpop.f32.mrf.mxu1  ;;  %v4206_v54 = vld [vmem:[#allocation2 + $0x4] sm:$0xf] }
 0x196   :  { %v1524_v46 = vadd.f32 %v1523_v31, %v5069_v10  ;;  %v3541_v39 = vor.u32 %v4206_v54, %v3538_v45 }
 0x197   :  { %v1740_v48 = vadd.f32 %v1739_v12, %v1667_v43  ;;  %1562 = vmatmul.bf16.gmra.mxu0 %v4999_v50  ;;  %v495_v12 = vadd.f32 %v5035_v63, %v4786_v20 }
 0x198   :  { %v1597_v40 = vadd.f32 %v1596_v47, %v1524_v46  ;;  %1635 = vmatmul.bf16.gmra.mxu1 %v5001_v13  ;;  %1803 = vmatpush.bf16.msra.mxu0 %v3541_v39  ;;  %v493_v47 = vadd.f32 %v5016_v28, %v4786_v20 }
 0x199   :  { %v2684_v41 = vmax.f32 %v1740_v48, 0.0  ;;  %1708 = vmatmul.bf16.gmra.mxu2 %v5110_v60  ;;  %1781 = vmatmul.bf16.gmra.mxu3 %v5112_v14  ;;  %v566_v48 = vadd.f32 %v5019_v59, %v4795_v27 }
 0x19a   :  { %v664_v54 = vmax.f32 %v493_v47, 0.0 }
 0x19b   :  { %v5118_v9 = vpack.c.bf16 %v2684_v41, %v2680_v37  ;;  %v669_v37 = vmax.f32 %v568_v17, 0.0  ;;  %v665_v0 = vmax.f32 %v566_v48, 0.0  ;;  %v4333_v17 = vld [vmem:[#allocation2 + $0x3f4] sm:$0xf0] }
 0x19c   :  { %v1669_v15 = vpop.f32.mrf.mxu2  ;;  %v1742_v18 = vpop.f32.mrf.mxu3 }
 0x19d   :  { %5844 = vst [vmem:[#allocation26_spill] sm:$0xff] %v5118_v9  ;;  %v1670_v3 = vadd.f32 %v1669_v15, %v1597_v40  ;;  %v1525_v52 = vpop.f32.mrf.mxu0  ;;  %v1598_v43 = vpop.f32.mrf.mxu1  ;;  %v668_v40 = vmax.f32 %v495_v12, 0.0 }
 0x19e   :  { %v1526_v49 = vadd.f32 %v1525_v52, %v5069_v10  ;;  %v3912_v52 = vld [vmem:[#allocation2 + $0x2e8] sm:$0xf] }
 0x19f   :  { %v1743_v31 = vadd.f32 %v1742_v18, %v1670_v3  ;;  %v5130_v15 = vpack.c.bf16 %v668_v40, %v664_v54  ;;  %v5132_v3 = vpack.c.bf16 %v669_v37, %v665_v0 }
 0x1a0   :  { %v1599_v46 = vadd.f32 %v1598_v43, %v1526_v49  ;;  %v4301_v49 = vld [vmem:[#allocation2 + $0x2f4] sm:$0xf0]  ;;  %v4040_v43 = vld [vmem:[#allocation2 + $0x3e8] sm:$0xf] }
 0x1a1   :  { %5845 = vst [vmem:[#allocation27_spill] sm:$0xff] %v5132_v3  ;;  %v2688_v59 = vmax.f32 %v1743_v31, 0.0  ;;  %v3913_v12 = vor.u32 %v4301_v49, %v3912_v52  ;;  %v4041_v48 = vor.u32 %v4333_v17, %v4040_v43  ;;  %v352_v31 = vadd.f32 %v5039_v11, %v4695_v6  ;;  %v3784_v6 = vld [vmem:[#allocation2 + $0x1e8] sm:$0xf]  ;;  %v4269_v11 = vld [vmem:[#allocation2 + $0x1f4] sm:$0xf0] }
 0x1a2   :  { %v3785_v43 = vor.u32 %v4269_v11, %v3784_v6  ;;  %v3896_v6 = vld [vmem:[#allocation2 + $0x2c8] sm:$0xf] }
 0x1a3   :  { %2234 = vmatpush.bf16.msrb.mxu2 %v3913_v12  ;;  %2307 = vmatpush.bf16.msrb.mxu3 %v4041_v48 }
 0x1a4   :  { %v1671_v41 = vpop.f32.mrf.mxu2  ;;  %v1744_v39 = vpop.f32.mrf.mxu3  ;;  %2161 = vmatpush.bf16.msrb.mxu1 %v3785_v43 }
 0x1a5   :  { %v1672_v45 = vadd.f32 %v1671_v41, %v1599_v46  ;;  %v1528_v16 = vpop.f32.mrf.mxu0  ;;  %v1601_v21 = vpop.f32.mrf.mxu1 }
 0x1a6   :  { %v1529_v63 = vadd.f32 %v1528_v16, %v5069_v10  ;;  %v498_v16 = vadd.f32 %v5051_v33, %v4786_v20 }
 0x1a7   :  { %v1745_v38 = vadd.f32 %v1744_v39, %v1672_v45  ;;  %1567 = vmatmul.bf16.gmra.mxu0 %v5031_v23  ;;  %v425_v39 = vadd.f32 %v5041_v61, %v4698_v7 }
 0x1a8   :  { %v1602_v28 = vadd.f32 %v1601_v21, %v1529_v63  ;;  %1640 = vmatmul.bf16.gmra.mxu1 %v5033_v57  ;;  %v571_v63 = vadd.f32 %v5053_v36, %v4795_v27  ;;  %v672_v49 = vmax.f32 %v498_v16, 0.0 }
 0x1a9   :  { %v2692_v18 = vmax.f32 %v1745_v38, 0.0  ;;  %1713 = vmatmul.bf16.gmra.mxu2 %v5130_v15  ;;  %1786 = vmatmul.bf16.gmra.mxu3 %v5132_v3  ;;  %v3656_v38 = vld [vmem:[#allocation2 + $0xe8] sm:$0xf]  ;;  %v671_v52 = vmax.f32 %v425_v39, 0.0 }
 0x1aa   :  { %v673_v12 = vmax.f32 %v571_v63, 0.0  ;;  %v5154_v48 = vpack.c.bf16 %v672_v49, %v672_v49  ;;  %v4329_v49 = vld [vmem:[#allocation2 + $0x3d4] sm:$0xf0] }
 0x1ab   :  { %v5138_v46 = vpack.c.bf16 %v2692_v18, %v2688_v59  ;;  %v670_v59 = vmax.f32 %v352_v31, 0.0 }
 0x1ac   :  { %v1674_v47 = vpop.f32.mrf.mxu2  ;;  %v1747_v37 = vpop.f32.mrf.mxu3 }
 0x1ad   :  { %5846 = vst [vmem:[#allocation28_spill] sm:$0xff] %v5138_v46  ;;  %v1675_v40 = vadd.f32 %v1674_v47, %v1602_v28  ;;  %v1530_v41 = vpop.f32.mrf.mxu0  ;;  %v1603_v45 = vpop.f32.mrf.mxu1  ;;  %v4237_v28 = vld [vmem:[#allocation2 + $0xf4] sm:$0xf0]  ;;  %v5149_v33 = vpack.c.bf16 %v670_v59, %v670_v59  ;;  %v5152_v47 = vpack.c.bf16 %v671_v52, %v671_v52  ;;  %v4024_v52 = vld [vmem:[#allocation2 + $0x3c8] sm:$0xf] }
 0x1ae   :  { %v1531_v54 = vadd.f32 %v1530_v41, %v5069_v10  ;;  %v3657_v18 = vor.u32 %v4237_v28, %v3656_v38  ;;  %v4025_v43 = vor.u32 %v4329_v49, %v4024_v52 }
 0x1af   :  { %v1748_v0 = vadd.f32 %v1747_v37, %v1675_v40  ;;  %v5156_v37 = vpack.c.bf16 %v673_v12, %v673_v12 }
 0x1b0   :  { %v1604_v21 = vadd.f32 %v1603_v45, %v1531_v54  ;;  %2088 = vmatpush.bf16.msrb.mxu0 %v3657_v18  ;;  %2308 = vmatpush.bf16.msrb.mxu3 %v4025_v43 }
 0x1b1   :  { %v2696_v31 = vmax.f32 %v1748_v0, 0.0  ;;  %v4297_v0 = vld [vmem:[#allocation2 + $0x2d4] sm:$0xf0] }
 0x1b2   :  { %v3897_v11 = vor.u32 %v4297_v0, %v3896_v6 }
 0x1b4   :  { %v1676_v17 = vpop.f32.mrf.mxu2  ;;  %v1749_v61 = vpop.f32.mrf.mxu3  ;;  %2235 = vmatpush.bf16.msrb.mxu2 %v3897_v11 }
 0x1b5   :  { %v1677_v7 = vadd.f32 %v1676_v17, %v1604_v21  ;;  %v1533_v20 = vpop.f32.mrf.mxu0  ;;  %v1606_v36 = vpop.f32.mrf.mxu1 }
 0x1b6   :  { %v1534_v27 = vadd.f32 %v1533_v20, %v5069_v10 }
 0x1b7   :  { %v1750_v40 = vadd.f32 %v1749_v61, %v1677_v7  ;;  %1572 = vmatmul.bf16.gmra.mxu0 %v5149_v33 }
 0x1b8   :  { %v1607_v41 = vadd.f32 %v1606_v36, %v1534_v27  ;;  %1645 = vmatmul.bf16.gmra.mxu1 %v5152_v47 }
 0x1b9   :  { %v2700_v54 = vmax.f32 %v1750_v40, 0.0  ;;  %1718 = vmatmul.bf16.gmra.mxu2 %v5154_v48  ;;  %1791 = vmatmul.bf16.gmra.mxu3 %v5156_v37 }
 0x1bb   :  { %v5162_v45 = vpack.c.bf16 %v2700_v54, %v2696_v31  ;;  %v3640_v54 = vld [vmem:[#allocation2 + $0xc8] sm:$0xf] }
 0x1bc   :  { %v1679_v39 = vpop.f32.mrf.mxu2  ;;  %v1752_v63 = vpop.f32.mrf.mxu3 }
 0x1bd   :  { %5847 = vst [vmem:[#allocation29_spill] sm:$0xff] %v5162_v45  ;;  %v1680_v16 = vadd.f32 %v1679_v39, %v1607_v41  ;;  %v1535_v21 = vpop.f32.mrf.mxu0  ;;  %v1608_v28 = vpop.f32.mrf.mxu1  ;;  %v4233_v39 = vld [vmem:[#allocation2 + $0xd4] sm:$0xf0] }
 0x1be   :  { %v1536_v38 = vadd.f32 %v1535_v21, %v5069_v10  ;;  %v4265_v21 = vld [vmem:[#allocation2 + $0x1d4] sm:$0xf0] }
 0x1bf   :  { %v1753_v59 = vadd.f32 %v1752_v63, %v1680_v16  ;;  %v3641_v16 = vor.u32 %v4233_v39, %v3640_v54  ;;  %v3768_v63 = vld [vmem:[#allocation2 + $0x1c8] sm:$0xf] }
 0x1c0   :  { %v1609_v18 = vadd.f32 %v1608_v28, %v1536_v38  ;;  %v3769_v38 = vor.u32 %v4265_v21, %v3768_v63 }
 0x1c1   :  { %v2704_v41 = vmax.f32 %v1753_v59, 0.0  ;;  %2089 = vmatpush.bf16.msrb.mxu0 %v3641_v16 }
 0x1c2   :  { %2162 = vmatpush.bf16.msrb.mxu1 %v3769_v38 }
 0x1c4   :  { %v1681_v12 = vpop.f32.mrf.mxu2  ;;  %v1754_v7 = vpop.f32.mrf.mxu3 }
 0x1c5   :  { %v1682_v17 = vadd.f32 %v1681_v12, %v1609_v18  ;;  %v1538_v61 = vpop.f32.mrf.mxu0  ;;  %v1611_v27 = vpop.f32.mrf.mxu1 }
 0x1c6   :  { %v1539_v20 = vadd.f32 %v1538_v61, %v5069_v10 }
 0x1c7   :  { %v1755_v36 = vadd.f32 %v1754_v7, %v1682_v17  ;;  %1804 = vmatmul.bf16.vlgmr.msra.gmra.mxu0 %v4714_v34 }
 0x1c8   :  { %v1612_v40 = vadd.f32 %v1611_v27, %v1539_v20  ;;  %1877 = vmatmul.bf16.vlgmr.msra.gmra.mxu1 %v4716_v35 }
 0x1c9   :  { %v2708_v31 = vmax.f32 %v1755_v36, 0.0  ;;  %1950 = vmatmul.bf16.vlgmr.msra.gmra.mxu2 %v4815_v5  ;;  %2023 = vmatmul.bf16.vlgmr.msra.gmra.mxu3 %v4817_v8 }
 0x1cb   :  { %v5170_v28 = vpack.c.bf16 %v2708_v31, %v2704_v41 }
 0x1cc   :  { %v1684_v18 = vpop.f32.mrf.mxu2  ;;  %v1757_v0 = vpop.f32.mrf.mxu3 }
 0x1cd   :  { %5848 = vst [vmem:[#allocation30_spill] sm:$0xff] %v5170_v28  ;;  %v1685_v6 = vadd.f32 %v1684_v18, %v1612_v40  ;;  %v1540_v59 = vpop.f32.mrf.mxu0  ;;  %v1613_v52 = vpop.f32.mrf.mxu1 }
 0x1ce   :  { %v1541_v11 = vadd.f32 %v1540_v59, %v5069_v10  ;;  %v3880_v59 = vld [vmem:[#allocation2 + $0x2a8] sm:$0xf] }
 0x1cf   :  { %v1758_v49 = vadd.f32 %v1757_v0, %v1685_v6 }
 0x1d0   :  { %v1614_v43 = vadd.f32 %v1613_v52, %v1541_v11  ;;  %v4293_v11 = vld [vmem:[#allocation2 + $0x2b4] sm:$0xf0] }
 0x1d1   :  { %v2712_v40 = vmax.f32 %v1758_v49, 0.0  ;;  %v3881_v52 = vor.u32 %v4293_v11, %v3880_v59  ;;  %v4008_v49 = vld [vmem:[#allocation2 + $0x3a8] sm:$0xf] }
 0x1d3   :  { %2236 = vmatpush.bf16.msrb.mxu2 %v3881_v52 }
 0x1d4   :  { %v1686_v12 = vpop.f32.mrf.mxu2  ;;  %v1759_v7 = vpop.f32.mrf.mxu3 }
 0x1d5   :  { %v1687_v17 = vadd.f32 %v1686_v12, %v1614_v43  ;;  %v1543_v61 = vpop.f32.mrf.mxu0  ;;  %v1616_v27 = vpop.f32.mrf.mxu1  ;;  %v4325_v43 = vld [vmem:[#allocation2 + $0x3b4] sm:$0xf0]  ;;  %v3624_v12 = vld [vmem:[#allocation2 + $0xa8] sm:$0xf] }
 0x1d6   :  { %v1544_v20 = vadd.f32 %v1543_v61, %v5069_v10  ;;  %v3752_v61 = vld [vmem:[#allocation2 + $0x1a8] sm:$0xf] }
 0x1d7   :  { %v1760_v36 = vadd.f32 %v1759_v7, %v1687_v17  ;;  %1809 = vmatmul.bf16.gmra.mxu0 %v4736_v55  ;;  %v4009_v17 = vor.u32 %v4325_v43, %v4008_v49  ;;  %v4229_v7 = vld [vmem:[#allocation2 + $0xb4] sm:$0xf0] }
 0x1d8   :  { %v1617_v41 = vadd.f32 %v1616_v27, %v1544_v20  ;;  %1882 = vmatmul.bf16.gmra.mxu1 %v4738_v56  ;;  %v4261_v20 = vld [vmem:[#allocation2 + $0x1b4] sm:$0xf0] }
 0x1d9   :  { %v2716_v31 = vmax.f32 %v1760_v36, 0.0  ;;  %1955 = vmatmul.bf16.gmra.mxu2 %v4847_v42  ;;  %2028 = vmatmul.bf16.gmra.mxu3 %v4849_v4  ;;  %v3625_v36 = vor.u32 %v4229_v7, %v3624_v12 }
 0x1da   :  { %2309 = vmatpush.bf16.msrb.mxu3 %v4009_v17 }
 0x1db   :  { %v5178_v54 = vpack.c.bf16 %v2716_v31, %v2712_v40  ;;  %2090 = vmatpush.bf16.msrb.mxu0 %v3625_v36 }
 0x1dc   :  { %v1689_v39 = vpop.f32.mrf.mxu2  ;;  %v1762_v63 = vpop.f32.mrf.mxu3 }
 0x1dd   :  { %5849 = vst [vmem:[#allocation31_spill] sm:$0xff] %v5178_v54  ;;  %v1690_v16 = vadd.f32 %v1689_v39, %v1617_v41  ;;  %v1545_v21 = vpop.f32.mrf.mxu0  ;;  %v1618_v18 = vpop.f32.mrf.mxu1  ;;  %v3753_v41 = vor.u32 %v4261_v20, %v3752_v61 }
 0x1de   :  { %v1546_v38 = vadd.f32 %v1545_v21, %v5069_v10 }
 0x1df   :  { %v1763_v6 = vadd.f32 %v1762_v63, %v1690_v16  ;;  %2163 = vmatpush.bf16.msrb.mxu1 %v3753_v41 }
 0x1e0   :  { %v1619_v0 = vadd.f32 %v1618_v18, %v1546_v38 }
 0x1e1   :  { %v2720_v18 = vmax.f32 %v1763_v6, 0.0 }
 0x1e4   :  { %v1691_v27 = vpop.f32.mrf.mxu2  ;;  %v1764_v31 = vpop.f32.mrf.mxu3 }
 0x1e5   :  { %v1692_v40 = vadd.f32 %v1691_v27, %v1619_v0  ;;  %v1548_v39 = vpop.f32.mrf.mxu0  ;;  %v1621_v63 = vpop.f32.mrf.mxu1 }
 0x1e6   :  { %v1549_v16 = vadd.f32 %v1548_v39, %v5069_v10 }
 0x1e7   :  { %v1765_v21 = vadd.f32 %v1764_v31, %v1692_v40  ;;  %1814 = vmatmul.bf16.gmra.mxu0 %v4758_v29 }
 0x1e8   :  { %v1622_v38 = vadd.f32 %v1621_v63, %v1549_v16  ;;  %1887 = vmatmul.bf16.gmra.mxu1 %v4760_v30 }
 0x1e9   :  { %v2724_v59 = vmax.f32 %v1765_v21, 0.0  ;;  %1960 = vmatmul.bf16.gmra.mxu2 %v4879_v24  ;;  %2033 = vmatmul.bf16.gmra.mxu3 %v4881_v32  ;;  %v5851_v21 = vld [vmem:[#allocation10_spill] sm:$0xff] }
 0x1eb   :  { %v5186_v0 = vpack.c.bf16 %v2724_v59, %v2720_v18  ;;  %v4289_v18 = vld [vmem:[#allocation2 + $0x294] sm:$0xf0]  ;;  %v5852_v59 = vld [vmem:[#allocation11_spill] sm:$0xff] }
 0x1ec   :  { %v1694_v11 = vpop.f32.mrf.mxu2  ;;  %v1767_v49 = vpop.f32.mrf.mxu3 }
 0x1ed   :  { %5850 = vst [vmem:[#allocation32_spill] sm:$0xff] %v5186_v0  ;;  %v1695_v52 = vadd.f32 %v1694_v11, %v1622_v38  ;;  %v1550_v43 = vpop.f32.mrf.mxu0  ;;  %v1623_v17 = vpop.f32.mrf.mxu1  ;;  %v3864_v38 = vld [vmem:[#allocation2 + $0x288] sm:$0xf] }
 0x1ee   :  { %v1551_v12 = vadd.f32 %v1550_v43, %v5069_v10  ;;  %v3865_v11 = vor.u32 %v4289_v18, %v3864_v38  ;;  %v3736_v38 = vld [vmem:[#allocation2 + $0x188] sm:$0xf]  ;;  %v4257_v18 = vld [vmem:[#allocation2 + $0x194] sm:$0xf0] }
 0x1ef   :  { %v1768_v7 = vadd.f32 %v1767_v49, %v1695_v52  ;;  %v3992_v52 = vld [vmem:[#allocation2 + $0x388] sm:$0xf]  ;;  %v4321_v49 = vld [vmem:[#allocation2 + $0x394] sm:$0xf0]  ;;  %v3737_v54 = vor.u32 %v4257_v18, %v3736_v38 }
 0x1f0   :  { %v1624_v61 = vadd.f32 %v1623_v17, %v1551_v12  ;;  %v3993_v43 = vor.u32 %v4321_v49, %v3992_v52  ;;  %2237 = vmatpush.bf16.msrb.mxu2 %v3865_v11 }
 0x1f1   :  { %v2728_v16 = vmax.f32 %v1768_v7, 0.0  ;;  %2164 = vmatpush.bf16.msrb.mxu1 %v3737_v54 }
 0x1f2   :  { %2310 = vmatpush.bf16.msrb.mxu3 %v3993_v43 }
 0x1f4   :  { %v1696_v20 = vpop.f32.mrf.mxu2  ;;  %v1769_v27 = vpop.f32.mrf.mxu3 }
 0x1f5   :  { %v1697_v6 = vadd.f32 %v1696_v20, %v1624_v61  ;;  %v1553_v36 = vpop.f32.mrf.mxu0  ;;  %v1626_v40 = vpop.f32.mrf.mxu1 }
 0x1f6   :  { %v1554_v41 = vadd.f32 %v1553_v36, %v5069_v10 }
 0x1f7   :  { %v1770_v31 = vadd.f32 %v1769_v27, %v1697_v6  ;;  %1819 = vmatmul.bf16.gmra.mxu0 %v4777_v1 }
 0x1f8   :  { %v1627_v39 = vadd.f32 %v1626_v40, %v1554_v41  ;;  %1892 = vmatmul.bf16.gmra.mxu1 %v4779_v2  ;;  %v3608_v40 = vld [vmem:[#allocation2 + $0x88] sm:$0xf] }
 0x1f9   :  { %v2732_v63 = vmax.f32 %v1770_v31, 0.0  ;;  %1965 = vmatmul.bf16.gmra.mxu2 %v5851_v21  ;;  %2038 = vmatmul.bf16.gmra.mxu3 %v5852_v59  ;;  %v4225_v31 = vld [vmem:[#allocation2 + $0x94] sm:$0xf0] }
 0x1fa   :  { %v3609_v0 = vor.u32 %v4225_v31, %v3608_v40  ;;  %v5857_v40 = vld [vmem:[#allocation15_spill] sm:$0xff] }
 0x1fb   :  { %v5194_v12 = vpack.c.bf16 %v2732_v63, %v2728_v16 }
 0x1fc   :  { %v1699_v17 = vpop.f32.mrf.mxu2  ;;  %v1772_v20 = vpop.f32.mrf.mxu3  ;;  %2091 = vmatpush.bf16.msrb.mxu0 %v3609_v0 }
 0x1fd   :  { %5853 = vst [vmem:[#allocation10_spill] sm:$0xff] %v5194_v12  ;;  %v1700_v61 = vadd.f32 %v1699_v17, %v1627_v39  ;;  %v1555_v7 = vpop.f32.mrf.mxu0  ;;  %v1628_v27 = vpop.f32.mrf.mxu1 }
 0x1fe   :  { %v1556_v6 = vadd.f32 %v1555_v7, %v5069_v10  ;;  %v5854_v7 = vld [vmem:[#allocation5_spill] sm:$0xff] }
 0x1ff   :  { %v1773_v36 = vadd.f32 %v1772_v20, %v1700_v61 }
 0x200   :  { %v1629_v41 = vadd.f32 %v1628_v27, %v1556_v6  ;;  %v5855_v6 = vld [vmem:[#allocation6_spill] sm:$0xff] }
 0x201   :  { %v2736_v61 = vmax.f32 %v1773_v36, 0.0  ;;  %v5856_v27 = vld [vmem:[#allocation14_spill] sm:$0xff]  ;;  %v4285_v36 = vld [vmem:[#allocation2 + $0x274] sm:$0xf0] }
 0x204   :  { %v1701_v52 = vpop.f32.mrf.mxu2  ;;  %v1774_v63 = vpop.f32.mrf.mxu3 }
 0x205   :  { %v1702_v16 = vadd.f32 %v1701_v52, %v1629_v41  ;;  %v1558_v11 = vpop.f32.mrf.mxu0  ;;  %v1631_v49 = vpop.f32.mrf.mxu1 }
 0x206   :  { %v1559_v39 = vadd.f32 %v1558_v11, %v5069_v10  ;;  %v3848_v11 = vld [vmem:[#allocation2 + $0x268] sm:$0xf] }
 0x207   :  { %v1775_v43 = vadd.f32 %v1774_v63, %v1702_v16  ;;  %1824 = vmatmul.bf16.gmra.mxu0 %v5854_v7 }
 0x208   :  { %v1632_v17 = vadd.f32 %v1631_v49, %v1559_v39  ;;  %1897 = vmatmul.bf16.gmra.mxu1 %v5855_v6  ;;  %v3849_v39 = vor.u32 %v4285_v36, %v3848_v11  ;;  %v3976_v49 = vld [vmem:[#allocation2 + $0x368] sm:$0xf]  ;;  %v4221_v36 = vld [vmem:[#allocation2 + $0x74] sm:$0xf0] }
 0x209   :  { %v2740_v20 = vmax.f32 %v1775_v43, 0.0  ;;  %1970 = vmatmul.bf16.gmra.mxu2 %v5856_v27  ;;  %2043 = vmatmul.bf16.gmra.mxu3 %v5857_v40  ;;  %v4317_v43 = vld [vmem:[#allocation2 + $0x374] sm:$0xf0]  ;;  %v3592_v11 = vld [vmem:[#allocation2 + $0x68] sm:$0xf] }
 0x20a   :  { %v3977_v12 = vor.u32 %v4317_v43, %v3976_v49  ;;  %2238 = vmatpush.bf16.msrb.mxu2 %v3849_v39  ;;  %v5861_v39 = vld [vmem:[#allocation17_spill] sm:$0xff] }
 0x20b   :  { %v5202_v0 = vpack.c.bf16 %v2740_v20, %v2736_v61 }
 0x20c   :  { %v1704_v41 = vpop.f32.mrf.mxu2  ;;  %v1777_v54 = vpop.f32.mrf.mxu3  ;;  %2311 = vmatpush.bf16.msrb.mxu3 %v3977_v12  ;;  %v4253_v12 = vld [vmem:[#allocation2 + $0x174] sm:$0xf0] }
 0x20d   :  { %5858 = vst [vmem:[#allocation11_spill] sm:$0xff] %v5202_v0  ;;  %v1705_v31 = vadd.f32 %v1704_v41, %v1632_v17  ;;  %v1560_v38 = vpop.f32.mrf.mxu0  ;;  %v1633_v52 = vpop.f32.mrf.mxu1 }
 0x20e   :  { %v1561_v18 = vadd.f32 %v1560_v38, %v5069_v10 }
 0x20f   :  { %v1778_v16 = vadd.f32 %v1777_v54, %v1705_v31 }
 0x210   :  { %v1634_v63 = vadd.f32 %v1633_v52, %v1561_v18  ;;  %v5859_v18 = vld [vmem:[#allocation7_spill] sm:$0xff]  ;;  %v5860_v52 = vld [vmem:[#allocation16_spill] sm:$0xff] }
 0x211   :  { %v2744_v31 = vmax.f32 %v1778_v16, 0.0 }
 0x214   :  { %v1706_v28 = vpop.f32.mrf.mxu2  ;;  %v1779_v61 = vpop.f32.mrf.mxu3 }
 0x215   :  { %v1707_v45 = vadd.f32 %v1706_v28, %v1634_v63  ;;  %v1563_v20 = vpop.f32.mrf.mxu0  ;;  %v1636_v41 = vpop.f32.mrf.mxu1  ;;  %v3593_v28 = vor.u32 %v4221_v36, %v3592_v11  ;;  %v3720_v63 = vld [vmem:[#allocation2 + $0x168] sm:$0xf] }
 0x216   :  { %v1564_v17 = vadd.f32 %v1563_v20, %v5069_v10  ;;  %v3721_v49 = vor.u32 %v4253_v12, %v3720_v63  ;;  %v5863_v12 = vld [vmem:[#allocation8_spill] sm:$0xff] }
 0x217   :  { %v1780_v0 = vadd.f32 %v1779_v61, %v1707_v45  ;;  %1829 = vmatmul.bf16.gmra.mxu0 %v4839_v53 }
 0x218   :  { %v1637_v38 = vadd.f32 %v1636_v41, %v1564_v17  ;;  %1902 = vmatmul.bf16.gmra.mxu1 %v5859_v18  ;;  %2092 = vmatpush.bf16.msrb.mxu0 %v3593_v28 }
 0x219   :  { %v2748_v54 = vmax.f32 %v1780_v0, 0.0  ;;  %1975 = vmatmul.bf16.gmra.mxu2 %v5860_v52  ;;  %2048 = vmatmul.bf16.gmra.mxu3 %v5861_v39  ;;  %v3704_v52 = vld [vmem:[#allocation2 + $0x148] sm:$0xf] }
 0x21a   :  { %2165 = vmatpush.bf16.msrb.mxu1 %v3721_v49  ;;  %v5865_v49 = vld [vmem:[#allocation18_spill] sm:$0xff] }
 0x21b   :  { %v5210_v43 = vpack.c.bf16 %v2748_v54, %v2744_v31 }
 0x21c   :  { %v1709_v45 = vpop.f32.mrf.mxu2  ;;  %v1782_v20 = vpop.f32.mrf.mxu3 }
 0x21d   :  { %5862 = vst [vmem:[#allocation5_spill] sm:$0xff] %v5210_v43  ;;  %v1710_v61 = vadd.f32 %v1709_v45, %v1637_v38  ;;  %v1565_v16 = vpop.f32.mrf.mxu0  ;;  %v1638_v17 = vpop.f32.mrf.mxu1  ;;  %v5864_v45 = vld [vmem:[#allocation9_spill] sm:$0xff] }
 0x21e   :  { %v1566_v0 = vadd.f32 %v1565_v16, %v5069_v10  ;;  %v5866_v16 = vld [vmem:[#allocation19_spill] sm:$0xff] }
 0x21f   :  { %v1783_v41 = vadd.f32 %v1782_v20, %v1710_v61  ;;  %v3832_v61 = vld [vmem:[#allocation2 + $0x248] sm:$0xf]  ;;  %v4281_v20 = vld [vmem:[#allocation2 + $0x254] sm:$0xf0] }
 0x220   :  { %v1639_v46 = vadd.f32 %v1638_v17, %v1566_v0  ;;  %v4313_v0 = vld [vmem:[#allocation2 + $0x354] sm:$0xf0] }
 0x221   :  { %v2752_v38 = vmax.f32 %v1783_v41, 0.0 }
 0x224   :  { %v1711_v9 = vpop.f32.mrf.mxu2  ;;  %v1784_v39 = vpop.f32.mrf.mxu3 }
 0x225   :  { %v1712_v25 = vadd.f32 %v1711_v9, %v1639_v46  ;;  %v1568_v11 = vpop.f32.mrf.mxu0  ;;  %v1641_v63 = vpop.f32.mrf.mxu1  ;;  %v3960_v9 = vld [vmem:[#allocation2 + $0x348] sm:$0xf]  ;;  %v3833_v46 = vor.u32 %v4281_v20, %v3832_v61  ;;  %v4249_v61 = vld [vmem:[#allocation2 + $0x154] sm:$0xf0] }
 0x226   :  { %v1569_v36 = vadd.f32 %v1568_v11, %v5069_v10  ;;  %v3705_v20 = vor.u32 %v4249_v61, %v3704_v52  ;;  %v5869_v52 = vld [vmem:[#allocation21_spill] sm:$0xff]  ;;  %v5872_v61 = vld [vmem:[#allocation22_spill] sm:$0xff] }
 0x227   :  { %v1785_v31 = vadd.f32 %v1784_v39, %v1712_v25  ;;  %1834 = vmatmul.bf16.gmra.mxu0 %v5863_v12  ;;  %v3961_v25 = vor.u32 %v4313_v0, %v3960_v9  ;;  %2239 = vmatpush.bf16.msrb.mxu2 %v3833_v46 }
 0x228   :  { %v1642_v54 = vadd.f32 %v1641_v63, %v1569_v36  ;;  %1907 = vmatmul.bf16.gmra.mxu1 %v5864_v45  ;;  %v4217_v45 = vld [vmem:[#allocation2 + $0x54] sm:$0xf0] }
 0x229   :  { %v2756_v28 = vmax.f32 %v1785_v31, 0.0  ;;  %1980 = vmatmul.bf16.gmra.mxu2 %v5865_v49  ;;  %2053 = vmatmul.bf16.gmra.mxu3 %v5866_v16  ;;  %v3576_v16 = vld [vmem:[#allocation2 + $0x48] sm:$0xf] }
 0x22a   :  { %2312 = vmatpush.bf16.msrb.mxu3 %v3961_v25  ;;  %v3577_v12 = vor.u32 %v4217_v45, %v3576_v16  ;;  %2166 = vmatpush.bf16.msrb.mxu1 %v3705_v20  ;;  %v5868_v45 = vld [vmem:[#allocation20_spill] sm:$0xff]  ;;  %v5231_v20 = vperm.slane %v5872_v61, 1 }
 0x22b   :  { %v5218_v17 = vpack.c.bf16 %v2756_v28, %v2752_v38 }
 0x22c   :  { %v1714_v11 = vpop.f32.mrf.mxu2  ;;  %v1787_v36 = vpop.f32.mrf.mxu3  ;;  %2093 = vmatpush.bf16.msrb.mxu0 %v3577_v12 }
 0x22d   :  { %5867 = vst [vmem:[#allocation6_spill] sm:$0xff] %v5218_v17  ;;  %v1715_v39 = vadd.f32 %v1714_v11, %v1642_v54  ;;  %v1570_v63 = vpop.f32.mrf.mxu0  ;;  %v1643_v31 = vpop.f32.mrf.mxu1 }
 0x22e   :  { %v1571_v41 = vadd.f32 %v1570_v63, %v5069_v10 }
 0x22f   :  { %v1788_v43 = vadd.f32 %v1787_v36, %v1715_v39 }
 0x230   :  { %v1644_v49 = vadd.f32 %v1643_v31, %v1571_v41 }
 0x231   :  { %v2760_v25 = vmax.f32 %v1788_v43, 0.0 }
 0x234   :  { %v1716_v38 = vpop.f32.mrf.mxu2  ;;  %v1789_v9 = vpop.f32.mrf.mxu3 }
 0x235   :  { %v1717_v28 = vadd.f32 %v1716_v38, %v1644_v49  ;;  %v1573_v54 = vpop.f32.mrf.mxu0  ;;  %v1646_v0 = vpop.f32.mrf.mxu1 }
 0x236   :  { %v1574_v46 = vadd.f32 %v1573_v54, %v5069_v10 }
 0x237   :  { %v1790_v11 = vadd.f32 %v1789_v9, %v1717_v28  ;;  %1839 = vmatmul.bf16.gmra.mxu0 %v4903_v62 }
 0x238   :  { %v1647_v63 = vadd.f32 %v1646_v0, %v1574_v46  ;;  %1912 = vmatmul.bf16.gmra.mxu1 %v4905_v44  ;;  %v5873_v0 = vld [vmem:[#allocation12_spill] sm:$0xff] }
 0x239   :  { %v2764_v39 = vmax.f32 %v1790_v11, 0.0  ;;  %1985 = vmatmul.bf16.gmra.mxu2 %v5868_v45  ;;  %2058 = vmatmul.bf16.gmra.mxu3 %v5869_v52  ;;  %v5874_v11 = vld [vmem:[#allocation13_spill] sm:$0xff] }
 0x23b   :  { %v5226_v12 = vpack.c.bf16 %v2764_v39, %v2760_v25  ;;  %v3816_v25 = vld [vmem:[#allocation2 + $0x228] sm:$0xf]  ;;  %v4277_v39 = vld [vmem:[#allocation2 + $0x234] sm:$0xf0] }
 0x23c   :  { %v1719_v49 = vpop.f32.mrf.mxu2  ;;  %v1792_v36 = vpop.f32.mrf.mxu3 }
 0x23d   :  { %5870 = vst [vmem:[#allocation14_spill] sm:$0xff] %v5226_v12  ;;  %v1720_v16 = vadd.f32 %v1719_v49, %v1647_v63  ;;  %v1575_v41 = vpop.f32.mrf.mxu0  ;;  %v1648_v10 = vpop.f32.mrf.mxu1  ;;  %v5875_v63 = vld [vmem:[#allocation23_spill] sm:$0xff]  ;;  %v3944_v49 = vld [vmem:[#allocation2 + $0x328] sm:$0xf] }
 0x23e   :  { %v3560_v41 = vld [vmem:[#allocation2 + $0x28] sm:$0xf]  ;;  %v4213_v10 = vld [vmem:[#allocation2 + $0x34] sm:$0xf0] }
 0x23f   :  { %v5228_v31 = vadd.f32 %v1792_v36, %v1720_v16  ;;  %v3817_v16 = vor.u32 %v4277_v39, %v3816_v25  ;;  %v4309_v36 = vld [vmem:[#allocation2 + $0x334] sm:$0xf0] }
 0x240   :  { %v3945_v61 = vor.u32 %v4309_v36, %v3944_v49 }
 0x241   :  { %5871 = vst [vmem:[#allocation15_spill] sm:$0xff] %v5228_v31  ;;  %2240 = vmatpush.bf16.msrb.mxu2 %v3817_v16 }
 0x242   :  { %2313 = vmatpush.bf16.msrb.mxu3 %v3945_v61 }
 0x244   :  { %v1721_v43 = vpop.f32.mrf.mxu2  ;;  %v1794_v38 = vpop.f32.mrf.mxu3 }
 0x245   :  { %v1805_v28 = vpop.f32.mrf.mxu0  ;;  %v1878_v54 = vpop.f32.mrf.mxu1  ;;  %v3561_v43 = vor.u32 %v4213_v10, %v3560_v41  ;;  %v3688_v38 = vld [vmem:[#allocation2 + $0x128] sm:$0xf] }
 0x246   :  { %v1806_v9 = vadd.f32 %v1805_v28, %v5231_v20  ;;  %v4245_v28 = vld [vmem:[#allocation2 + $0x134] sm:$0xf0] }
 0x247   :  { %1844 = vmatmul.bf16.gmra.mxu0 %v5873_v0 }
 0x248   :  { %v1879_v46 = vadd.f32 %v1878_v54, %v1806_v9  ;;  %1917 = vmatmul.bf16.gmra.mxu1 %v5874_v11  ;;  %v3689_v54 = vor.u32 %v4245_v28, %v3688_v38  ;;  %2094 = vmatpush.bf16.msrb.mxu0 %v3561_v43 }
 0x249   :  { %1990 = vmatmul.bf16.gmra.mxu2 %v5875_v63  ;;  %2063 = vmatmul.bf16.gmra.mxu3 %v5074_v22 }
 0x24a   :  { %2167 = vmatpush.bf16.msrb.mxu1 %v3689_v54  ;;  %v4273_v54 = vld [vmem:[#allocation2 + $0x214] sm:$0xf0] }
 0x24c   :  { %v1951_v9 = vpop.f32.mrf.mxu2  ;;  %v2024_v12 = vpop.f32.mrf.mxu3 }
 0x24d   :  { %v1952_v31 = vadd.f32 %v1951_v9, %v1879_v46  ;;  %v1807_v17 = vpop.f32.mrf.mxu0  ;;  %v1880_v11 = vpop.f32.mrf.mxu1  ;;  %v3800_v9 = vld [vmem:[#allocation2 + $0x208] sm:$0xf] }
 0x24e   :  { %v1808_v63 = vadd.f32 %v1807_v17, %v5231_v20 }
 0x24f   :  { %v2025_v25 = vadd.f32 %v2024_v12, %v1952_v31 }
 0x250   :  { %v1881_v39 = vadd.f32 %v1880_v11, %v1808_v63 }
 0x251   :  { %v2673_v46 = vmax.f32 %v2025_v25, 0.0  ;;  %v3801_v25 = vor.u32 %v4273_v54, %v3800_v9  ;;  %v3672_v9 = vld [vmem:[#allocation2 + $0x108] sm:$0xf]  ;;  %v4241_v54 = vld [vmem:[#allocation2 + $0x114] sm:$0xf0] }
 0x253   :  { %2241 = vmatpush.bf16.msrb.mxu2 %v3801_v25  ;;  %v3673_v25 = vor.u32 %v4241_v54, %v3672_v9  ;;  %v4299_v54 = vld [vmem:[#allocation2 + $0x2ec] sm:$0xf] }
 0x254   :  { %v1953_v22 = vpop.f32.mrf.mxu2  ;;  %v2026_v49 = vpop.f32.mrf.mxu3 }
 0x255   :  { %v1954_v0 = vadd.f32 %v1953_v22, %v1881_v39  ;;  %v1810_v36 = vpop.f32.mrf.mxu0  ;;  %v1883_v10 = vpop.f32.mrf.mxu1  ;;  %v3928_v39 = vld [vmem:[#allocation2 + $0x308] sm:$0xf]  ;;  %2168 = vmatpush.bf16.msrb.mxu1 %v3673_v25  ;;  %v3914_v25 = vld [vmem:[#allocation2 + $0x2f8] sm:$0xf0] }
 0x256   :  { %v1811_v41 = vadd.f32 %v1810_v36, %v5231_v20 }
 0x257   :  { %v2027_v16 = vadd.f32 %v2026_v49, %v1954_v0  ;;  %1849 = vmatmul.bf16.gmra.mxu0 %v4967_v58  ;;  %v4305_v49 = vld [vmem:[#allocation2 + $0x314] sm:$0xf0] }
 0x258   :  { %v1884_v38 = vadd.f32 %v1883_v10, %v1811_v41  ;;  %1922 = vmatmul.bf16.gmra.mxu1 %v4969_v19  ;;  %v3929_v36 = vor.u32 %v4305_v49, %v3928_v39 }
 0x259   :  { %v2677_v61 = vmax.f32 %v2027_v16, 0.0  ;;  %1995 = vmatmul.bf16.gmra.mxu2 %v5090_v26  ;;  %2068 = vmatmul.bf16.gmra.mxu3 %v5092_v51 }
 0x25a   :  { %2314 = vmatpush.bf16.msrb.mxu3 %v3929_v36 }
 0x25b   :  { %v5244_v17 = vpack.c.bf16 %v2677_v61, %v2673_v46 }
 0x25c   :  { %v1956_v22 = vpop.f32.mrf.mxu2  ;;  %v2029_v31 = vpop.f32.mrf.mxu3 }
 0x25d   :  { %5876 = vst [vmem:[#allocation7_spill] sm:$0xff] %v5244_v17  ;;  %v1957_v12 = vadd.f32 %v1956_v22, %v1884_v38  ;;  %v1812_v11 = vpop.f32.mrf.mxu0  ;;  %v1885_v0 = vpop.f32.mrf.mxu1 }
 0x25e   :  { %v1813_v63 = vadd.f32 %v1812_v11, %v5231_v20 }
 0x25f   :  { %v2030_v43 = vadd.f32 %v2029_v31, %v1957_v12 }
 0x260   :  { %v1886_v28 = vadd.f32 %v1885_v0, %v1813_v63  ;;  %v3544_v63 = vld [vmem:[#allocation2 + $0x8] sm:$0xf]  ;;  %v4209_v0 = vld [vmem:[#allocation2 + $0x14] sm:$0xf0] }
 0x261   :  { %v2681_v12 = vmax.f32 %v2030_v43, 0.0 }
 0x264   :  { %v1958_v41 = vpop.f32.mrf.mxu2  ;;  %v2031_v16 = vpop.f32.mrf.mxu3 }
 0x265   :  { %v1959_v10 = vadd.f32 %v1958_v41, %v1886_v28  ;;  %v1815_v46 = vpop.f32.mrf.mxu0  ;;  %v1888_v61 = vpop.f32.mrf.mxu1  ;;  %v3545_v28 = vor.u32 %v4209_v0, %v3544_v63 }
 0x266   :  { %v1816_v38 = vadd.f32 %v1815_v46, %v5231_v20 }
 0x267   :  { %v2032_v22 = vadd.f32 %v2031_v16, %v1959_v10  ;;  %1854 = vmatmul.bf16.gmra.mxu0 %v4999_v50 }
 0x268   :  { %v1889_v11 = vadd.f32 %v1888_v61, %v1816_v38  ;;  %1927 = vmatmul.bf16.gmra.mxu1 %v5001_v13  ;;  %2095 = vmatpush.bf16.msrb.mxu0 %v3545_v28 }
 0x269   :  { %v2685_v31 = vmax.f32 %v2032_v22, 0.0  ;;  %2000 = vmatmul.bf16.gmra.mxu2 %v5110_v60  ;;  %2073 = vmatmul.bf16.gmra.mxu3 %v5112_v14 }
 0x26b   :  { %v5252_v39 = vpack.c.bf16 %v2685_v31, %v2681_v12 }
 0x26c   :  { %v1961_v49 = vpop.f32.mrf.mxu2  ;;  %v2034_v41 = vpop.f32.mrf.mxu3 }
 0x26d   :  { %5877 = vst [vmem:[#allocation20_spill] sm:$0xff] %v5252_v39  ;;  %v1962_v36 = vadd.f32 %v1961_v49, %v1889_v11  ;;  %v1817_v43 = vpop.f32.mrf.mxu0  ;;  %v1890_v16 = vpop.f32.mrf.mxu1  ;;  %v4331_v49 = vld [vmem:[#allocation2 + $0x3ec] sm:$0xf] }
 0x26e   :  { %v1818_v10 = vadd.f32 %v1817_v43, %v5231_v20 }
 0x26f   :  { %v2035_v46 = vadd.f32 %v2034_v41, %v1962_v36  ;;  %v3917_v36 = vor.u32 %v4299_v54, %v3914_v25  ;;  %v4042_v41 = vld [vmem:[#allocation2 + $0x3f8] sm:$0xf0] }
 0x270   :  { %v1891_v38 = vadd.f32 %v1890_v16, %v1818_v10  ;;  %v3786_v54 = vld [vmem:[#allocation2 + $0x1f8] sm:$0xf0] }
 0x271   :  { %v2689_v11 = vmax.f32 %v2035_v46, 0.0  ;;  %2526 = vmatpush.bf16.msra.mxu2 %v3917_v36 }
 0x274   :  { %v1963_v61 = vpop.f32.mrf.mxu2  ;;  %v2036_v17 = vpop.f32.mrf.mxu3 }
 0x275   :  { %v1964_v22 = vadd.f32 %v1963_v61, %v1891_v38  ;;  %v1820_v63 = vpop.f32.mrf.mxu0  ;;  %v1893_v9 = vpop.f32.mrf.mxu1 }
 0x276   :  { %v1821_v0 = vadd.f32 %v1820_v63, %v5231_v20 }
 0x277   :  { %v2037_v12 = vadd.f32 %v2036_v17, %v1964_v22  ;;  %1859 = vmatmul.bf16.gmra.mxu0 %v5031_v23  ;;  %v4045_v17 = vor.u32 %v4331_v49, %v4042_v41 }
 0x278   :  { %v1894_v31 = vadd.f32 %v1893_v9, %v1821_v0  ;;  %1932 = vmatmul.bf16.gmra.mxu1 %v5033_v57  ;;  %v4235_v9 = vld [vmem:[#allocation2 + $0xec] sm:$0xf] }
 0x279   :  { %v2693_v28 = vmax.f32 %v2037_v12, 0.0  ;;  %2005 = vmatmul.bf16.gmra.mxu2 %v5130_v15  ;;  %2078 = vmatmul.bf16.gmra.mxu3 %v5132_v3  ;;  %v3658_v12 = vld [vmem:[#allocation2 + $0xf8] sm:$0xf0]  ;;  %v4267_v3 = vld [vmem:[#allocation2 + $0x1ec] sm:$0xf] }
 0x27a   :  { %2599 = vmatpush.bf16.msra.mxu3 %v4045_v17  ;;  %v3661_v39 = vor.u32 %v4235_v9, %v3658_v12  ;;  %v3789_v25 = vor.u32 %v4267_v3, %v3786_v54 }
 0x27b   :  { %v5260_v43 = vpack.c.bf16 %v2693_v28, %v2689_v11 }
 0x27c   :  { %v1966_v10 = vpop.f32.mrf.mxu2  ;;  %v2039_v38 = vpop.f32.mrf.mxu3  ;;  %2380 = vmatpush.bf16.msra.mxu0 %v3661_v39  ;;  %2453 = vmatpush.bf16.msra.mxu1 %v3789_v25  ;;  %v4295_v25 = vld [vmem:[#allocation2 + $0x2cc] sm:$0xf] }
 0x27d   :  { %5878 = vst [vmem:[#allocation21_spill] sm:$0xff] %v5260_v43  ;;  %v1967_v16 = vadd.f32 %v1966_v10, %v1894_v31  ;;  %v1822_v61 = vpop.f32.mrf.mxu0  ;;  %v1895_v22 = vpop.f32.mrf.mxu1 }
 0x27e   :  { %v1823_v46 = vadd.f32 %v1822_v61, %v5231_v20 }
 0x27f   :  { %v2040_v63 = vadd.f32 %v2039_v38, %v1967_v16 }
 0x280   :  { %v1896_v0 = vadd.f32 %v1895_v22, %v1823_v46 }
 0x281   :  { %v2697_v17 = vmax.f32 %v2040_v63, 0.0  ;;  %v3898_v63 = vld [vmem:[#allocation2 + $0x2d8] sm:$0xf0] }
 0x284   :  { %v1968_v11 = vpop.f32.mrf.mxu2  ;;  %v2041_v49 = vpop.f32.mrf.mxu3 }
 0x285   :  { %v1969_v28 = vadd.f32 %v1968_v11, %v1896_v0  ;;  %v1825_v31 = vpop.f32.mrf.mxu0  ;;  %v1898_v41 = vpop.f32.mrf.mxu1  ;;  %v3901_v11 = vor.u32 %v4295_v25, %v3898_v63  ;;  %v4263_v25 = vld [vmem:[#allocation2 + $0x1cc] sm:$0xf]  ;;  %v3770_v63 = vld [vmem:[#allocation2 + $0x1d8] sm:$0xf0] }
 0x286   :  { %v1826_v36 = vadd.f32 %v1825_v31, %v5231_v20 }
 0x287   :  { %v2042_v10 = vadd.f32 %v2041_v49, %v1969_v28  ;;  %1864 = vmatmul.bf16.gmra.mxu0 %v5149_v33  ;;  %v4327_v28 = vld [vmem:[#allocation2 + $0x3cc] sm:$0xf]  ;;  %v4026_v49 = vld [vmem:[#allocation2 + $0x3d8] sm:$0xf0]  ;;  %2527 = vmatpush.bf16.msra.mxu2 %v3901_v11  ;;  %v3773_v11 = vor.u32 %v4263_v25, %v3770_v63 }
 0x288   :  { %v1899_v61 = vadd.f32 %v1898_v41, %v1826_v36  ;;  %1937 = vmatmul.bf16.gmra.mxu1 %v5152_v47  ;;  %v4029_v31 = vor.u32 %v4327_v28, %v4026_v49 }
 0x289   :  { %v2701_v16 = vmax.f32 %v2042_v10, 0.0  ;;  %2010 = vmatmul.bf16.gmra.mxu2 %v5154_v48  ;;  %2083 = vmatmul.bf16.gmra.mxu3 %v5156_v37 }
 0x28a   :  { %2600 = vmatpush.bf16.msra.mxu3 %v4029_v31  ;;  %2454 = vmatpush.bf16.msra.mxu1 %v3773_v11 }
 0x28b   :  { %v5268_v3 = vpack.c.bf16 %v2701_v16, %v2697_v17 }
 0x28c   :  { %v1971_v39 = vpop.f32.mrf.mxu2  ;;  %v2044_v46 = vpop.f32.mrf.mxu3 }
 0x28d   :  { %5879 = vst [vmem:[#allocation22_spill] sm:$0xff] %v5268_v3  ;;  %v1972_v38 = vadd.f32 %v1971_v39, %v1899_v61  ;;  %v1827_v22 = vpop.f32.mrf.mxu0  ;;  %v1900_v9 = vpop.f32.mrf.mxu1 }
 0x28e   :  { %v1828_v0 = vadd.f32 %v1827_v22, %v5231_v20 }
 0x28f   :  { %v2045_v12 = vadd.f32 %v2044_v46, %v1972_v38 }
 0x290   :  { %v1901_v54 = vadd.f32 %v1900_v9, %v1828_v0  ;;  %v4231_v0 = vld [vmem:[#allocation2 + $0xcc] sm:$0xf]  ;;  %v3642_v9 = vld [vmem:[#allocation2 + $0xd8] sm:$0xf0] }
 0x291   :  { %v2705_v38 = vmax.f32 %v2045_v12, 0.0 }
 0x294   :  { %v1973_v36 = vpop.f32.mrf.mxu2  ;;  %v2046_v10 = vpop.f32.mrf.mxu3 }
 0x295   :  { %v1974_v41 = vadd.f32 %v1973_v36, %v1901_v54  ;;  %v1830_v17 = vpop.f32.mrf.mxu0  ;;  %v1903_v16 = vpop.f32.mrf.mxu1  ;;  %v3645_v54 = vor.u32 %v4231_v0, %v3642_v9 }
 0x296   :  { %v1831_v61 = vadd.f32 %v1830_v17, %v5231_v20 }
 0x297   :  { %v2047_v39 = vadd.f32 %v2046_v10, %v1974_v41  ;;  %2096 = vmatmul.bf16.vlgmr.msrb.gmra.mxu0 %v4714_v34 }
 0x298   :  { %v1904_v22 = vadd.f32 %v1903_v16, %v1831_v61  ;;  %2169 = vmatmul.bf16.vlgmr.msrb.gmra.mxu1 %v4716_v35  ;;  %2381 = vmatpush.bf16.msra.mxu0 %v3645_v54 }
 0x299   :  { %v2709_v46 = vmax.f32 %v2047_v39, 0.0  ;;  %2242 = vmatmul.bf16.vlgmr.msrb.gmra.mxu2 %v4815_v5  ;;  %2315 = vmatmul.bf16.vlgmr.msrb.gmra.mxu3 %v4817_v8 }
 0x29b   :  { %v5276_v28 = vpack.c.bf16 %v2709_v46, %v2705_v38 }
 0x29c   :  { %v1976_v49 = vpop.f32.mrf.mxu2  ;;  %v2049_v36 = vpop.f32.mrf.mxu3 }
 0x29d   :  { %5880 = vst [vmem:[#allocation33_spill] sm:$0xff] %v5276_v28  ;;  %v1977_v31 = vadd.f32 %v1976_v49, %v1904_v22  ;;  %v1832_v12 = vpop.f32.mrf.mxu0  ;;  %v1905_v10 = vpop.f32.mrf.mxu1  ;;  %v4259_v28 = vld [vmem:[#allocation2 + $0x1ac] sm:$0xf] }
 0x29e   :  { %v1833_v41 = vadd.f32 %v1832_v12, %v5231_v20 }
 0x29f   :  { %v2050_v17 = vadd.f32 %v2049_v36, %v1977_v31 }
 0x2a0   :  { %v1906_v61 = vadd.f32 %v1905_v10, %v1833_v41 }
 0x2a1   :  { %v2713_v22 = vmax.f32 %v2050_v17, 0.0  ;;  %v3882_v17 = vld [vmem:[#allocation2 + $0x2b8] sm:$0xf0] }
 0x2a4   :  { %v1978_v16 = vpop.f32.mrf.mxu2  ;;  %v2051_v3 = vpop.f32.mrf.mxu3 }
 0x2a5   :  { %v1979_v39 = vadd.f32 %v1978_v16, %v1906_v61  ;;  %v1835_v0 = vpop.f32.mrf.mxu0  ;;  %v1908_v25 = vpop.f32.mrf.mxu1  ;;  %v4291_v61 = vld [vmem:[#allocation2 + $0x2ac] sm:$0xf] }
 0x2a6   :  { %v1836_v9 = vadd.f32 %v1835_v0, %v5231_v20  ;;  %v3885_v16 = vor.u32 %v4291_v61, %v3882_v17  ;;  %v4010_v0 = vld [vmem:[#allocation2 + $0x3b8] sm:$0xf0] }
 0x2a7   :  { %v2052_v38 = vadd.f32 %v2051_v3, %v1979_v39  ;;  %2101 = vmatmul.bf16.gmra.mxu0 %v4736_v55  ;;  %v4323_v39 = vld [vmem:[#allocation2 + $0x3ac] sm:$0xf] }
 0x2a8   :  { %v1909_v46 = vadd.f32 %v1908_v25, %v1836_v9  ;;  %2174 = vmatmul.bf16.gmra.mxu1 %v4738_v56  ;;  %v4227_v9 = vld [vmem:[#allocation2 + $0xac] sm:$0xf]  ;;  %v4013_v25 = vor.u32 %v4323_v39, %v4010_v0  ;;  %2528 = vmatpush.bf16.msra.mxu2 %v3885_v16 }
 0x2a9   :  { %v2717_v54 = vmax.f32 %v2052_v38, 0.0  ;;  %2247 = vmatmul.bf16.gmra.mxu2 %v4847_v42  ;;  %2320 = vmatmul.bf16.gmra.mxu3 %v4849_v4  ;;  %v3626_v38 = vld [vmem:[#allocation2 + $0xb8] sm:$0xf0] }
 0x2aa   :  { %2601 = vmatpush.bf16.msra.mxu3 %v4013_v25 }
 0x2ab   :  { %v5284_v63 = vpack.c.bf16 %v2717_v54, %v2713_v22  ;;  %v3754_v22 = vld [vmem:[#allocation2 + $0x1b8] sm:$0xf0] }
 0x2ac   :  { %v1981_v11 = vpop.f32.mrf.mxu2  ;;  %v2054_v31 = vpop.f32.mrf.mxu3 }
 0x2ad   :  { %5881 = vst [vmem:[#allocation34_spill] sm:$0xff] %v5284_v63  ;;  %v1982_v49 = vadd.f32 %v1981_v11, %v1909_v46  ;;  %v1837_v36 = vpop.f32.mrf.mxu0  ;;  %v1910_v3 = vpop.f32.mrf.mxu1  ;;  %v3629_v46 = vor.u32 %v4227_v9, %v3626_v38  ;;  %v3757_v11 = vor.u32 %v4259_v28, %v3754_v22 }
 0x2ae   :  { %v1838_v12 = vadd.f32 %v1837_v36, %v5231_v20 }
 0x2af   :  { %v2055_v41 = vadd.f32 %v2054_v31, %v1982_v49  ;;  %2382 = vmatpush.bf16.msra.mxu0 %v3629_v46  ;;  %2455 = vmatpush.bf16.msra.mxu1 %v3757_v11 }
 0x2b0   :  { %v1911_v10 = vadd.f32 %v1910_v3, %v1838_v12 }
 0x2b1   :  { %v2721_v61 = vmax.f32 %v2055_v41, 0.0 }
 0x2b4   :  { %v1983_v54 = vpop.f32.mrf.mxu2  ;;  %v2056_v43 = vpop.f32.mrf.mxu3 }
 0x2b5   :  { %v1984_v63 = vadd.f32 %v1983_v54, %v1911_v10  ;;  %v1840_v36 = vpop.f32.mrf.mxu0  ;;  %v1913_v31 = vpop.f32.mrf.mxu1 }
 0x2b6   :  { %v1841_v49 = vadd.f32 %v1840_v36, %v5231_v20 }
 0x2b7   :  { %v2057_v12 = vadd.f32 %v2056_v43, %v1984_v63  ;;  %2106 = vmatmul.bf16.gmra.mxu0 %v4758_v29 }
 0x2b8   :  { %v1914_v3 = vadd.f32 %v1913_v31, %v1841_v49  ;;  %2179 = vmatmul.bf16.gmra.mxu1 %v4760_v30 }
 0x2b9   :  { %v2725_v17 = vmax.f32 %v2057_v12, 0.0  ;;  %2252 = vmatmul.bf16.gmra.mxu2 %v4879_v24  ;;  %2325 = vmatmul.bf16.gmra.mxu3 %v4881_v32 }
 0x2bb   :  { %v5292_v28 = vpack.c.bf16 %v2725_v17, %v2721_v61  ;;  %v3866_v61 = vld [vmem:[#allocation2 + $0x298] sm:$0xf0] }
 0x2bc   :  { %v1986_v10 = vpop.f32.mrf.mxu2  ;;  %v2059_v39 = vpop.f32.mrf.mxu3 }
 0x2bd   :  { %5882 = vst [vmem:[#allocation35_spill] sm:$0xff] %v5292_v28  ;;  %v1987_v16 = vadd.f32 %v1986_v10, %v1914_v3  ;;  %v1842_v0 = vpop.f32.mrf.mxu0  ;;  %v1915_v43 = vpop.f32.mrf.mxu1  ;;  %v4287_v3 = vld [vmem:[#allocation2 + $0x28c] sm:$0xf] }
 0x2be   :  { %v1843_v9 = vadd.f32 %v1842_v0, %v5231_v20  ;;  %v3869_v17 = vor.u32 %v4287_v3, %v3866_v61  ;;  %v4319_v10 = vld [vmem:[#allocation2 + $0x38c] sm:$0xf]  ;;  %v3738_v61 = vld [vmem:[#allocation2 + $0x198] sm:$0xf0] }
 0x2bf   :  { %v2060_v63 = vadd.f32 %v2059_v39, %v1987_v16  ;;  %v3994_v16 = vld [vmem:[#allocation2 + $0x398] sm:$0xf0]  ;;  %v4255_v3 = vld [vmem:[#allocation2 + $0x18c] sm:$0xf] }
 0x2c0   :  { %v1916_v25 = vadd.f32 %v1915_v43, %v1843_v9  ;;  %v3997_v39 = vor.u32 %v4319_v10, %v3994_v16  ;;  %2529 = vmatpush.bf16.msra.mxu2 %v3869_v17  ;;  %v3741_v28 = vor.u32 %v4255_v3, %v3738_v61  ;;  %v4283_v61 = vld [vmem:[#allocation2 + $0x26c] sm:$0xf] }
 0x2c1   :  { %v2729_v31 = vmax.f32 %v2060_v63, 0.0 }
 0x2c2   :  { %2602 = vmatpush.bf16.msra.mxu3 %v3997_v39  ;;  %2456 = vmatpush.bf16.msra.mxu1 %v3741_v28 }
 0x2c4   :  { %v1988_v38 = vpop.f32.mrf.mxu2  ;;  %v2061_v22 = vpop.f32.mrf.mxu3 }
 0x2c5   :  { %v1989_v41 = vadd.f32 %v1988_v38, %v1916_v25  ;;  %v1845_v54 = vpop.f32.mrf.mxu0  ;;  %v1918_v11 = vpop.f32.mrf.mxu1 }
 0x2c6   :  { %v1846_v46 = vadd.f32 %v1845_v54, %v5231_v20 }
 0x2c7   :  { %v2062_v36 = vadd.f32 %v2061_v22, %v1989_v41  ;;  %2111 = vmatmul.bf16.gmra.mxu0 %v4777_v1 }
 0x2c8   :  { %v1919_v49 = vadd.f32 %v1918_v11, %v1846_v46  ;;  %2184 = vmatmul.bf16.gmra.mxu1 %v4779_v2  ;;  %v4223_v46 = vld [vmem:[#allocation2 + $0x8c] sm:$0xf]  ;;  %v3610_v11 = vld [vmem:[#allocation2 + $0x98] sm:$0xf0] }
 0x2c9   :  { %v2733_v12 = vmax.f32 %v2062_v36, 0.0  ;;  %2257 = vmatmul.bf16.gmra.mxu2 %v5851_v21  ;;  %2330 = vmatmul.bf16.gmra.mxu3 %v5852_v59  ;;  %v3613_v36 = vor.u32 %v4223_v46, %v3610_v11 }
 0x2cb   :  { %v5300_v0 = vpack.c.bf16 %v2733_v12, %v2729_v31  ;;  %2383 = vmatpush.bf16.msra.mxu0 %v3613_v36 }
 0x2cc   :  { %v1991_v9 = vpop.f32.mrf.mxu2  ;;  %v2064_v25 = vpop.f32.mrf.mxu3 }
 0x2cd   :  { %5883 = vst [vmem:[#allocation36_spill] sm:$0xff] %v5300_v0  ;;  %v1992_v43 = vadd.f32 %v1991_v9, %v1919_v49  ;;  %v1847_v63 = vpop.f32.mrf.mxu0  ;;  %v1920_v41 = vpop.f32.mrf.mxu1 }
 0x2ce   :  { %v1848_v38 = vadd.f32 %v1847_v63, %v5231_v20 }
 0x2cf   :  { %v2065_v22 = vadd.f32 %v2064_v25, %v1992_v43 }
 0x2d0   :  { %v1921_v54 = vadd.f32 %v1920_v41, %v1848_v38 }
 0x2d1   :  { %v2737_v43 = vmax.f32 %v2065_v22, 0.0  ;;  %v3850_v22 = vld [vmem:[#allocation2 + $0x278] sm:$0xf0] }
 0x2d4   :  { %v1993_v10 = vpop.f32.mrf.mxu2  ;;  %v2066_v12 = vpop.f32.mrf.mxu3 }
 0x2d5   :  { %v1994_v31 = vadd.f32 %v1993_v10, %v1921_v54  ;;  %v1850_v17 = vpop.f32.mrf.mxu0  ;;  %v1923_v16 = vpop.f32.mrf.mxu1  ;;  %v3853_v10 = vor.u32 %v4283_v61, %v3850_v22  ;;  %v3594_v61 = vld [vmem:[#allocation2 + $0x78] sm:$0xf0]  ;;  %v5886_v22 = vld [vmem:[#allocation17_spill] sm:$0xff] }
 0x2d6   :  { %v1851_v49 = vadd.f32 %v1850_v17, %v5231_v20 }
 0x2d7   :  { %v2067_v39 = vadd.f32 %v2066_v12, %v1994_v31  ;;  %2116 = vmatmul.bf16.gmra.mxu0 %v5854_v7  ;;  %v4315_v31 = vld [vmem:[#allocation2 + $0x36c] sm:$0xf]  ;;  %v3978_v12 = vld [vmem:[#allocation2 + $0x378] sm:$0xf0]  ;;  %2530 = vmatpush.bf16.msra.mxu2 %v3853_v10 }
 0x2d8   :  { %v1924_v9 = vadd.f32 %v1923_v16, %v1851_v49  ;;  %2189 = vmatmul.bf16.gmra.mxu1 %v5855_v6  ;;  %v3981_v17 = vor.u32 %v4315_v31, %v3978_v12  ;;  %v4251_v10 = vld [vmem:[#allocation2 + $0x16c] sm:$0xf]  ;;  %v3722_v31 = vld [vmem:[#allocation2 + $0x178] sm:$0xf0] }
 0x2d9   :  { %v2741_v25 = vmax.f32 %v2067_v39, 0.0  ;;  %2262 = vmatmul.bf16.gmra.mxu2 %v5856_v27  ;;  %2335 = vmatmul.bf16.gmra.mxu3 %v5857_v40  ;;  %v3725_v12 = vor.u32 %v4251_v10, %v3722_v31  ;;  %v5888_v31 = vld [vmem:[#allocation8_spill] sm:$0xff] }
 0x2da   :  { %2603 = vmatpush.bf16.msra.mxu3 %v3981_v17 }
 0x2db   :  { %v5308_v63 = vpack.c.bf16 %v2741_v25, %v2737_v43  ;;  %2457 = vmatpush.bf16.msra.mxu1 %v3725_v12  ;;  %v5890_v12 = vld [vmem:[#allocation18_spill] sm:$0xff] }
 0x2dc   :  { %v1996_v38 = vpop.f32.mrf.mxu2  ;;  %v2069_v28 = vpop.f32.mrf.mxu3 }
 0x2dd   :  { %5884 = vst [vmem:[#allocation37_spill] sm:$0xff] %v5308_v63  ;;  %v1997_v41 = vadd.f32 %v1996_v38, %v1924_v9  ;;  %v1852_v54 = vpop.f32.mrf.mxu0  ;;  %v1925_v11 = vpop.f32.mrf.mxu1 }
 0x2de   :  { %v1853_v46 = vadd.f32 %v1852_v54, %v5231_v20 }
 0x2df   :  { %v2070_v36 = vadd.f32 %v2069_v28, %v1997_v41 }
 0x2e0   :  { %v1926_v3 = vadd.f32 %v1925_v11, %v1853_v46  ;;  %v5885_v46 = vld [vmem:[#allocation16_spill] sm:$0xff]  ;;  %v4219_v11 = vld [vmem:[#allocation2 + $0x6c] sm:$0xf] }
 0x2e1   :  { %v2745_v41 = vmax.f32 %v2070_v36, 0.0 }
 0x2e4   :  { %v1998_v49 = vpop.f32.mrf.mxu2  ;;  %v2071_v39 = vpop.f32.mrf.mxu3 }
 0x2e5   :  { %v1999_v16 = vadd.f32 %v1998_v49, %v1926_v3  ;;  %v1855_v43 = vpop.f32.mrf.mxu0  ;;  %v1928_v25 = vpop.f32.mrf.mxu1  ;;  %v3597_v3 = vor.u32 %v4219_v11, %v3594_v61 }
 0x2e6   :  { %v1856_v9 = vadd.f32 %v1855_v43, %v5231_v20 }
 0x2e7   :  { %v2072_v38 = vadd.f32 %v2071_v39, %v1999_v16  ;;  %2121 = vmatmul.bf16.gmra.mxu0 %v4839_v53 }
 0x2e8   :  { %v1929_v54 = vadd.f32 %v1928_v25, %v1856_v9  ;;  %2194 = vmatmul.bf16.gmra.mxu1 %v5859_v18  ;;  %2384 = vmatpush.bf16.msra.mxu0 %v3597_v3 }
 0x2e9   :  { %v2749_v28 = vmax.f32 %v2072_v38, 0.0  ;;  %2267 = vmatmul.bf16.gmra.mxu2 %v5885_v46  ;;  %2340 = vmatmul.bf16.gmra.mxu3 %v5886_v22  ;;  %v4247_v46 = vld [vmem:[#allocation2 + $0x14c] sm:$0xf] }
 0x2eb   :  { %v5316_v17 = vpack.c.bf16 %v2749_v28, %v2745_v41 }
 0x2ec   :  { %v2001_v49 = vpop.f32.mrf.mxu2  ;;  %v2074_v39 = vpop.f32.mrf.mxu3 }
 0x2ed   :  { %5887 = vst [vmem:[#allocation38_spill] sm:$0xff] %v5316_v17  ;;  %v2002_v16 = vadd.f32 %v2001_v49, %v1929_v54  ;;  %v1857_v36 = vpop.f32.mrf.mxu0  ;;  %v1930_v9 = vpop.f32.mrf.mxu1  ;;  %v5889_v49 = vld [vmem:[#allocation9_spill] sm:$0xff] }
 0x2ee   :  { %v1858_v43 = vadd.f32 %v1857_v36, %v5231_v20  ;;  %v5891_v36 = vld [vmem:[#allocation19_spill] sm:$0xff] }
 0x2ef   :  { %v2075_v25 = vadd.f32 %v2074_v39, %v2002_v16  ;;  %v4279_v16 = vld [vmem:[#allocation2 + $0x24c] sm:$0xf]  ;;  %v3834_v39 = vld [vmem:[#allocation2 + $0x258] sm:$0xf0] }
 0x2f0   :  { %v1931_v38 = vadd.f32 %v1930_v9, %v1858_v43  ;;  %v3837_v43 = vor.u32 %v4279_v16, %v3834_v39  ;;  %v3962_v9 = vld [vmem:[#allocation2 + $0x358] sm:$0xf0] }
 0x2f1   :  { %v2753_v54 = vmax.f32 %v2075_v25, 0.0  ;;  %v3706_v16 = vld [vmem:[#allocation2 + $0x158] sm:$0xf0] }
 0x2f2   :  { %2531 = vmatpush.bf16.msra.mxu2 %v3837_v43  ;;  %v3709_v39 = vor.u32 %v4247_v46, %v3706_v16 }
 0x2f4   :  { %v2003_v63 = vpop.f32.mrf.mxu2  ;;  %v2076_v22 = vpop.f32.mrf.mxu3  ;;  %2458 = vmatpush.bf16.msra.mxu1 %v3709_v39 }
 0x2f5   :  { %v2004_v0 = vadd.f32 %v2003_v63, %v1931_v38  ;;  %v1860_v11 = vpop.f32.mrf.mxu0  ;;  %v1933_v10 = vpop.f32.mrf.mxu1  ;;  %v4311_v63 = vld [vmem:[#allocation2 + $0x34c] sm:$0xf] }
 0x2f6   :  { %v1861_v61 = vadd.f32 %v1860_v11, %v5231_v20 }
 0x2f7   :  { %v2077_v41 = vadd.f32 %v2076_v22, %v2004_v0  ;;  %2126 = vmatmul.bf16.gmra.mxu0 %v5888_v31  ;;  %v3965_v0 = vor.u32 %v4311_v63, %v3962_v9 }
 0x2f8   :  { %v1934_v28 = vadd.f32 %v1933_v10, %v1861_v61  ;;  %2199 = vmatmul.bf16.gmra.mxu1 %v5889_v49  ;;  %v3578_v49 = vld [vmem:[#allocation2 + $0x58] sm:$0xf0] }
 0x2f9   :  { %v2757_v3 = vmax.f32 %v2077_v41, 0.0  ;;  %2272 = vmatmul.bf16.gmra.mxu2 %v5890_v12  ;;  %2345 = vmatmul.bf16.gmra.mxu3 %v5891_v36  ;;  %v4215_v36 = vld [vmem:[#allocation2 + $0x4c] sm:$0xf] }
 0x2fa   :  { %2604 = vmatpush.bf16.msra.mxu3 %v3965_v0  ;;  %v3581_v31 = vor.u32 %v4215_v36, %v3578_v49 }
 0x2fb   :  { %v5324_v38 = vpack.c.bf16 %v2757_v3, %v2753_v54 }
 0x2fc   :  { %v2006_v11 = vpop.f32.mrf.mxu2  ;;  %v2079_v61 = vpop.f32.mrf.mxu3  ;;  %2385 = vmatpush.bf16.msra.mxu0 %v3581_v31 }
 0x2fd   :  { %5892 = vst [vmem:[#allocation39_spill] sm:$0xff] %v5324_v38  ;;  %v2007_v22 = vadd.f32 %v2006_v11, %v1934_v28  ;;  %v1862_v10 = vpop.f32.mrf.mxu0  ;;  %v1935_v41 = vpop.f32.mrf.mxu1 }
 0x2fe   :  { %v1863_v25 = vadd.f32 %v1862_v10, %v5231_v20 }
 0x2ff   :  { %v2080_v17 = vadd.f32 %v2079_v61, %v2007_v22 }
 0x300   :  { %v1936_v12 = vadd.f32 %v1935_v41, %v1863_v25 }
 0x301   :  { %v2761_v0 = vmax.f32 %v2080_v17, 0.0  ;;  %v5339_v17 = vld [vmem:[%s5778_s4] sm:$0xf] }
 0x302   :  { %v5342_v25 = vperm.slane %v5339_v17, 2 }
 0x304   :  { %v2008_v54 = vpop.f32.mrf.mxu2  ;;  %v2081_v63 = vpop.f32.mrf.mxu3 }
 0x305   :  { %v2009_v3 = vadd.f32 %v2008_v54, %v1936_v12  ;;  %v1865_v28 = vpop.f32.mrf.mxu0  ;;  %v1938_v9 = vpop.f32.mrf.mxu1 }
 0x306   :  { %v1866_v43 = vadd.f32 %v1865_v28, %v5231_v20  ;;  %v5895_v28 = vld [vmem:[#allocation12_spill] sm:$0xff] }
 0x307   :  { %v2082_v11 = vadd.f32 %v2081_v63, %v2009_v3  ;;  %2131 = vmatmul.bf16.gmra.mxu0 %v4903_v62 }
 0x308   :  { %v1939_v10 = vadd.f32 %v1938_v9, %v1866_v43  ;;  %2204 = vmatmul.bf16.gmra.mxu1 %v4905_v44  ;;  %v5896_v43 = vld [vmem:[#allocation13_spill] sm:$0xff]  ;;  %v5897_v9 = vld [vmem:[#allocation23_spill] sm:$0xff] }
 0x309   :  { %v2765_v22 = vmax.f32 %v2082_v11, 0.0  ;;  %2277 = vmatmul.bf16.gmra.mxu2 %v5868_v45  ;;  %2350 = vmatmul.bf16.gmra.mxu3 %v5869_v52  ;;  %v4275_v11 = vld [vmem:[#allocation2 + $0x22c] sm:$0xf] }
 0x30b   :  { %v5332_v46 = vpack.c.bf16 %v2765_v22, %v2761_v0  ;;  %v4307_v0 = vld [vmem:[#allocation2 + $0x32c] sm:$0xf]  ;;  %v5898_v22 = vld [vmem:[#allocation24_spill] sm:$0xff] }
 0x30c   :  { %v2011_v31 = vpop.f32.mrf.mxu2  ;;  %v2084_v12 = vpop.f32.mrf.mxu3 }
 0x30d   :  { %5893 = vst [vmem:[#allocation40_spill] sm:$0xff] %v5332_v46  ;;  %v2012_v49 = vadd.f32 %v2011_v31, %v1939_v10  ;;  %v1867_v36 = vpop.f32.mrf.mxu0  ;;  %v1940_v20 = vpop.f32.mrf.mxu1  ;;  %v3818_v10 = vld [vmem:[#allocation2 + $0x238] sm:$0xf0] }
 0x30e   :  { %v3821_v31 = vor.u32 %v4275_v11, %v3818_v10  ;;  %v3562_v36 = vld [vmem:[#allocation2 + $0x38] sm:$0xf0] }
 0x30f   :  { %v5334_v61 = vadd.f32 %v2084_v12, %v2012_v49  ;;  %v3946_v49 = vld [vmem:[#allocation2 + $0x338] sm:$0xf0]  ;;  %v4211_v12 = vld [vmem:[#allocation2 + $0x2c] sm:$0xf] }
 0x310   :  { %v3949_v20 = vor.u32 %v4307_v0, %v3946_v49  ;;  %2532 = vmatpush.bf16.msra.mxu2 %v3821_v31 }
 0x311   :  { %5894 = vst [vmem:[#allocation41_spill] sm:$0xff] %v5334_v61 }
 0x312   :  { %2605 = vmatpush.bf16.msra.mxu3 %v3949_v20 }
 0x314   :  { %v2013_v41 = vpop.f32.mrf.mxu2  ;;  %v2086_v16 = vpop.f32.mrf.mxu3 }
 0x315   :  { %v2097_v39 = vpop.f32.mrf.mxu0  ;;  %v2170_v3 = vpop.f32.mrf.mxu1  ;;  %v3565_v41 = vor.u32 %v4211_v12, %v3562_v36  ;;  %v4243_v16 = vld [vmem:[#allocation2 + $0x12c] sm:$0xf] }
 0x316   :  { %v2098_v54 = vadd.f32 %v2097_v39, %v5342_v25  ;;  %v3690_v39 = vld [vmem:[#allocation2 + $0x138] sm:$0xf0] }
 0x317   :  { %2136 = vmatmul.bf16.gmra.mxu0 %v5895_v28 }
 0x318   :  { %v2171_v63 = vadd.f32 %v2170_v3, %v2098_v54  ;;  %2209 = vmatmul.bf16.gmra.mxu1 %v5896_v43  ;;  %v3693_v3 = vor.u32 %v4243_v16, %v3690_v39  ;;  %2386 = vmatpush.bf16.msra.mxu0 %v3565_v41 }
 0x319   :  { %2282 = vmatmul.bf16.gmra.mxu2 %v5897_v9  ;;  %2355 = vmatmul.bf16.gmra.mxu3 %v5898_v22 }
 0x31a   :  { %2459 = vmatpush.bf16.msra.mxu1 %v3693_v3  ;;  %v3802_v3 = vld [vmem:[#allocation2 + $0x218] sm:$0xf0] }
 0x31c   :  { %v2243_v54 = vpop.f32.mrf.mxu2  ;;  %v2316_v46 = vpop.f32.mrf.mxu3 }
 0x31d   :  { %v2244_v61 = vadd.f32 %v2243_v54, %v2171_v63  ;;  %v2099_v38 = vpop.f32.mrf.mxu0  ;;  %v2172_v43 = vpop.f32.mrf.mxu1  ;;  %v4271_v54 = vld [vmem:[#allocation2 + $0x20c] sm:$0xf] }
 0x31e   :  { %v2100_v9 = vadd.f32 %v2099_v38, %v5342_v25 }
 0x31f   :  { %v2317_v11 = vadd.f32 %v2316_v46, %v2244_v61 }
 0x320   :  { %v2173_v10 = vadd.f32 %v2172_v43, %v2100_v9 }
 0x321   :  { %v2674_v63 = vmax.f32 %v2317_v11, 0.0  ;;  %v3805_v11 = vor.u32 %v4271_v54, %v3802_v3  ;;  %v4239_v54 = vld [vmem:[#allocation2 + $0x10c] sm:$0xf]  ;;  %v3674_v3 = vld [vmem:[#allocation2 + $0x118] sm:$0xf0] }
 0x323   :  { %2533 = vmatpush.bf16.msra.mxu2 %v3805_v11  ;;  %v3677_v11 = vor.u32 %v4239_v54, %v3674_v3  ;;  %v5900_v3 = vld [vmem:[#allocation27_spill] sm:$0xff] }
 0x324   :  { %v2245_v22 = vpop.f32.mrf.mxu2  ;;  %v2318_v0 = vpop.f32.mrf.mxu3 }
 0x325   :  { %v2246_v28 = vadd.f32 %v2245_v22, %v2173_v10  ;;  %v2102_v49 = vpop.f32.mrf.mxu0  ;;  %v2175_v36 = vpop.f32.mrf.mxu1  ;;  %v4303_v10 = vld [vmem:[#allocation2 + $0x30c] sm:$0xf]  ;;  %2460 = vmatpush.bf16.msra.mxu1 %v3677_v11  ;;  %v4357_v11 = vld [vmem:[%s5779_s5 + $0xb8] sm:$0xff] }
 0x326   :  { %v2103_v12 = vadd.f32 %v2102_v49, %v5342_v25 }
 0x327   :  { %v2319_v31 = vadd.f32 %v2318_v0, %v2246_v28  ;;  %2141 = vmatmul.bf16.gmra.mxu0 %v4967_v58  ;;  %v3930_v0 = vld [vmem:[#allocation2 + $0x318] sm:$0xf0]  ;;  %3230 = vmatpush.bf16.msrb.mxu2 %v4357_v11 }
 0x328   :  { %v2176_v16 = vadd.f32 %v2175_v36, %v2103_v12  ;;  %2214 = vmatmul.bf16.gmra.mxu1 %v4969_v19  ;;  %v3933_v49 = vor.u32 %v4303_v10, %v3930_v0 }
 0x329   :  { %v2678_v20 = vmax.f32 %v2319_v31, 0.0  ;;  %2287 = vmatmul.bf16.gmra.mxu2 %v5090_v26  ;;  %2360 = vmatmul.bf16.gmra.mxu3 %v5092_v51 }
 0x32a   :  { %2606 = vmatpush.bf16.msra.mxu3 %v3933_v49 }
 0x32b   :  { %v5355_v38 = vpack.c.bf16 %v2678_v20, %v2674_v63 }
 0x32c   :  { %v2248_v46 = vpop.f32.mrf.mxu2  ;;  %v2321_v43 = vpop.f32.mrf.mxu3 }
 0x32d   :  { %5899 = vst [vmem:[#allocation42_spill] sm:$0xff] %v5355_v38  ;;  %v2249_v61 = vadd.f32 %v2248_v46, %v2176_v16  ;;  %v2104_v9 = vpop.f32.mrf.mxu0  ;;  %v2177_v28 = vpop.f32.mrf.mxu1 }
 0x32e   :  { %v2105_v22 = vadd.f32 %v2104_v9, %v5342_v25 }
 0x32f   :  { %v2322_v41 = vadd.f32 %v2321_v43, %v2249_v61 }
 0x330   :  { %v2178_v39 = vadd.f32 %v2177_v28, %v2105_v22  ;;  %v4207_v22 = vld [vmem:[#allocation2 + $0xc] sm:$0xf]  ;;  %v3546_v28 = vld [vmem:[#allocation2 + $0x18] sm:$0xf0] }
 0x331   :  { %v2682_v61 = vmax.f32 %v2322_v41, 0.0 }
 0x334   :  { %v2250_v12 = vpop.f32.mrf.mxu2  ;;  %v2323_v31 = vpop.f32.mrf.mxu3 }
 0x335   :  { %v2251_v36 = vadd.f32 %v2250_v12, %v2178_v39  ;;  %v2107_v63 = vpop.f32.mrf.mxu0  ;;  %v2180_v20 = vpop.f32.mrf.mxu1  ;;  %v3549_v39 = vor.u32 %v4207_v22, %v3546_v28 }
 0x336   :  { %v2108_v16 = vadd.f32 %v2107_v63, %v5342_v25 }
 0x337   :  { %v2324_v46 = vadd.f32 %v2323_v31, %v2251_v36  ;;  %2146 = vmatmul.bf16.gmra.mxu0 %v4999_v50 }
 0x338   :  { %v2181_v9 = vadd.f32 %v2180_v20, %v2108_v16  ;;  %2219 = vmatmul.bf16.gmra.mxu1 %v5001_v13  ;;  %2387 = vmatpush.bf16.msra.mxu0 %v3549_v39 }
 0x339   :  { %v2686_v43 = vmax.f32 %v2324_v46, 0.0  ;;  %2292 = vmatmul.bf16.gmra.mxu2 %v5110_v60  ;;  %2365 = vmatmul.bf16.gmra.mxu3 %v5112_v14 }
 0x33b   :  { %v5363_v10 = vpack.c.bf16 %v2686_v43, %v2682_v61 }
 0x33c   :  { %v2253_v0 = vpop.f32.mrf.mxu2  ;;  %v2326_v12 = vpop.f32.mrf.mxu3 }
 0x33d   :  { %v2254_v49 = vadd.f32 %v2253_v0, %v2181_v9  ;;  %v2109_v41 = vpop.f32.mrf.mxu0  ;;  %v2182_v31 = vpop.f32.mrf.mxu1  ;;  %v4365_v0 = vld [vmem:[%s5779_s5 + $0xf8] sm:$0xff] }
 0x33e   :  { %v2110_v36 = vadd.f32 %v2109_v41, %v5342_v25  ;;  %3303 = vmatpush.bf16.msrb.mxu3 %v4365_v0 }
 0x33f   :  { %v2327_v63 = vadd.f32 %v2326_v12, %v2254_v49 }
 0x340   :  { %v2183_v16 = vadd.f32 %v2182_v31, %v2110_v36 }
 0x341   :  { %v2690_v9 = vmax.f32 %v2327_v63, 0.0 }
 0x344   :  { %v2255_v20 = vpop.f32.mrf.mxu2  ;;  %v2328_v38 = vpop.f32.mrf.mxu3 }
 0x345   :  { %v2256_v46 = vadd.f32 %v2255_v20, %v2183_v16  ;;  %v2112_v22 = vpop.f32.mrf.mxu0  ;;  %v2185_v54 = vpop.f32.mrf.mxu1 }
 0x346   :  { %v2113_v28 = vadd.f32 %v2112_v22, %v5342_v25  ;;  %v4349_v22 = vld [vmem:[%s5779_s5 + $0x78] sm:$0xff] }
 0x347   :  { %v2329_v61 = vadd.f32 %v2328_v38, %v2256_v46  ;;  %2151 = vmatmul.bf16.gmra.mxu0 %v5031_v23  ;;  %v4341_v46 = vld [vmem:[%s5779_s5 + $0x38] sm:$0xff]  ;;  %3157 = vmatpush.bf16.msrb.mxu1 %v4349_v22 }
 0x348   :  { %v2186_v43 = vadd.f32 %v2185_v54, %v2113_v28  ;;  %2224 = vmatmul.bf16.gmra.mxu1 %v5033_v57  ;;  %3084 = vmatpush.bf16.msrb.mxu0 %v4341_v46 }
 0x349   :  { %v2694_v39 = vmax.f32 %v2329_v61, 0.0  ;;  %2297 = vmatmul.bf16.gmra.mxu2 %v5130_v15  ;;  %2370 = vmatmul.bf16.gmra.mxu3 %v5900_v3 }
 0x34b   :  { %v5377_v38 = vpack.c.bf16 %v2694_v39, %v2690_v9 }
 0x34c   :  { %v2258_v49 = vpop.f32.mrf.mxu2  ;;  %v2331_v41 = vpop.f32.mrf.mxu3 }
 0x34d   :  { %v2259_v12 = vadd.f32 %v2258_v49, %v2186_v43  ;;  %v2114_v36 = vpop.f32.mrf.mxu0  ;;  %v2187_v63 = vpop.f32.mrf.mxu1 }
 0x34e   :  { %v2115_v31 = vadd.f32 %v2114_v36, %v5342_v25 }
 0x34f   :  { %v2332_v16 = vadd.f32 %v2331_v41, %v2259_v12 }
 0x350   :  { %v2188_v20 = vadd.f32 %v2187_v63, %v2115_v31 }
 0x351   :  { %v2698_v49 = vmax.f32 %v2332_v16, 0.0  ;;  %v4356_v16 = vld [vmem:[%s5779_s5 + $0xb0] sm:$0xff] }
 0x352   :  { %3231 = vmatpush.bf16.msrb.mxu2 %v4356_v16 }
 0x354   :  { %v2260_v28 = vpop.f32.mrf.mxu2  ;;  %v2333_v61 = vpop.f32.mrf.mxu3 }
 0x355   :  { %v2261_v54 = vadd.f32 %v2260_v28, %v2188_v20  ;;  %v2117_v43 = vpop.f32.mrf.mxu0  ;;  %v2190_v39 = vpop.f32.mrf.mxu1 }
 0x356   :  { %v2118_v9 = vadd.f32 %v2117_v43, %v5342_v25 }
 0x357   :  { %v2334_v11 = vadd.f32 %v2333_v61, %v2261_v54  ;;  %2156 = vmatmul.bf16.gmra.mxu0 %v5149_v33  ;;  %v4364_v61 = vld [vmem:[%s5779_s5 + $0xf0] sm:$0xff] }
 0x358   :  { %v2191_v0 = vadd.f32 %v2190_v39, %v2118_v9  ;;  %2229 = vmatmul.bf16.gmra.mxu1 %v5152_v47  ;;  %3304 = vmatpush.bf16.msrb.mxu3 %v4364_v61 }
 0x359   :  { %v2702_v12 = vmax.f32 %v2334_v11, 0.0  ;;  %2302 = vmatmul.bf16.gmra.mxu2 %v5154_v48  ;;  %2375 = vmatmul.bf16.gmra.mxu3 %v5156_v37 }
 0x35b   :  { %v5391_v41 = vpack.c.bf16 %v2702_v12, %v2698_v49 }
 0x35c   :  { %v2263_v36 = vpop.f32.mrf.mxu2  ;;  %v2336_v63 = vpop.f32.mrf.mxu3 }
 0x35d   :  { %v2264_v31 = vadd.f32 %v2263_v36, %v2191_v0  ;;  %v2119_v20 = vpop.f32.mrf.mxu0  ;;  %v2192_v22 = vpop.f32.mrf.mxu1 }
 0x35e   :  { %v2120_v46 = vadd.f32 %v2119_v20, %v5342_v25  ;;  %v4340_v20 = vld [vmem:[%s5779_s5 + $0x30] sm:$0xff] }
 0x35f   :  { %v2337_v28 = vadd.f32 %v2336_v63, %v2264_v31  ;;  %3085 = vmatpush.bf16.msrb.mxu0 %v4340_v20 }
 0x360   :  { %v2193_v54 = vadd.f32 %v2192_v22, %v2120_v46  ;;  %v4348_v46 = vld [vmem:[%s5779_s5 + $0x70] sm:$0xff] }
 0x361   :  { %v2706_v31 = vmax.f32 %v2337_v28, 0.0  ;;  %3158 = vmatpush.bf16.msrb.mxu1 %v4348_v46 }
 0x364   :  { %v2265_v43 = vpop.f32.mrf.mxu2  ;;  %v2338_v39 = vpop.f32.mrf.mxu3 }
 0x365   :  { %v2266_v9 = vadd.f32 %v2265_v43, %v2193_v54  ;;  %v2122_v11 = vpop.f32.mrf.mxu0  ;;  %v2195_v49 = vpop.f32.mrf.mxu1 }
 0x366   :  { %v2123_v0 = vadd.f32 %v2122_v11, %v5342_v25 }
 0x367   :  { %v2339_v12 = vadd.f32 %v2338_v39, %v2266_v9  ;;  %2388 = vmatmul.bf16.vlgmr.msra.gmra.mxu0 %v4714_v34 }
 0x368   :  { %v2196_v36 = vadd.f32 %v2195_v49, %v2123_v0  ;;  %2461 = vmatmul.bf16.vlgmr.msra.gmra.mxu1 %v4716_v35 }
 0x369   :  { %v2710_v63 = vmax.f32 %v2339_v12, 0.0  ;;  %2534 = vmatmul.bf16.vlgmr.msra.gmra.mxu2 %v4815_v5  ;;  %2607 = vmatmul.bf16.vlgmr.msra.gmra.mxu3 %v4817_v8 }
 0x36b   :  { %v5411_v22 = vpack.c.bf16 %v2710_v63, %v2706_v31 }
 0x36c   :  { %v2268_v34 = vpop.f32.mrf.mxu2  ;;  %v2341_v54 = vpop.f32.mrf.mxu3 }
 0x36d   :  { %v2269_v28 = vadd.f32 %v2268_v34, %v2196_v36  ;;  %v2124_v35 = vpop.f32.mrf.mxu0  ;;  %v2197_v16 = vpop.f32.mrf.mxu1 }
 0x36e   :  { %v2125_v5 = vadd.f32 %v2124_v35, %v5342_v25 }
 0x36f   :  { %v2342_v61 = vadd.f32 %v2341_v54, %v2269_v28 }
 0x370   :  { %v2198_v43 = vadd.f32 %v2197_v16, %v2125_v5 }
 0x371   :  { %v2714_v63 = vmax.f32 %v2342_v61, 0.0 }
 0x374   :  { %v2270_v9 = vpop.f32.mrf.mxu2  ;;  %v2343_v8 = vpop.f32.mrf.mxu3 }
 0x375   :  { %v2271_v39 = vadd.f32 %v2270_v9, %v2198_v43  ;;  %v2127_v11 = vpop.f32.mrf.mxu0  ;;  %v2200_v49 = vpop.f32.mrf.mxu1 }
 0x376   :  { %v2128_v0 = vadd.f32 %v2127_v11, %v5342_v25 }
 0x377   :  { %v2344_v12 = vadd.f32 %v2343_v8, %v2271_v39  ;;  %2393 = vmatmul.bf16.gmra.mxu0 %v4736_v55  ;;  %v4355_v55 = vld [vmem:[%s5779_s5 + $0xa8] sm:$0xff] }
 0x378   :  { %v2201_v31 = vadd.f32 %v2200_v49, %v2128_v0  ;;  %2466 = vmatmul.bf16.gmra.mxu1 %v4738_v56  ;;  %v4363_v56 = vld [vmem:[%s5779_s5 + $0xe8] sm:$0xff]  ;;  %3232 = vmatpush.bf16.msrb.mxu2 %v4355_v55 }
 0x379   :  { %v2718_v36 = vmax.f32 %v2344_v12, 0.0  ;;  %2539 = vmatmul.bf16.gmra.mxu2 %v4847_v42  ;;  %2612 = vmatmul.bf16.gmra.mxu3 %v4849_v4  ;;  %v4339_v42 = vld [vmem:[%s5779_s5 + $0x28] sm:$0xff] }
 0x37a   :  { %v4347_v4 = vld [vmem:[%s5779_s5 + $0x68] sm:$0xff]  ;;  %3305 = vmatpush.bf16.msrb.mxu3 %v4363_v56  ;;  %3086 = vmatpush.bf16.msrb.mxu0 %v4339_v42 }
 0x37b   :  { %v5419_v20 = vpack.c.bf16 %v2718_v36, %v2714_v63  ;;  %3159 = vmatpush.bf16.msrb.mxu1 %v4347_v4 }
 0x37c   :  { %v2273_v46 = vpop.f32.mrf.mxu2  ;;  %v2346_v28 = vpop.f32.mrf.mxu3 }
 0x37d   :  { %v2274_v34 = vadd.f32 %v2273_v46, %v2201_v31  ;;  %v2129_v54 = vpop.f32.mrf.mxu0  ;;  %v2202_v5 = vpop.f32.mrf.mxu1 }
 0x37e   :  { %v2130_v35 = vadd.f32 %v2129_v54, %v5342_v25 }
 0x37f   :  { %v2347_v16 = vadd.f32 %v2346_v28, %v2274_v34 }
 0x380   :  { %v2203_v43 = vadd.f32 %v2202_v5, %v2130_v35 }
 0x381   :  { %v2722_v31 = vmax.f32 %v2347_v16, 0.0 }
 0x384   :  { %v2275_v61 = vpop.f32.mrf.mxu2  ;;  %v2348_v39 = vpop.f32.mrf.mxu3 }
 0x385   :  { %v2276_v9 = vadd.f32 %v2275_v61, %v2203_v43  ;;  %v2132_v8 = vpop.f32.mrf.mxu0  ;;  %v2205_v0 = vpop.f32.mrf.mxu1 }
 0x386   :  { %v2133_v11 = vadd.f32 %v2132_v8, %v5342_v25  ;;  %v4362_v8 = vld [vmem:[%s5779_s5 + $0xe0] sm:$0xff] }
 0x387   :  { %v2349_v49 = vadd.f32 %v2348_v39, %v2276_v9  ;;  %2398 = vmatmul.bf16.gmra.mxu0 %v4758_v29  ;;  %v4354_v39 = vld [vmem:[%s5779_s5 + $0xa0] sm:$0xff]  ;;  %3306 = vmatpush.bf16.msrb.mxu3 %v4362_v8 }
 0x388   :  { %v2206_v12 = vadd.f32 %v2205_v0, %v2133_v11  ;;  %2471 = vmatmul.bf16.gmra.mxu1 %v4760_v30  ;;  %3233 = vmatpush.bf16.msrb.mxu2 %v4354_v39 }
 0x389   :  { %v2726_v63 = vmax.f32 %v2349_v49, 0.0  ;;  %2544 = vmatmul.bf16.gmra.mxu2 %v4879_v24  ;;  %2617 = vmatmul.bf16.gmra.mxu3 %v4881_v32 }
 0x38b   :  { %v5439_v36 = vpack.c.bf16 %v2726_v63, %v2722_v31 }
 0x38c   :  { %v2278_v46 = vpop.f32.mrf.mxu2  ;;  %v2351_v28 = vpop.f32.mrf.mxu3 }
 0x38d   :  { %v2279_v34 = vadd.f32 %v2278_v46, %v2206_v12  ;;  %v2134_v54 = vpop.f32.mrf.mxu0  ;;  %v2207_v5 = vpop.f32.mrf.mxu1  ;;  %v4338_v46 = vld [vmem:[%s5779_s5 + $0x20] sm:$0xff] }
 0x38e   :  { %v2135_v35 = vadd.f32 %v2134_v54, %v5342_v25  ;;  %3087 = vmatpush.bf16.msrb.mxu0 %v4338_v46  ;;  %v5901_v46 = vld [vmem:[#allocation16_spill] sm:$0xff] }
 0x38f   :  { %v2352_v43 = vadd.f32 %v2351_v28, %v2279_v34 }
 0x390   :  { %v2208_v55 = vadd.f32 %v2207_v5, %v2135_v35 }
 0x391   :  { %v2730_v61 = vmax.f32 %v2352_v43, 0.0 }
 0x394   :  { %v2280_v29 = vpop.f32.mrf.mxu2  ;;  %v2353_v56 = vpop.f32.mrf.mxu3 }
 0x395   :  { %v2281_v16 = vadd.f32 %v2280_v29, %v2208_v55  ;;  %v2137_v42 = vpop.f32.mrf.mxu0  ;;  %v2210_v24 = vpop.f32.mrf.mxu1 }
 0x396   :  { %v2138_v30 = vadd.f32 %v2137_v42, %v5342_v25 }
 0x397   :  { %v2354_v4 = vadd.f32 %v2353_v56, %v2281_v16  ;;  %2403 = vmatmul.bf16.gmra.mxu0 %v4777_v1 }
 0x398   :  { %v2211_v32 = vadd.f32 %v2210_v24, %v2138_v30  ;;  %2476 = vmatmul.bf16.gmra.mxu1 %v4779_v2 }
 0x399   :  { %v2734_v9 = vmax.f32 %v2354_v4, 0.0  ;;  %2549 = vmatmul.bf16.gmra.mxu2 %v5851_v21  ;;  %2622 = vmatmul.bf16.gmra.mxu3 %v5852_v59  ;;  %v4346_v59 = vld [vmem:[%s5779_s5 + $0x60] sm:$0xff] }
 0x39a   :  { %3160 = vmatpush.bf16.msrb.mxu1 %v4346_v59  ;;  %v4337_v59 = vld [vmem:[%s5779_s5 + $0x18] sm:$0xff] }
 0x39b   :  { %v5453_v11 = vpack.c.bf16 %v2734_v9, %v2730_v61  ;;  %3088 = vmatpush.bf16.msrb.mxu0 %v4337_v59 }
 0x39c   :  { %v2283_v1 = vpop.f32.mrf.mxu2  ;;  %v2356_v49 = vpop.f32.mrf.mxu3 }
 0x39d   :  { %v2284_v0 = vadd.f32 %v2283_v1, %v2211_v32  ;;  %v2139_v2 = vpop.f32.mrf.mxu0  ;;  %v2212_v12 = vpop.f32.mrf.mxu1 }
 0x39e   :  { %v2140_v21 = vadd.f32 %v2139_v2, %v5342_v25 }
 0x39f   :  { %v2357_v31 = vadd.f32 %v2356_v49, %v2284_v0 }
 0x3a0   :  { %v2213_v63 = vadd.f32 %v2212_v12, %v2140_v21 }
 0x3a1   :  { %v2738_v16 = vmax.f32 %v2357_v31, 0.0 }
 0x3a4   :  { %v2285_v34 = vpop.f32.mrf.mxu2  ;;  %v2358_v54 = vpop.f32.mrf.mxu3 }
 0x3a5   :  { %v2286_v28 = vadd.f32 %v2285_v34, %v2213_v63  ;;  %v2142_v35 = vpop.f32.mrf.mxu0  ;;  %v2215_v43 = vpop.f32.mrf.mxu1  ;;  %v4345_v34 = vld [vmem:[%s5779_s5 + $0x58] sm:$0xff] }
 0x3a6   :  { %v2143_v5 = vadd.f32 %v2142_v35, %v5342_v25  ;;  %3161 = vmatpush.bf16.msrb.mxu1 %v4345_v34 }
 0x3a7   :  { %v2359_v55 = vadd.f32 %v2358_v54, %v2286_v28  ;;  %2408 = vmatmul.bf16.gmra.mxu0 %v5854_v7  ;;  %v4353_v7 = vld [vmem:[%s5779_s5 + $0x98] sm:$0xff]  ;;  %v5902_v28 = vld [vmem:[#allocation17_spill] sm:$0xff] }
 0x3a8   :  { %v2216_v29 = vadd.f32 %v2215_v43, %v2143_v5  ;;  %2481 = vmatmul.bf16.gmra.mxu1 %v5855_v6  ;;  %v4361_v6 = vld [vmem:[%s5779_s5 + $0xd8] sm:$0xff]  ;;  %3234 = vmatpush.bf16.msrb.mxu2 %v4353_v7 }
 0x3a9   :  { %v2742_v56 = vmax.f32 %v2359_v55, 0.0  ;;  %2554 = vmatmul.bf16.gmra.mxu2 %v5856_v27  ;;  %2627 = vmatmul.bf16.gmra.mxu3 %v5857_v40 }
 0x3aa   :  { %3307 = vmatpush.bf16.msrb.mxu3 %v4361_v6 }
 0x3ab   :  { %v5467_v42 = vpack.c.bf16 %v2742_v56, %v2738_v16 }
 0x3ac   :  { %v2288_v30 = vpop.f32.mrf.mxu2  ;;  %v2361_v4 = vpop.f32.mrf.mxu3 }
 0x3ad   :  { %v2289_v24 = vadd.f32 %v2288_v30, %v2216_v29  ;;  %v2144_v32 = vpop.f32.mrf.mxu0  ;;  %v2217_v9 = vpop.f32.mrf.mxu1 }
 0x3ae   :  { %v2145_v61 = vadd.f32 %v2144_v32, %v5342_v25 }
 0x3af   :  { %v2362_v39 = vadd.f32 %v2361_v4, %v2289_v24 }
 0x3b0   :  { %v2218_v8 = vadd.f32 %v2217_v9, %v2145_v61 }
 0x3b1   :  { %v2746_v31 = vmax.f32 %v2362_v39, 0.0 }
 0x3b4   :  { %v2290_v27 = vpop.f32.mrf.mxu2  ;;  %v2363_v1 = vpop.f32.mrf.mxu3 }
 0x3b5   :  { %v2291_v40 = vadd.f32 %v2290_v27, %v2218_v8  ;;  %v2147_v0 = vpop.f32.mrf.mxu0  ;;  %v2220_v2 = vpop.f32.mrf.mxu1  ;;  %v5903_v8 = vld [vmem:[#allocation8_spill] sm:$0xff]  ;;  %v5904_v27 = vld [vmem:[#allocation9_spill] sm:$0xff] }
 0x3b6   :  { %v2148_v49 = vadd.f32 %v2147_v0, %v5342_v25  ;;  %v4352_v0 = vld [vmem:[%s5779_s5 + $0x90] sm:$0xff] }
 0x3b7   :  { %v2364_v21 = vadd.f32 %v2363_v1, %v2291_v40  ;;  %2413 = vmatmul.bf16.gmra.mxu0 %v4839_v53  ;;  %v5905_v40 = vld [vmem:[#allocation18_spill] sm:$0xff]  ;;  %v5906_v1 = vld [vmem:[#allocation19_spill] sm:$0xff]  ;;  %3235 = vmatpush.bf16.msrb.mxu2 %v4352_v0  ;;  %v5908_v0 = vld [vmem:[#allocation13_spill] sm:$0xff] }
 0x3b8   :  { %v2221_v12 = vadd.f32 %v2220_v2, %v2148_v49  ;;  %2486 = vmatmul.bf16.gmra.mxu1 %v5859_v18  ;;  %v4360_v49 = vld [vmem:[%s5779_s5 + $0xd0] sm:$0xff] }
 0x3b9   :  { %v2750_v63 = vmax.f32 %v2364_v21, 0.0  ;;  %2559 = vmatmul.bf16.gmra.mxu2 %v5901_v46  ;;  %2632 = vmatmul.bf16.gmra.mxu3 %v5902_v28 }
 0x3ba   :  { %3308 = vmatpush.bf16.msrb.mxu3 %v4360_v49  ;;  %v5909_v49 = vld [vmem:[#allocation23_spill] sm:$0xff] }
 0x3bb   :  { %v5487_v54 = vpack.c.bf16 %v2750_v63, %v2746_v31 }
 0x3bc   :  { %v2293_v53 = vpop.f32.mrf.mxu2  ;;  %v2366_v5 = vpop.f32.mrf.mxu3 }
 0x3bd   :  { %v2294_v35 = vadd.f32 %v2293_v53, %v2221_v12  ;;  %v2149_v18 = vpop.f32.mrf.mxu0  ;;  %v2222_v55 = vpop.f32.mrf.mxu1  ;;  %v4336_v53 = vld [vmem:[%s5779_s5 + $0x10] sm:$0xff] }
 0x3be   :  { %v2150_v43 = vadd.f32 %v2149_v18, %v5342_v25  ;;  %3089 = vmatpush.bf16.msrb.mxu0 %v4336_v53 }
 0x3bf   :  { %v2367_v29 = vadd.f32 %v2366_v5, %v2294_v35  ;;  %v4344_v35 = vld [vmem:[%s5779_s5 + $0x50] sm:$0xff] }
 0x3c0   :  { %v2223_v16 = vadd.f32 %v2222_v55, %v2150_v43  ;;  %3162 = vmatpush.bf16.msrb.mxu1 %v4344_v35 }
 0x3c1   :  { %v2754_v7 = vmax.f32 %v2367_v29, 0.0 }
 0x3c4   :  { %v2295_v56 = vpop.f32.mrf.mxu2  ;;  %v2368_v24 = vpop.f32.mrf.mxu3 }
 0x3c5   :  { %v2296_v30 = vadd.f32 %v2295_v56, %v2223_v16  ;;  %v2152_v4 = vpop.f32.mrf.mxu0  ;;  %v2225_v61 = vpop.f32.mrf.mxu1 }
 0x3c6   :  { %v2153_v32 = vadd.f32 %v2152_v4, %v5342_v25 }
 0x3c7   :  { %v2369_v9 = vadd.f32 %v2368_v24, %v2296_v30  ;;  %2418 = vmatmul.bf16.gmra.mxu0 %v5903_v8 }
 0x3c8   :  { %v2226_v39 = vadd.f32 %v2225_v61, %v2153_v32  ;;  %2491 = vmatmul.bf16.gmra.mxu1 %v5904_v27 }
 0x3c9   :  { %v2758_v6 = vmax.f32 %v2369_v9, 0.0  ;;  %2564 = vmatmul.bf16.gmra.mxu2 %v5905_v40  ;;  %2637 = vmatmul.bf16.gmra.mxu3 %v5906_v1 }
 0x3cb   :  { %v5501_v2 = vpack.c.bf16 %v2758_v6, %v2754_v7  ;;  %v5520_v6 = vperm.slane %v5339_v17, 3  ;;  %v4359_v17 = vld [vmem:[%s5779_s5 + $0xc8] sm:$0xff] }
 0x3cc   :  { %v2298_v21 = vpop.f32.mrf.mxu2  ;;  %v2371_v31 = vpop.f32.mrf.mxu3  ;;  %3309 = vmatpush.bf16.msrb.mxu3 %v4359_v17 }
 0x3cd   :  { %v2299_v12 = vadd.f32 %v2298_v21, %v2226_v39  ;;  %v2154_v63 = vpop.f32.mrf.mxu0  ;;  %v2227_v59 = vpop.f32.mrf.mxu1  ;;  %v4351_v21 = vld [vmem:[%s5779_s5 + $0x88] sm:$0xff] }
 0x3ce   :  { %v2155_v46 = vadd.f32 %v2154_v63, %v5342_v25  ;;  %v4343_v63 = vld [vmem:[%s5779_s5 + $0x48] sm:$0xff]  ;;  %3236 = vmatpush.bf16.msrb.mxu2 %v4351_v21 }
 0x3cf   :  { %v2372_v34 = vadd.f32 %v2371_v31, %v2299_v12  ;;  %v5910_v12 = vld [vmem:[#allocation24_spill] sm:$0xff]  ;;  %v4335_v31 = vld [vmem:[%s5779_s5 + $0x8] sm:$0xff]  ;;  %3163 = vmatpush.bf16.msrb.mxu1 %v4343_v63 }
 0x3d0   :  { %v2228_v28 = vadd.f32 %v2227_v59, %v2155_v46  ;;  %3090 = vmatpush.bf16.msrb.mxu0 %v4335_v31 }
 0x3d1   :  { %v2762_v24 = vmax.f32 %v2372_v34, 0.0 }
 0x3d4   :  { %v2300_v5 = vpop.f32.mrf.mxu2  ;;  %v2373_v43 = vpop.f32.mrf.mxu3 }
 0x3d5   :  { %v2301_v18 = vadd.f32 %v2300_v5, %v2228_v28  ;;  %v2157_v55 = vpop.f32.mrf.mxu0  ;;  %v2230_v16 = vpop.f32.mrf.mxu1 }
 0x3d6   :  { %v2158_v29 = vadd.f32 %v2157_v55, %v5342_v25 }
 0x3d7   :  { %v2374_v56 = vadd.f32 %v2373_v43, %v2301_v18  ;;  %2423 = vmatmul.bf16.gmra.mxu0 %v4903_v62 }
 0x3d8   :  { %v2231_v30 = vadd.f32 %v2230_v16, %v2158_v29  ;;  %2496 = vmatmul.bf16.gmra.mxu1 %v4905_v44 }
 0x3d9   :  { %v2766_v4 = vmax.f32 %v2374_v56, 0.0  ;;  %2569 = vmatmul.bf16.gmra.mxu2 %v5868_v45  ;;  %2642 = vmatmul.bf16.gmra.mxu3 %v5869_v52  ;;  %v5907_v52 = vld [vmem:[#allocation12_spill] sm:$0xff] }
 0x3db   :  { %v5515_v32 = vpack.c.bf16 %v2766_v4, %v2762_v24 }
 0x3dc   :  { %v2303_v61 = vpop.f32.mrf.mxu2  ;;  %v2376_v39 = vpop.f32.mrf.mxu3 }
 0x3dd   :  { %v2304_v9 = vadd.f32 %v2303_v61, %v2231_v30  ;;  %v2159_v8 = vpop.f32.mrf.mxu0  ;;  %v2232_v25 = vpop.f32.mrf.mxu1 }
 0x3df   :  { %v5517_v7 = vadd.f32 %v2376_v39, %v2304_v9 }
 0x3e4   :  { %v2305_v62 = vpop.f32.mrf.mxu2  ;;  %v2378_v27 = vpop.f32.mrf.mxu3 }
 0x3e5   :  { %v2389_v40 = vpop.f32.mrf.mxu0  ;;  %v2462_v45 = vpop.f32.mrf.mxu1 }
 0x3e6   :  { %v2390_v44 = vadd.f32 %v2389_v40, %v5520_v6 }
 0x3e7   :  { %2428 = vmatmul.bf16.gmra.mxu0 %v5907_v52 }
 0x3e8   :  { %v2463_v1 = vadd.f32 %v2462_v45, %v2390_v44  ;;  %2501 = vmatmul.bf16.gmra.mxu1 %v5908_v0 }
 0x3e9   :  { %2574 = vmatmul.bf16.gmra.mxu2 %v5909_v49  ;;  %2647 = vmatmul.bf16.gmra.mxu3 %v5910_v12 }
 0x3ec   :  { %v2535_v46 = vpop.f32.mrf.mxu2  ;;  %v2608_v34 = vpop.f32.mrf.mxu3 }
 0x3ed   :  { %v2536_v59 = vadd.f32 %v2535_v46, %v2463_v1  ;;  %v2391_v28 = vpop.f32.mrf.mxu0  ;;  %v2464_v35 = vpop.f32.mrf.mxu1  ;;  %v4334_v46 = vld [vmem:[%s5779_s5] sm:$0xff] }
 0x3ee   :  { %v2392_v53 = vadd.f32 %v2391_v28, %v5520_v6  ;;  %3091 = vmatpush.bf16.msrb.mxu0 %v4334_v46 }
 0x3ef   :  { %v2609_v5 = vadd.f32 %v2608_v34, %v2536_v59  ;;  %v4342_v59 = vld [vmem:[%s5779_s5 + $0x40] sm:$0xff] }
 0x3f0   :  { %v2465_v18 = vadd.f32 %v2464_v35, %v2392_v53  ;;  %3164 = vmatpush.bf16.msrb.mxu1 %v4342_v59 }
 0x3f1   :  { %v2675_v61 = vmax.f32 %v2609_v5, 0.0 }
 0x3f4   :  { %v2537_v43 = vpop.f32.mrf.mxu2  ;;  %v2610_v29 = vpop.f32.mrf.mxu3 }
 0x3f5   :  { %v2538_v55 = vadd.f32 %v2537_v43, %v2465_v18  ;;  %v2394_v16 = vpop.f32.mrf.mxu0  ;;  %v2467_v30 = vpop.f32.mrf.mxu1 }
 0x3f6   :  { %v2395_v56 = vadd.f32 %v2394_v16, %v5520_v6 }
 0x3f7   :  { %v2611_v24 = vadd.f32 %v2610_v29, %v2538_v55  ;;  %2433 = vmatmul.bf16.gmra.mxu0 %v4967_v58  ;;  %v4350_v58 = vld [vmem:[%s5779_s5 + $0x80] sm:$0xff] }
 0x3f8   :  { %v2468_v4 = vadd.f32 %v2467_v30, %v2395_v56  ;;  %2506 = vmatmul.bf16.gmra.mxu1 %v4969_v19  ;;  %v4358_v19 = vld [vmem:[%s5779_s5 + $0xc0] sm:$0xff]  ;;  %3237 = vmatpush.bf16.msrb.mxu2 %v4350_v58 }
 0x3f9   :  { %v2679_v9 = vmax.f32 %v2611_v24, 0.0  ;;  %2579 = vmatmul.bf16.gmra.mxu2 %v5090_v26  ;;  %2652 = vmatmul.bf16.gmra.mxu3 %v5092_v51 }
 0x3fa   :  { %3310 = vmatpush.bf16.msrb.mxu3 %v4358_v19 }
 0x3fb   :  { %v5545_v39 = vpack.c.bf16 %v2679_v9, %v2675_v61 }
 0x3fc   :  { %v2540_v8 = vpop.f32.mrf.mxu2  ;;  %v2613_v62 = vpop.f32.mrf.mxu3 }
 0x3fd   :  { %v2541_v25 = vadd.f32 %v2540_v8, %v2468_v4  ;;  %v2396_v27 = vpop.f32.mrf.mxu0  ;;  %v2469_v44 = vpop.f32.mrf.mxu1 }
 0x3fe   :  { %v2397_v40 = vadd.f32 %v2396_v27, %v5520_v6 }
 0x3ff   :  { %v2614_v45 = vadd.f32 %v2613_v62, %v2541_v25 }
 0x400   :  { %v2470_v1 = vadd.f32 %v2469_v44, %v2397_v40 }
 0x401   :  { %v2683_v31 = vmax.f32 %v2614_v45, 0.0 }
 0x404   :  { %v2542_v26 = vpop.f32.mrf.mxu2  ;;  %v2615_v52 = vpop.f32.mrf.mxu3 }
 0x405   :  { %v2543_v51 = vadd.f32 %v2542_v26, %v2470_v1  ;;  %v2399_v0 = vpop.f32.mrf.mxu0  ;;  %v2472_v21 = vpop.f32.mrf.mxu1 }
 0x406   :  { %v2400_v49 = vadd.f32 %v2399_v0, %v5520_v6 }
 0x407   :  { %v2616_v17 = vadd.f32 %v2615_v52, %v2543_v51  ;;  %2438 = vmatmul.bf16.gmra.mxu0 %v4999_v50 }
 0x408   :  { %v2473_v12 = vadd.f32 %v2472_v21, %v2400_v49  ;;  %2511 = vmatmul.bf16.gmra.mxu1 %v5001_v13 }
 0x409   :  { %v2687_v63 = vmax.f32 %v2616_v17, 0.0  ;;  %2584 = vmatmul.bf16.gmra.mxu2 %v5110_v60  ;;  %2657 = vmatmul.bf16.gmra.mxu3 %v5112_v14 }
 0x40b   :  { %v5565_v34 = vpack.c.bf16 %v2687_v63, %v2683_v31 }
 0x40c   :  { %v2545_v50 = vpop.f32.mrf.mxu2  ;;  %v2618_v53 = vpop.f32.mrf.mxu3 }
 0x40d   :  { %v2546_v28 = vadd.f32 %v2545_v50, %v2473_v12  ;;  %v2401_v13 = vpop.f32.mrf.mxu0  ;;  %v2474_v35 = vpop.f32.mrf.mxu1 }
 0x40e   :  { %v2402_v60 = vadd.f32 %v2401_v13, %v5520_v6 }
 0x40f   :  { %v2619_v5 = vadd.f32 %v2618_v53, %v2546_v28 }
 0x410   :  { %v2475_v18 = vadd.f32 %v2474_v35, %v2402_v60  ;;  %v5911_v35 = vld [vmem:[#allocation25_spill] sm:$0xff] }
 0x411   :  { %v2691_v4 = vmax.f32 %v2619_v5, 0.0 }
 0x414   :  { %v2547_v43 = vpop.f32.mrf.mxu2  ;;  %v2620_v29 = vpop.f32.mrf.mxu3 }
 0x415   :  { %v2548_v55 = vadd.f32 %v2547_v43, %v2475_v18  ;;  %v2404_v16 = vpop.f32.mrf.mxu0  ;;  %v2477_v14 = vpop.f32.mrf.mxu1  ;;  %v5912_v43 = vld [vmem:[#allocation7_spill] sm:$0xff] }
 0x416   :  { %v2405_v56 = vadd.f32 %v2404_v16, %v5520_v6 }
 0x417   :  { %v2621_v30 = vadd.f32 %v2620_v29, %v2548_v55  ;;  %2443 = vmatmul.bf16.gmra.mxu0 %v5031_v23  ;;  %v5913_v55 = vld [vmem:[#allocation42_spill] sm:$0xff] }
 0x418   :  { %v2478_v24 = vadd.f32 %v2477_v14, %v2405_v56  ;;  %2516 = vmatmul.bf16.gmra.mxu1 %v5033_v57 }
 0x419   :  { %v2695_v61 = vmax.f32 %v2621_v30, 0.0  ;;  %2589 = vmatmul.bf16.gmra.mxu2 %v5130_v15  ;;  %2662 = vmatmul.bf16.gmra.mxu3 %v5900_v3 }
 0x41b   :  { %v5573_v9 = vpack.c.bf16 %v2695_v61, %v2691_v4 }
 0x41c   :  { %v2550_v8 = vpop.f32.mrf.mxu2  ;;  %v2623_v62 = vpop.f32.mrf.mxu3 }
 0x41d   :  { %v2551_v25 = vadd.f32 %v2550_v8, %v2478_v24  ;;  %v2406_v27 = vpop.f32.mrf.mxu0  ;;  %v2479_v44 = vpop.f32.mrf.mxu1 }
 0x41e   :  { %v2407_v40 = vadd.f32 %v2406_v27, %v5520_v6 }
 0x41f   :  { %v2624_v45 = vadd.f32 %v2623_v62, %v2551_v25 }
 0x420   :  { %v2480_v1 = vadd.f32 %v2479_v44, %v2407_v40 }
 0x421   :  { %v2699_v52 = vmax.f32 %v2624_v45, 0.0 }
 0x424   :  { %v2552_v23 = vpop.f32.mrf.mxu2  ;;  %v2625_v19 = vpop.f32.mrf.mxu3 }
 0x425   :  { %v2553_v58 = vadd.f32 %v2552_v23, %v2480_v1  ;;  %v2409_v26 = vpop.f32.mrf.mxu0  ;;  %v2482_v15 = vpop.f32.mrf.mxu1  ;;  %v5914_v23 = vld [vmem:[#allocation26_spill] sm:$0xff] }
 0x426   :  { %v2410_v57 = vadd.f32 %v2409_v26, %v5520_v6  ;;  %v5915_v26 = vld [vmem:[#allocation20_spill] sm:$0xff] }
 0x427   :  { %v2626_v51 = vadd.f32 %v2625_v19, %v2553_v58  ;;  %2448 = vmatmul.bf16.gmra.mxu0 %v5149_v33 }
 0x428   :  { %v2483_v3 = vadd.f32 %v2482_v15, %v2410_v57  ;;  %2521 = vmatmul.bf16.gmra.mxu1 %v5152_v47 }
 0x429   :  { %v2703_v0 = vmax.f32 %v2626_v51, 0.0  ;;  %2594 = vmatmul.bf16.gmra.mxu2 %v5154_v48  ;;  %2667 = vmatmul.bf16.gmra.mxu3 %v5156_v37 }
 0x42b   :  { %v5581_v49 = vpack.c.bf16 %v2703_v0, %v2699_v52 }
 0x42c   :  { %v2555_v21 = vpop.f32.mrf.mxu2  ;;  %v2628_v12 = vpop.f32.mrf.mxu3 }
 0x42d   :  { %v2556_v17 = vadd.f32 %v2555_v21, %v2483_v3  ;;  %v2411_v31 = vpop.f32.mrf.mxu0  ;;  %v2484_v46 = vpop.f32.mrf.mxu1 }
 0x42e   :  { %v2412_v63 = vadd.f32 %v2411_v31, %v5520_v6 }
 0x42f   :  { %v2629_v59 = vadd.f32 %v2628_v12, %v2556_v17 }
 0x430   :  { %v2485_v50 = vadd.f32 %v2484_v46, %v2412_v63 }
 0x431   :  { %v2707_v5 = vmax.f32 %v2629_v59, 0.0 }
 0x434   :  { %v2557_v33 = vpop.f32.mrf.mxu2  ;;  %v2630_v53 = vpop.f32.mrf.mxu3 }
 0x435   :  { %v2558_v28 = vadd.f32 %v2557_v33, %v2485_v50  ;;  %v2414_v13 = vpop.f32.mrf.mxu0  ;;  %v2487_v48 = vpop.f32.mrf.mxu1 }
 0x436   :  { %v2415_v47 = vadd.f32 %v2414_v13, %v5520_v6 }
 0x437   :  { %v2631_v60 = vadd.f32 %v2630_v53, %v2558_v28  ;;  %3092 = vmatmul.bf16.vlgmr.msrb.gmra.mxu0 %v5911_v35  ;;  %v5916_v28 = vld [vmem:[#allocation28_spill] sm:$0xff] }
 0x438   :  { %v2488_v37 = vadd.f32 %v2487_v48, %v2415_v47  ;;  %3165 = vmatmul.bf16.vlgmr.msrb.gmra.mxu1 %v5912_v43  ;;  %v5917_v47 = vld [vmem:[#allocation21_spill] sm:$0xff] }
 0x439   :  { %v2711_v18 = vmax.f32 %v2631_v60, 0.0  ;;  %3238 = vmatmul.bf16.vlgmr.msrb.gmra.mxu2 %v5913_v55  ;;  %3311 = vmatmul.bf16.vlgmr.msrb.gmra.mxu3 %v5545_v39 }
 0x43b   :  { %v5589_v29 = vpack.c.bf16 %v2711_v18, %v2707_v5 }
 0x43c   :  { %v2560_v16 = vpop.f32.mrf.mxu2  ;;  %v2633_v14 = vpop.f32.mrf.mxu3 }
 0x43d   :  { %v2561_v56 = vadd.f32 %v2560_v16, %v2488_v37  ;;  %v2416_v30 = vpop.f32.mrf.mxu0  ;;  %v2489_v4 = vpop.f32.mrf.mxu1 }
 0x43e   :  { %v2417_v24 = vadd.f32 %v2416_v30, %v5520_v6 }
 0x43f   :  { %v2634_v61 = vadd.f32 %v2633_v14, %v2561_v56 }
 0x440   :  { %v2490_v8 = vadd.f32 %v2489_v4, %v2417_v24 }
 0x441   :  { %v2715_v58 = vmax.f32 %v2634_v61, 0.0 }
 0x444   :  { %v2562_v25 = vpop.f32.mrf.mxu2  ;;  %v2635_v27 = vpop.f32.mrf.mxu3 }
 0x445   :  { %v2563_v62 = vadd.f32 %v2562_v25, %v2490_v8  ;;  %v2419_v40 = vpop.f32.mrf.mxu0  ;;  %v2492_v45 = vpop.f32.mrf.mxu1  ;;  %v5918_v8 = vld [vmem:[#allocation29_spill] sm:$0xff] }
 0x446   :  { %v2420_v44 = vadd.f32 %v2419_v40, %v5520_v6 }
 0x447   :  { %v2636_v1 = vadd.f32 %v2635_v27, %v2563_v62  ;;  %3097 = vmatmul.bf16.gmra.mxu0 %v5914_v23  ;;  %v5919_v27 = vld [vmem:[#allocation22_spill] sm:$0xff] }
 0x448   :  { %v2493_v39 = vadd.f32 %v2492_v45, %v2420_v44  ;;  %3170 = vmatmul.bf16.gmra.mxu1 %v5915_v26 }
 0x449   :  { %v2719_v19 = vmax.f32 %v2636_v1, 0.0  ;;  %3243 = vmatmul.bf16.gmra.mxu2 %v5363_v10  ;;  %3316 = vmatmul.bf16.gmra.mxu3 %v5565_v34 }
 0x44b   :  { %v5597_v57 = vpack.c.bf16 %v2719_v19, %v2715_v58 }
 0x44c   :  { %v2565_v15 = vpop.f32.mrf.mxu2  ;;  %v2638_v3 = vpop.f32.mrf.mxu3 }
 0x44d   :  { %v2566_v51 = vadd.f32 %v2565_v15, %v2493_v39  ;;  %v2421_v52 = vpop.f32.mrf.mxu0  ;;  %v2494_v21 = vpop.f32.mrf.mxu1 }
 0x44e   :  { %v2422_v0 = vadd.f32 %v2421_v52, %v5520_v6 }
 0x44f   :  { %v2639_v17 = vadd.f32 %v2638_v3, %v2566_v51 }
 0x450   :  { %v2495_v12 = vadd.f32 %v2494_v21, %v2422_v0 }
 0x451   :  { %v2723_v53 = vmax.f32 %v2639_v17, 0.0  ;;  %v5920_v17 = vld [vmem:[#allocation30_spill] sm:$0xff] }
 0x454   :  { %v2567_v31 = vpop.f32.mrf.mxu2  ;;  %v2640_v46 = vpop.f32.mrf.mxu3 }
 0x455   :  { %v2568_v63 = vadd.f32 %v2567_v31, %v2495_v12  ;;  %v2424_v59 = vpop.f32.mrf.mxu0  ;;  %v2497_v10 = vpop.f32.mrf.mxu1 }
 0x456   :  { %v2425_v50 = vadd.f32 %v2424_v59, %v5520_v6 }
 0x457   :  { %v2641_v33 = vadd.f32 %v2640_v46, %v2568_v63  ;;  %3102 = vmatmul.bf16.gmra.mxu0 %v5916_v28  ;;  %v5921_v63 = vld [vmem:[#allocation33_spill] sm:$0xff] }
 0x458   :  { %v2498_v34 = vadd.f32 %v2497_v10, %v2425_v50  ;;  %3175 = vmatmul.bf16.gmra.mxu1 %v5917_v47 }
 0x459   :  { %v2727_v13 = vmax.f32 %v2641_v33, 0.0  ;;  %3248 = vmatmul.bf16.gmra.mxu2 %v5377_v38  ;;  %3321 = vmatmul.bf16.gmra.mxu3 %v5573_v9 }
 0x45b   :  { %v5605_v48 = vpack.c.bf16 %v2727_v13, %v2723_v53 }
 0x45c   :  { %v2570_v60 = vpop.f32.mrf.mxu2  ;;  %v2643_v35 = vpop.f32.mrf.mxu3 }
 0x45d   :  { %v2571_v37 = vadd.f32 %v2570_v60, %v2498_v34  ;;  %v2426_v5 = vpop.f32.mrf.mxu0  ;;  %v2499_v43 = vpop.f32.mrf.mxu1 }
 0x45e   :  { %v2427_v18 = vadd.f32 %v2426_v5, %v5520_v6 }
 0x45f   :  { %v2644_v55 = vadd.f32 %v2643_v35, %v2571_v37 }
 0x460   :  { %v2500_v16 = vadd.f32 %v2499_v43, %v2427_v18  ;;  %v5922_v43 = vld [vmem:[#allocation31_spill] sm:$0xff] }
 0x461   :  { %v2731_v25 = vmax.f32 %v2644_v55, 0.0 }
 0x464   :  { %v2572_v56 = vpop.f32.mrf.mxu2  ;;  %v2645_v30 = vpop.f32.mrf.mxu3 }
 0x465   :  { %v2573_v14 = vadd.f32 %v2572_v56, %v2500_v16  ;;  %v2429_v24 = vpop.f32.mrf.mxu0  ;;  %v2502_v38 = vpop.f32.mrf.mxu1  ;;  %v5923_v56 = vld [vmem:[#allocation34_spill] sm:$0xff] }
 0x466   :  { %v2430_v4 = vadd.f32 %v2429_v24, %v5520_v6 }
 0x467   :  { %v2646_v61 = vadd.f32 %v2645_v30, %v2573_v14  ;;  %3107 = vmatmul.bf16.gmra.mxu0 %v5918_v8 }
 0x468   :  { %v2503_v9 = vadd.f32 %v2502_v38, %v2430_v4  ;;  %3180 = vmatmul.bf16.gmra.mxu1 %v5919_v27 }
 0x469   :  { %v2735_v62 = vmax.f32 %v2646_v61, 0.0  ;;  %3253 = vmatmul.bf16.gmra.mxu2 %v5391_v41  ;;  %3326 = vmatmul.bf16.gmra.mxu3 %v5581_v49 }
 0x46b   :  { %v5613_v40 = vpack.c.bf16 %v2735_v62, %v2731_v25 }
 0x46c   :  { %v2575_v44 = vpop.f32.mrf.mxu2  ;;  %v2648_v1 = vpop.f32.mrf.mxu3 }
 0x46d   :  { %v2576_v45 = vadd.f32 %v2575_v44, %v2503_v9  ;;  %v2431_v39 = vpop.f32.mrf.mxu0  ;;  %v2504_v58 = vpop.f32.mrf.mxu1 }
 0x46e   :  { %v2432_v23 = vadd.f32 %v2431_v39, %v5520_v6 }
 0x46f   :  { %v2649_v19 = vadd.f32 %v2648_v1, %v2576_v45 }
 0x470   :  { %v2505_v26 = vadd.f32 %v2504_v58, %v2432_v23  ;;  %v5924_v23 = vld [vmem:[#allocation32_spill] sm:$0xff] }
 0x471   :  { %v2739_v12 = vmax.f32 %v2649_v19, 0.0 }
 0x474   :  { %v2577_v15 = vpop.f32.mrf.mxu2  ;;  %v2650_v3 = vpop.f32.mrf.mxu3 }
 0x475   :  { %v2578_v51 = vadd.f32 %v2577_v15, %v2505_v26  ;;  %v2434_v52 = vpop.f32.mrf.mxu0  ;;  %v2507_v41 = vpop.f32.mrf.mxu1  ;;  %v5925_v26 = vld [vmem:[#allocation35_spill] sm:$0xff] }
 0x476   :  { %v2435_v0 = vadd.f32 %v2434_v52, %v5520_v6 }
 0x477   :  { %v2651_v21 = vadd.f32 %v2650_v3, %v2578_v51  ;;  %3112 = vmatmul.bf16.gmra.mxu0 %v5920_v17 }
 0x478   :  { %v2508_v49 = vadd.f32 %v2507_v41, %v2435_v0  ;;  %3185 = vmatmul.bf16.gmra.mxu1 %v5921_v63 }
 0x479   :  { %v2743_v31 = vmax.f32 %v2651_v21, 0.0  ;;  %3258 = vmatmul.bf16.gmra.mxu2 %v5411_v22  ;;  %3331 = vmatmul.bf16.gmra.mxu3 %v5589_v29 }
 0x47b   :  { %v5621_v46 = vpack.c.bf16 %v2743_v31, %v2739_v12 }
 0x47c   :  { %v2580_v59 = vpop.f32.mrf.mxu2  ;;  %v2653_v10 = vpop.f32.mrf.mxu3 }
 0x47d   :  { %v2581_v50 = vadd.f32 %v2580_v59, %v2508_v49  ;;  %v2436_v33 = vpop.f32.mrf.mxu0  ;;  %v2509_v28 = vpop.f32.mrf.mxu1 }
 0x47e   :  { %v2437_v34 = vadd.f32 %v2436_v33, %v5520_v6  ;;  %v5926_v33 = vld [vmem:[#allocation10_spill] sm:$0xff] }
 0x47f   :  { %v2654_v53 = vadd.f32 %v2653_v10, %v2581_v50 }
 0x480   :  { %v2510_v13 = vadd.f32 %v2509_v28, %v2437_v34 }
 0x481   :  { %v2747_v55 = vmax.f32 %v2654_v53, 0.0  ;;  %v5927_v53 = vld [vmem:[#allocation36_spill] sm:$0xff] }
 0x484   :  { %v2582_v47 = vpop.f32.mrf.mxu2  ;;  %v2655_v37 = vpop.f32.mrf.mxu3 }
 0x485   :  { %v2583_v60 = vadd.f32 %v2582_v47, %v2510_v13  ;;  %v2439_v35 = vpop.f32.mrf.mxu0  ;;  %v2512_v22 = vpop.f32.mrf.mxu1 }
 0x486   :  { %v2440_v5 = vadd.f32 %v2439_v35, %v5520_v6 }
 0x487   :  { %v2656_v18 = vadd.f32 %v2655_v37, %v2583_v60  ;;  %3117 = vmatmul.bf16.gmra.mxu0 %v5922_v43 }
 0x488   :  { %v2513_v29 = vadd.f32 %v2512_v22, %v2440_v5  ;;  %3190 = vmatmul.bf16.gmra.mxu1 %v5923_v56  ;;  %v5652_v22 = vld [vmem:[%s5780_s6] ss:$0 sm:$0xff] }
 0x489   :  { %v2751_v16 = vmax.f32 %v2656_v18, 0.0  ;;  %3263 = vmatmul.bf16.gmra.mxu2 %v5419_v20  ;;  %3336 = vmatmul.bf16.gmra.mxu3 %v5597_v57 }
 0x48b   :  { %v5629_v14 = vpack.c.bf16 %v2751_v16, %v2747_v55  ;;  %v5928_v55 = vld [vmem:[#allocation11_spill] sm:$0xff]  ;;  %v5929_v16 = vld [vmem:[#allocation37_spill] sm:$0xff] }
 0x48c   :  { %v2585_v30 = vpop.f32.mrf.mxu2  ;;  %v2658_v4 = vpop.f32.mrf.mxu3 }
 0x48d   :  { %v2586_v24 = vadd.f32 %v2585_v30, %v2513_v29  ;;  %v2441_v38 = vpop.f32.mrf.mxu0  ;;  %v2514_v9 = vpop.f32.mrf.mxu1 }
 0x48e   :  { %v2442_v61 = vadd.f32 %v2441_v38, %v5520_v6 }
 0x48f   :  { %v2659_v8 = vadd.f32 %v2658_v4, %v2586_v24 }
 0x490   :  { %v2515_v25 = vadd.f32 %v2514_v9, %v2442_v61 }
 0x491   :  { %v2755_v58 = vmax.f32 %v2659_v8, 0.0 }
 0x494   :  { %v2587_v62 = vpop.f32.mrf.mxu2  ;;  %v2660_v44 = vpop.f32.mrf.mxu3 }
 0x495   :  { %v2588_v27 = vadd.f32 %v2587_v62, %v2515_v25  ;;  %v2444_v45 = vpop.f32.mrf.mxu0  ;;  %v2517_v20 = vpop.f32.mrf.mxu1 }
 0x496   :  { %v2445_v1 = vadd.f32 %v2444_v45, %v5520_v6 }
 0x497   :  { %v2661_v39 = vadd.f32 %v2660_v44, %v2588_v27  ;;  %3122 = vmatmul.bf16.gmra.mxu0 %v5924_v23 }
 0x498   :  { %v2518_v57 = vadd.f32 %v2517_v20, %v2445_v1  ;;  %3195 = vmatmul.bf16.gmra.mxu1 %v5925_v26  ;;  %v5930_v20 = vld [vmem:[#allocation5_spill] sm:$0xff] }
 0x499   :  { %v2759_v19 = vmax.f32 %v2661_v39, 0.0  ;;  %3268 = vmatmul.bf16.gmra.mxu2 %v5439_v36  ;;  %3341 = vmatmul.bf16.gmra.mxu3 %v5605_v48  ;;  %v5931_v39 = vld [vmem:[#allocation38_spill] sm:$0xff] }
 0x49b   :  { %v5637_v15 = vpack.c.bf16 %v2759_v19, %v2755_v58 }
 0x49c   :  { %v2590_v51 = vpop.f32.mrf.mxu2  ;;  %v2663_v52 = vpop.f32.mrf.mxu3 }
 0x49d   :  { %v2591_v3 = vadd.f32 %v2590_v51, %v2518_v57  ;;  %v2446_v0 = vpop.f32.mrf.mxu0  ;;  %v2519_v21 = vpop.f32.mrf.mxu1 }
 0x49e   :  { %v2447_v41 = vadd.f32 %v2446_v0, %v5520_v6 }
 0x49f   :  { %v2664_v49 = vadd.f32 %v2663_v52, %v2591_v3 }
 0x4a0   :  { %v2520_v17 = vadd.f32 %v2519_v21, %v2447_v41 }
 0x4a1   :  { %v2763_v34 = vmax.f32 %v2664_v49, 0.0 }
 0x4a4   :  { %v2592_v12 = vpop.f32.mrf.mxu2  ;;  %v2665_v63 = vpop.f32.mrf.mxu3 }
 0x4a5   :  { %v2593_v31 = vadd.f32 %v2592_v12, %v2520_v17  ;;  %v2449_v59 = vpop.f32.mrf.mxu0  ;;  %v2522_v36 = vpop.f32.mrf.mxu1 }
 0x4a6   :  { %v2450_v50 = vadd.f32 %v2449_v59, %v5520_v6 }
 0x4a7   :  { %v2666_v10 = vadd.f32 %v2665_v63, %v2593_v31  ;;  %3127 = vmatmul.bf16.gmra.mxu0 %v5926_v33  ;;  %v5932_v31 = vld [vmem:[#allocation6_spill] sm:$0xff]  ;;  %v5933_v63 = vld [vmem:[#allocation39_spill] sm:$0xff] }
 0x4a8   :  { %v2523_v48 = vadd.f32 %v2522_v36, %v2450_v50  ;;  %3200 = vmatmul.bf16.gmra.mxu1 %v5927_v53 }
 0x4a9   :  { %v2767_v28 = vmax.f32 %v2666_v10, 0.0  ;;  %3273 = vmatmul.bf16.gmra.mxu2 %v5453_v11  ;;  %3346 = vmatmul.bf16.gmra.mxu3 %v5613_v40 }
 0x4ab   :  { %v5645_v13 = vpack.c.bf16 %v2767_v28, %v2763_v34 }
 0x4ac   :  { %v2595_v47 = vpop.f32.mrf.mxu2  ;;  %v2668_v37 = vpop.f32.mrf.mxu3 }
 0x4ad   :  { %v2596_v60 = vadd.f32 %v2595_v47, %v2523_v48  ;;  %v2451_v35 = vpop.f32.mrf.mxu0  ;;  %v2524_v6 = vpop.f32.mrf.mxu1 }
 0x4af   :  { %v5647_v5 = vadd.f32 %v2668_v37, %v2596_v60 }
 0x4b4   :  { %v2597_v18 = vpop.f32.mrf.mxu2  ;;  %v2670_v29 = vpop.f32.mrf.mxu3 }
 0x4b5   :  { %v3093_v43 = vpop.f32.mrf.mxu0  ;;  %v3166_v11 = vpop.f32.mrf.mxu1  ;;  %v5934_v18 = vld [vmem:[#allocation14_spill] sm:$0xff]  ;;  %v5935_v29 = vld [vmem:[#allocation40_spill] sm:$0xff] }
 0x4b6   :  { %v3094_v40 = vadd.f32 %v5652_v22, %v3093_v43 }
 0x4b7   :  { %3132 = vmatmul.bf16.gmra.mxu0 %v5928_v55 }
 0x4b8   :  { %3205 = vmatmul.bf16.gmra.mxu1 %v5929_v16  ;;  %v3167_v56 = vadd.f32 %v3166_v11, %v3094_v40 }
 0x4b9   :  { %3278 = vmatmul.bf16.gmra.mxu2 %v5467_v42  ;;  %3351 = vmatmul.bf16.gmra.mxu3 %v5621_v46 }
 0x4bc   :  { %v3239_v30 = vpop.f32.mrf.mxu2  ;;  %v3312_v4 = vpop.f32.mrf.mxu3 }
 0x4bd   :  { %v3240_v24 = vadd.f32 %v3239_v30, %v3167_v56  ;;  %v3095_v38 = vpop.f32.mrf.mxu0  ;;  %v3168_v61 = vpop.f32.mrf.mxu1 }
 0x4be   :  { %v3096_v8 = vadd.f32 %v5652_v22, %v3095_v38 }
 0x4bf   :  { %v3313_v9 = vadd.f32 %v3312_v4, %v3240_v24  ;;  %v5936_v4 = vld [vmem:[#allocation15_spill] sm:$0xff] }
 0x4c0   :  { %v3169_v25 = vadd.f32 %v3168_v61, %v3096_v8  ;;  %v2768_v38 = vmax.f32 %v5936_v4, 0.0  ;;  %v5937_v61 = vld [vmem:[#allocation41_spill] sm:$0xff]  ;;  %v2771_v8 = vmax.f32 %v5647_v5, 0.0 }
 0x4c1   :  { %3376 = vst [vmem:[%s5781_s7] sm:$0xff] %v3313_v9  ;;  %v2769_v9 = vmax.f32 %v5937_v61, 0.0 }
 0x4c4   :  { %v3241_v62 = vpop.f32.mrf.mxu2  ;;  %v3314_v44 = vpop.f32.mrf.mxu3 }
 0x4c5   :  { %v3242_v27 = vadd.f32 %v3241_v62, %v3169_v25  ;;  %v3098_v42 = vpop.f32.mrf.mxu0  ;;  %v3171_v45 = vpop.f32.mrf.mxu1 }
 0x4c6   :  { %v3099_v1 = vadd.f32 %v5652_v22, %v3098_v42  ;;  %v2820_v42 = vpack.c.bf16 %v2768_v38, %v2768_v38 }
 0x4c7   :  { %v3315_v46 = vadd.f32 %v3314_v44, %v3242_v27  ;;  %3137 = vmatmul.bf16.gmra.mxu0 %v5930_v20 }
 0x4c8   :  { %3210 = vmatmul.bf16.gmra.mxu1 %v5931_v39  ;;  %v3172_v57 = vadd.f32 %v3171_v45, %v3099_v1 }
 0x4c9   :  { %3377 = vst [vmem:[%s5781_s7 + $0x8] sm:$0xff] %v3315_v46  ;;  %3283 = vmatmul.bf16.gmra.mxu2 %v5487_v54  ;;  %3356 = vmatmul.bf16.gmra.mxu3 %v5629_v14  ;;  %v2821_v46 = vpack.c.bf16 %v2769_v9, %v2769_v9 }
 0x4cc   :  { %v3244_v23 = vpop.f32.mrf.mxu2  ;;  %v3317_v19 = vpop.f32.mrf.mxu3 }
 0x4cd   :  { %v3245_v58 = vadd.f32 %v3244_v23, %v3172_v57  ;;  %v3100_v26 = vpop.f32.mrf.mxu0  ;;  %v3173_v51 = vpop.f32.mrf.mxu1  ;;  %v2823_v57 = vpack.c.bf16 %v2771_v8, %v2771_v8 }
 0x4ce   :  { %v3101_v52 = vadd.f32 %v5652_v22, %v3100_v26 }
 0x4cf   :  { %v3318_v3 = vadd.f32 %v3317_v19, %v3245_v58 }
 0x4d0   :  { %v3174_v0 = vadd.f32 %v3173_v51, %v3101_v52 }
 0x4d1   :  { %3378 = vst [vmem:[%s5781_s7 + $0x10] sm:$0xff] %v3318_v3 }
 0x4d4   :  { %v3246_v41 = vpop.f32.mrf.mxu2  ;;  %v3319_v49 = vpop.f32.mrf.mxu3 }
 0x4d5   :  { %v3247_v21 = vadd.f32 %v3246_v41, %v3174_v0  ;;  %v3103_v54 = vpop.f32.mrf.mxu0  ;;  %v3176_v17 = vpop.f32.mrf.mxu1 }
 0x4d6   :  { %v3104_v12 = vadd.f32 %v5652_v22, %v3103_v54 }
 0x4d7   :  { %v3320_v14 = vadd.f32 %v3319_v49, %v3247_v21  ;;  %3142 = vmatmul.bf16.gmra.mxu0 %v5932_v31 }
 0x4d8   :  { %3215 = vmatmul.bf16.gmra.mxu1 %v5933_v63  ;;  %v3177_v59 = vadd.f32 %v3176_v17, %v3104_v12 }
 0x4d9   :  { %3379 = vst [vmem:[%s5781_s7 + $0x18] sm:$0xff] %v3320_v14  ;;  %3288 = vmatmul.bf16.gmra.mxu2 %v5501_v2  ;;  %3361 = vmatmul.bf16.gmra.mxu3 %v5637_v15 }
 0x4dc   :  { %v3249_v50 = vpop.f32.mrf.mxu2  ;;  %v3322_v10 = vpop.f32.mrf.mxu3 }
 0x4dd   :  { %v3250_v36 = vadd.f32 %v3249_v50, %v3177_v59  ;;  %v3105_v48 = vpop.f32.mrf.mxu0  ;;  %v3178_v33 = vpop.f32.mrf.mxu1 }
 0x4de   :  { %v3106_v28 = vadd.f32 %v5652_v22, %v3105_v48 }
 0x4df   :  { %v3323_v34 = vadd.f32 %v3322_v10, %v3250_v36 }
 0x4e0   :  { %v3179_v53 = vadd.f32 %v3178_v33, %v3106_v28 }
 0x4e1   :  { %3380 = vst [vmem:[%s5781_s7 + $0x20] sm:$0xff] %v3323_v34 }
 0x4e4   :  { %v3251_v47 = vpop.f32.mrf.mxu2  ;;  %v3324_v37 = vpop.f32.mrf.mxu3 }
 0x4e5   :  { %v3252_v60 = vadd.f32 %v3251_v47, %v3179_v53  ;;  %v3108_v2 = vpop.f32.mrf.mxu0  ;;  %v3181_v35 = vpop.f32.mrf.mxu1 }
 0x4e6   :  { %v3109_v6 = vadd.f32 %v5652_v22, %v3108_v2 }
 0x4e7   :  { %v3325_v15 = vadd.f32 %v3324_v37, %v3252_v60  ;;  %3147 = vmatmul.bf16.gmra.mxu0 %v5934_v18 }
 0x4e8   :  { %3220 = vmatmul.bf16.gmra.mxu1 %v5935_v29  ;;  %v3182_v43 = vadd.f32 %v3181_v35, %v3109_v6 }
 0x4e9   :  { %3381 = vst [vmem:[%s5781_s7 + $0x28] sm:$0xff] %v3325_v15  ;;  %3293 = vmatmul.bf16.gmra.mxu2 %v5515_v32  ;;  %3366 = vmatmul.bf16.gmra.mxu3 %v5645_v13  ;;  %v2770_v32 = vmax.f32 %v5517_v7, 0.0 }
 0x4eb   :  { %v2822_v1 = vpack.c.bf16 %v2770_v32, %v2770_v32 }
 0x4ec   :  { %v3254_v11 = vpop.f32.mrf.mxu2  ;;  %v3327_v55 = vpop.f32.mrf.mxu3 }
 0x4ed   :  { %v3255_v40 = vadd.f32 %v3254_v11, %v3182_v43  ;;  %v3110_v16 = vpop.f32.mrf.mxu0  ;;  %v3183_v56 = vpop.f32.mrf.mxu1 }
 0x4ee   :  { %v3111_v24 = vadd.f32 %v5652_v22, %v3110_v16 }
 0x4ef   :  { %v3328_v30 = vadd.f32 %v3327_v55, %v3255_v40 }
 0x4f0   :  { %v3184_v13 = vadd.f32 %v3183_v56, %v3111_v24 }
 0x4f1   :  { %3382 = vst [vmem:[%s5781_s7 + $0x30] sm:$0xff] %v3328_v30 }
 0x4f4   :  { %v3256_v25 = vpop.f32.mrf.mxu2  ;;  %v3329_v27 = vpop.f32.mrf.mxu3 }
 0x4f5   :  { %v3257_v62 = vadd.f32 %v3256_v25, %v3184_v13  ;;  %v3113_v44 = vpop.f32.mrf.mxu0  ;;  %v3186_v45 = vpop.f32.mrf.mxu1 }
 0x4f6   :  { %v3114_v39 = vadd.f32 %v5652_v22, %v3113_v44 }
 0x4f7   :  { %v3330_v20 = vadd.f32 %v3329_v27, %v3257_v62  ;;  %3152 = vmatmul.bf16.gmra.mxu0 %v2820_v42 }
 0x4f8   :  { %3225 = vmatmul.bf16.gmra.mxu1 %v2821_v46  ;;  %v3187_v7 = vadd.f32 %v3186_v45, %v3114_v39 }
 0x4f9   :  { %3383 = vst [vmem:[%s5781_s7 + $0x38] sm:$0xff] %v3330_v20  ;;  %3298 = vmatmul.bf16.gmra.mxu2 %v2822_v1  ;;  %3371 = vmatmul.bf16.gmra.mxu3 %v2823_v57 }
 0x4fc   :  { %v3259_v5 = vpop.f32.mrf.mxu2  ;;  %v3332_v58 = vpop.f32.mrf.mxu3 }
 0x4fd   :  { %v3260_v23 = vadd.f32 %v3259_v5, %v3187_v7  ;;  %v3115_v19 = vpop.f32.mrf.mxu0  ;;  %v3188_v26 = vpop.f32.mrf.mxu1 }
 0x4fe   :  { %v3116_v3 = vadd.f32 %v5652_v22, %v3115_v19 }
 0x4ff   :  { %v3333_v51 = vadd.f32 %v3332_v58, %v3260_v23 }
 0x500   :  { %v3189_v52 = vadd.f32 %v3188_v26, %v3116_v3 }
 0x501   :  { %3384 = vst [vmem:[%s5781_s7 + $0x40] sm:$0xff] %v3333_v51 }
 0x504   :  { %v3261_v0 = vpop.f32.mrf.mxu2  ;;  %v3334_v21 = vpop.f32.mrf.mxu3 }
 0x505   :  { %v3262_v41 = vadd.f32 %v3261_v0, %v3189_v52  ;;  %v3118_v49 = vpop.f32.mrf.mxu0  ;;  %v3191_v54 = vpop.f32.mrf.mxu1 }
 0x506   :  { %v3119_v14 = vadd.f32 %v5652_v22, %v3118_v49 }
 0x507   :  { %v3335_v17 = vadd.f32 %v3334_v21, %v3262_v41 }
 0x508   :  { %v3192_v12 = vadd.f32 %v3191_v54, %v3119_v14 }
 0x509   :  { %3385 = vst [vmem:[%s5781_s7 + $0x48] sm:$0xff] %v3335_v17 }
 0x50c   :  { %v3264_v31 = vpop.f32.mrf.mxu2  ;;  %v3337_v59 = vpop.f32.mrf.mxu3 }
 0x50d   :  { %v3265_v63 = vadd.f32 %v3264_v31, %v3192_v12  ;;  %v3120_v50 = vpop.f32.mrf.mxu0  ;;  %v3193_v36 = vpop.f32.mrf.mxu1 }
 0x50e   :  { %v3121_v48 = vadd.f32 %v5652_v22, %v3120_v50 }
 0x50f   :  { %v3338_v10 = vadd.f32 %v3337_v59, %v3265_v63 }
 0x510   :  { %v3194_v33 = vadd.f32 %v3193_v36, %v3121_v48 }
 0x511   :  { %3386 = vst [vmem:[%s5781_s7 + $0x50] sm:$0xff] %v3338_v10 }
 0x514   :  { %v3266_v34 = vpop.f32.mrf.mxu2  ;;  %v3339_v53 = vpop.f32.mrf.mxu3 }
 0x515   :  { %v3267_v28 = vadd.f32 %v3266_v34, %v3194_v33  ;;  %v3123_v47 = vpop.f32.mrf.mxu0  ;;  %v3196_v60 = vpop.f32.mrf.mxu1 }
 0x516   :  { %v3124_v2 = vadd.f32 %v5652_v22, %v3123_v47 }
 0x517   :  { %v3340_v37 = vadd.f32 %v3339_v53, %v3267_v28 }
 0x518   :  { %v3197_v35 = vadd.f32 %v3196_v60, %v3124_v2 }
 0x519   :  { %3387 = vst [vmem:[%s5781_s7 + $0x58] sm:$0xff] %v3340_v37 }
 0x51c   :  { %v3269_v15 = vpop.f32.mrf.mxu2  ;;  %v3342_v18 = vpop.f32.mrf.mxu3 }
 0x51d   :  { %v3270_v6 = vadd.f32 %v3269_v15, %v3197_v35  ;;  %v3125_v29 = vpop.f32.mrf.mxu0  ;;  %v3198_v43 = vpop.f32.mrf.mxu1 }
 0x51e   :  { %v3126_v40 = vadd.f32 %v5652_v22, %v3125_v29 }
 0x51f   :  { %v3343_v11 = vadd.f32 %v3342_v18, %v3270_v6 }
 0x520   :  { %v3199_v55 = vadd.f32 %v3198_v43, %v3126_v40 }
 0x521   :  { %3388 = vst [vmem:[%s5781_s7 + $0x60] sm:$0xff] %v3343_v11 }
 0x524   :  { %v3271_v16 = vpop.f32.mrf.mxu2  ;;  %v3344_v30 = vpop.f32.mrf.mxu3 }
 0x525   :  { %v3272_v56 = vadd.f32 %v3271_v16, %v3199_v55  ;;  %v3128_v24 = vpop.f32.mrf.mxu0  ;;  %v3201_v4 = vpop.f32.mrf.mxu1 }
 0x526   :  { %v3129_v61 = vadd.f32 %v5652_v22, %v3128_v24 }
 0x527   :  { %v3345_v38 = vadd.f32 %v3344_v30, %v3272_v56 }
 0x528   :  { %v3202_v9 = vadd.f32 %v3201_v4, %v3129_v61 }
 0x529   :  { %3389 = vst [vmem:[%s5781_s7 + $0x68] sm:$0xff] %v3345_v38 }
 0x52c   :  { %v3274_v32 = vpop.f32.mrf.mxu2  ;;  %v3347_v8 = vpop.f32.mrf.mxu3 }
 0x52d   :  { %v3275_v13 = vadd.f32 %v3274_v32, %v3202_v9  ;;  %v3130_v25 = vpop.f32.mrf.mxu0  ;;  %v3203_v62 = vpop.f32.mrf.mxu1 }
 0x52e   :  { %v3131_v44 = vadd.f32 %v5652_v22, %v3130_v25 }
 0x52f   :  { %v3348_v27 = vadd.f32 %v3347_v8, %v3275_v13 }
 0x530   :  { %v3204_v42 = vadd.f32 %v3203_v62, %v3131_v44 }
 0x531   :  { %3390 = vst [vmem:[%s5781_s7 + $0x70] sm:$0xff] %v3348_v27 }
 0x534   :  { %v3276_v45 = vpop.f32.mrf.mxu2  ;;  %v3349_v1 = vpop.f32.mrf.mxu3 }
 0x535   :  { %v3277_v46 = vadd.f32 %v3276_v45, %v3204_v42  ;;  %v3133_v20 = vpop.f32.mrf.mxu0  ;;  %v3206_v39 = vpop.f32.mrf.mxu1 }
 0x536   :  { %v3134_v7 = vadd.f32 %v5652_v22, %v3133_v20 }
 0x537   :  { %v3350_v57 = vadd.f32 %v3349_v1, %v3277_v46 }
 0x538   :  { %v3207_v5 = vadd.f32 %v3206_v39, %v3134_v7 }
 0x539   :  { %3391 = vst [vmem:[%s5781_s7 + $0x78] sm:$0xff] %v3350_v57 }
 0x53c   :  { %v3279_v23 = vpop.f32.mrf.mxu2  ;;  %v3352_v19 = vpop.f32.mrf.mxu3 }
 0x53d   :  { %v3280_v58 = vadd.f32 %v3279_v23, %v3207_v5  ;;  %v3135_v26 = vpop.f32.mrf.mxu0  ;;  %v3208_v51 = vpop.f32.mrf.mxu1 }
 0x53e   :  { %v3136_v52 = vadd.f32 %v5652_v22, %v3135_v26 }
 0x53f   :  { %v3353_v3 = vadd.f32 %v3352_v19, %v3280_v58 }
 0x540   :  { %v3209_v0 = vadd.f32 %v3208_v51, %v3136_v52 }
 0x541   :  { %3392 = vst [vmem:[%s5781_s7 + $0x80] sm:$0xff] %v3353_v3 }
 0x544   :  { %v3281_v41 = vpop.f32.mrf.mxu2  ;;  %v3354_v49 = vpop.f32.mrf.mxu3 }
 0x545   :  { %v3282_v21 = vadd.f32 %v3281_v41, %v3209_v0  ;;  %v3138_v54 = vpop.f32.mrf.mxu0  ;;  %v3211_v17 = vpop.f32.mrf.mxu1 }
 0x546   :  { %v3139_v12 = vadd.f32 %v5652_v22, %v3138_v54 }
 0x547   :  { %v3355_v14 = vadd.f32 %v3354_v49, %v3282_v21 }
 0x548   :  { %v3212_v31 = vadd.f32 %v3211_v17, %v3139_v12 }
 0x549   :  { %3393 = vst [vmem:[%s5781_s7 + $0x88] sm:$0xff] %v3355_v14 }
 0x54c   :  { %v3284_v63 = vpop.f32.mrf.mxu2  ;;  %v3357_v50 = vpop.f32.mrf.mxu3 }
 0x54d   :  { %v3285_v59 = vadd.f32 %v3284_v63, %v3212_v31  ;;  %v3140_v36 = vpop.f32.mrf.mxu0  ;;  %v3213_v10 = vpop.f32.mrf.mxu1 }
 0x54e   :  { %v3141_v33 = vadd.f32 %v5652_v22, %v3140_v36 }
 0x54f   :  { %v3358_v48 = vadd.f32 %v3357_v50, %v3285_v59 }
 0x550   :  { %v3214_v34 = vadd.f32 %v3213_v10, %v3141_v33 }
 0x551   :  { %3394 = vst [vmem:[%s5781_s7 + $0x90] sm:$0xff] %v3358_v48 }
 0x554   :  { %v3286_v28 = vpop.f32.mrf.mxu2  ;;  %v3359_v47 = vpop.f32.mrf.mxu3 }
 0x555   :  { %v3287_v53 = vadd.f32 %v3286_v28, %v3214_v34  ;;  %v3143_v60 = vpop.f32.mrf.mxu0  ;;  %v3216_v37 = vpop.f32.mrf.mxu1 }
 0x556   :  { %v3144_v35 = vadd.f32 %v5652_v22, %v3143_v60 }
 0x557   :  { %v3360_v2 = vadd.f32 %v3359_v47, %v3287_v53 }
 0x558   :  { %v3217_v15 = vadd.f32 %v3216_v37, %v3144_v35 }
 0x559   :  { %3395 = vst [vmem:[%s5781_s7 + $0x98] sm:$0xff] %v3360_v2 }
 0x55c   :  { %v3289_v6 = vpop.f32.mrf.mxu2  ;;  %v3362_v29 = vpop.f32.mrf.mxu3 }
 0x55d   :  { %v3290_v18 = vadd.f32 %v3289_v6, %v3217_v15  ;;  %v3145_v43 = vpop.f32.mrf.mxu0  ;;  %v3218_v11 = vpop.f32.mrf.mxu1 }
 0x55e   :  { %v3146_v55 = vadd.f32 %v5652_v22, %v3145_v43 }
 0x55f   :  { %v3363_v40 = vadd.f32 %v3362_v29, %v3290_v18 }
 0x560   :  { %v3219_v16 = vadd.f32 %v3218_v11, %v3146_v55 }
 0x561   :  { %3396 = vst [vmem:[%s5781_s7 + $0xa0] sm:$0xff] %v3363_v40 }
 0x564   :  { %v3291_v56 = vpop.f32.mrf.mxu2  ;;  %v3364_v24 = vpop.f32.mrf.mxu3 }
 0x565   :  { %v3292_v30 = vadd.f32 %v3291_v56, %v3219_v16  ;;  %v3148_v4 = vpop.f32.mrf.mxu0  ;;  %v3221_v38 = vpop.f32.mrf.mxu1 }
 0x566   :  { %v3149_v9 = vadd.f32 %v5652_v22, %v3148_v4 }
 0x567   :  { %v3365_v61 = vadd.f32 %v3364_v24, %v3292_v30 }
 0x568   :  { %v3222_v32 = vadd.f32 %v3221_v38, %v3149_v9 }
 0x569   :  { %3397 = vst [vmem:[%s5781_s7 + $0xa8] sm:$0xff] %v3365_v61 }
 0x56c   :  { %v3294_v13 = vpop.f32.mrf.mxu2  ;;  %v3367_v25 = vpop.f32.mrf.mxu3 }
 0x56d   :  { %v3295_v8 = vadd.f32 %v3294_v13, %v3222_v32  ;;  %v3150_v62 = vpop.f32.mrf.mxu0  ;;  %v3223_v27 = vpop.f32.mrf.mxu1 }
 0x56e   :  { %v3151_v42 = vadd.f32 %v5652_v22, %v3150_v62 }
 0x56f   :  { %v3368_v44 = vadd.f32 %v3367_v25, %v3295_v8 }
 0x570   :  { %v3224_v45 = vadd.f32 %v3223_v27, %v3151_v42 }
 0x571   :  { %3398 = vst [vmem:[%s5781_s7 + $0xb0] sm:$0xff] %v3368_v44 }
 0x574   :  { %v3296_v46 = vpop.f32.mrf.mxu2  ;;  %v3369_v20 = vpop.f32.mrf.mxu3 }
 0x575   :  { %v3297_v1 = vadd.f32 %v3296_v46, %v3224_v45  ;;  %v3153_v39 = vpop.f32.mrf.mxu0  ;;  %v3226_v57 = vpop.f32.mrf.mxu1 }
 0x576   :  { %v3154_v5 = vadd.f32 %v5652_v22, %v3153_v39 }
 0x577   :  { %v3370_v7 = vadd.f32 %v3369_v20, %v3297_v1 }
 0x578   :  { %v3227_v23 = vadd.f32 %v3226_v57, %v3154_v5 }
 0x579   :  { %3399 = vst [vmem:[%s5781_s7 + $0xb8] sm:$0xff] %v3370_v7 }
 0x57c   :  { %v3299_v58 = vpop.f32.mrf.mxu2  ;;  %v3372_v26 = vpop.f32.mrf.mxu3 }
 0x57d   :  { %v3300_v19 = vadd.f32 %v3299_v58, %v3227_v23  ;;  %v3155_v51 = vpop.f32.mrf.mxu0  ;;  %v3228_v3 = vpop.f32.mrf.mxu1 }
 0x57f   :  { %v3373_v52 = vadd.f32 %v3372_v26, %v3300_v19 }
 0x581   :  { %3400 = vst [vmem:[%s5781_s7 + $0xc0] sm:$0xff] %v3373_v52 }
 0x584   :  { %v3301_v0 = vpop.f32.mrf.mxu2  ;;  %v3374_v41 = vpop.f32.mrf.mxu3 }
 0x585   :  { %3405 = vsyncpa [#allocation3], 1 }

</bundles_post_ra>
